<compile_context>
chip_gen: v7x
topology: tpu7x:2x2x1
jax: 0.10.0
libtpu: 0.0.40
codegen_flags: <defaults>
</compile_context>

<pallas_src>
import functools

import jax
import jax.numpy as jnp
from jax import lax
from jax.experimental import pallas as pl
from jax.experimental.pallas import tpu as pltpu

LN_EPS = 1e-5
# Finite "-inf": fully-masked rows degrade to uniform attention instead of NaN
# (documented deviation from torch, which yields NaN for all--inf rows).
NEG_INF = -1e30

F32 = jnp.float32
BF16 = jnp.bfloat16


# ----------------------------------------------------------------------------
# In-kernel helpers
# ----------------------------------------------------------------------------
def _layer_norm(h, gamma, beta):
    """LayerNorm over last dim; fused one-pass stats, var clamped >= 0."""
    mu = jnp.mean(h, axis=-1, keepdims=True)
    var = jnp.maximum(jnp.mean(h * h, axis=-1, keepdims=True) - mu * mu, 0.0)
    return (h - mu) * lax.rsqrt(var + LN_EPS) * gamma + beta


def _mha(q, k, v, bias, nhead):
    """Batched multi-head attention on 2-D slabs.

    q: (Sq, D) f32, k/v: (Sk, D) f32, bias: None or additive tensor
    broadcastable to (H, Sq, Sk).  Returns (Sq, D) f32.
    Heads are split with one reshape+transpose per tensor and contracted as a
    single batched MXU call (no per-head tiny matmuls / lane slices / concat).
    Softmax math stays in f32 (v5e has no bf16 VPU/EUP path).
    """
    sq, d_model = q.shape
    sk = k.shape[0]
    hd = d_model // nhead
    scale = 1.0 / float(hd) ** 0.5

    qh = jnp.transpose((q * scale).reshape(sq, nhead, hd), (1, 0, 2)).astype(BF16)
    kh = jnp.transpose(k.reshape(sk, nhead, hd), (1, 0, 2)).astype(BF16)
    vh = jnp.transpose(v.reshape(sk, nhead, hd), (1, 0, 2)).astype(BF16)

    # Scores for all heads at once: (H, Sq, Sk), f32 accumulate.
    s = lax.dot_general(qh, kh, (((2,), (2,)), ((0,), (0,))),
                        preferred_element_type=F32)
    if bias is not None:
        s = s + bias
    s = s - jnp.max(s, axis=-1, keepdims=True)
    p = jnp.exp(s)
    p = p * pl.reciprocal(jnp.sum(p, axis=-1, keepdims=True), approx=True)

    # (H, Sq, Sk) @ (H, Sk, hd) -> (H, Sq, hd), then merge heads -> (Sq, D).
    o = lax.dot_general(p.astype(BF16), vh, (((2,), (1,)), ((0,), (0,))),
                        preferred_element_type=F32)
    return jnp.transpose(o, (1, 0, 2)).reshape(sq, d_model)


def _proj(x_f32, w_ref, b_ref):
    """bf16-operand projection with f32 accumulate + f32 bias add."""
    return jnp.dot(x_f32.astype(BF16), w_ref[...],
                   preferred_element_type=F32) + b_ref[...]


# ----------------------------------------------------------------------------
# Kernel
# ----------------------------------------------------------------------------
def _decoder_layer_kernel(*refs, nhead, tq, tgt_is_causal,
                          has_sa_kpm, has_ca_kpm, has_ca_bias):
    idx = 0

    def nxt():
        nonlocal idx
        r = refs[idx]
        idx += 1
        return r

    tgt_ref = nxt()                         # (1, St, D)  full tgt (self-attn K/V)
    mem_ref = nxt()                         # (1, Sm, D)
    sa_kb_ref = nxt() if has_sa_kpm else None    # (1, 1, St) additive
    ca_kb_ref = nxt() if has_ca_kpm else None    # (1, 1, Sm) additive
    ca_bias_ref = nxt() if has_ca_bias else None  # (1, H, tq, Sm) bf16 additive
    (wq_s, bq_s, wkv_s, bkv_s, wo_s, bo_s, g1, be1,
     wq_c, bq_c, wkv_c, bkv_c, wo_c, bo_c, g2, be2,
     w1, b1, w2, b2, g3, be3) = refs[idx:idx + 22]
    out_ref = refs[idx + 22]

    d_model = out_ref.shape[-1]
    st = tgt_ref.shape[1]
    qi = pl.program_id(1)
    q0 = pl.multiple_of(qi * tq, tq)

    # Query rows of this tile (f32 for the residual stream); full tgt only ever
    # feeds the bf16 K/V projection so it never needs an f32 copy.
    x_q = tgt_ref[0, pl.ds(q0, tq), :].astype(F32)          # (tq, D)
    x_full_b = tgt_ref[0].astype(BF16)                      # (St, D)

    # ---------------- self-attention + residual + norm1 ----------------
    q_s = _proj(x_q, wq_s, bq_s)                            # (tq, D)
    kv_s = jnp.dot(x_full_b, wkv_s[...],
                   preferred_element_type=F32) + bkv_s[...]  # (St, 2D)
    k_s = kv_s[:, :d_model]
    v_s = kv_s[:, d_model:]

    sa_bias = None
    if has_sa_kpm:
        sa_bias = sa_kb_ref[0]                              # (1, St)
    if tgt_is_causal:
        qpos = q0 + lax.broadcasted_iota(jnp.int32, (tq, st), 0)
        kpos = lax.broadcasted_iota(jnp.int32, (tq, st), 1)
        causal = jnp.where(kpos > qpos, NEG_INF, 0.0).astype(F32)
        sa_bias = causal if sa_bias is None else causal + sa_bias
    if sa_bias is not None:
        sa_bias = sa_bias[None] if sa_bias.ndim == 2 else sa_bias

    sa = _mha(q_s, k_s, v_s, sa_bias, nhead)
    sa = _proj(sa, wo_s, bo_s)
    x = _layer_norm(x_q + sa, g1[...], be1[...])

    # ---------------- cross-attention + residual + norm2 ----------------
    q_c = _proj(x, wq_c, bq_c)                              # (tq, D)
    kv_c = jnp.dot(mem_ref[0].astype(BF16), wkv_c[...],
                   preferred_element_type=F32) + bkv_c[...]  # (Sm, 2D)
    k_c = kv_c[:, :d_model]
    v_c = kv_c[:, d_model:]

    ca_bias = None
    if has_ca_kpm:
        ca_bias = ca_kb_ref[0][None]                        # (1, 1, Sm)
    if has_ca_bias:
        cb = ca_bias_ref[0].astype(F32)                     # (H, tq, Sm)
        ca_bias = cb if ca_bias is None else cb + ca_bias

    ca = _mha(q_c, k_c, v_c, ca_bias, nhead)
    ca = _proj(ca, wo_c, bo_c)
    x = _layer_norm(x + ca, g2[...], be2[...])

    # ---------------- feed-forward + residual + norm3 ----------------
    h = jnp.maximum(_proj(x, w1, b1), 0.0)                  # ReLU
    ff = _proj(h, w2, b2)
    x = _layer_norm(x + ff, g3[...], be3[...])

    out_ref[0] = x.astype(out_ref.dtype)


# ----------------------------------------------------------------------------
# Wrapper
# ----------------------------------------------------------------------------
def flash_decoder_layer(tgt, memory, params, *, nhead,
                        tgt_key_padding_mask=None,
                        memory_key_padding_mask=None,
                        cross_attn_bias=None,
                        tgt_is_causal=False,
                        tq=None):
    """tgt: (B, St, D), memory: (B, Sm, D) -> (B, St, D) in tgt.dtype.

    Key padding masks follow the torch convention (True = padded / ignored);
    the module's `~mask` inversion is folded into the additive bias here.
    """
    B, St, D = tgt.shape
    Bm, Sm, Dm = memory.shape
    assert Bm == B and Dm == D and D % nhead == 0
    H = nhead
    F = params["w1"].shape[1]

    # Query tile: bound per-step VMEM / create pipeline & megacore work.
    if tq is None:
        tq = min(St, 128)
    if St % tq != 0:
        tq = St                      # fallback: single query block
    n_q_blocks = St // tq

    has_sa_kpm = tgt_key_padding_mask is not None
    has_ca_kpm = memory_key_padding_mask is not None
    has_ca_bias = cross_attn_bias is not None

    inputs = [tgt, memory]
    in_specs = [
        pl.BlockSpec((1, St, D), lambda b, q: (b, 0, 0)),   # tgt (full)
        pl.BlockSpec((1, Sm, D), lambda b, q: (b, 0, 0)),   # memory (full)
    ]
    if has_sa_kpm:
        sa_kb = jnp.where(tgt_key_padding_mask, NEG_INF, 0.0).astype(F32)
        inputs.append(sa_kb.reshape(B, 1, St))
        in_specs.append(pl.BlockSpec((1, 1, St), lambda b, q: (b, 0, 0)))
    if has_ca_kpm:
        ca_kb = jnp.where(memory_key_padding_mask, NEG_INF, 0.0).astype(F32)
        inputs.append(ca_kb.reshape(B, 1, Sm))
        in_specs.append(pl.BlockSpec((1, 1, Sm), lambda b, q: (b, 0, 0)))
    if has_ca_bias:
        cb = jnp.broadcast_to(cross_attn_bias, (B, H, St, Sm)).astype(BF16)
        inputs.append(cb)
        in_specs.append(pl.BlockSpec((1, H, tq, Sm), lambda b, q: (b, 0, q, 0)))

    def const_spec(shape):
        zeros = (0,) * len(shape)
        return pl.BlockSpec(shape, lambda b, q, z=zeros: z)

    weight_order = ["wq_s", "bq_s", "wkv_s", "bkv_s", "wo_s", "bo_s", "g1", "be1",
                    "wq_c", "bq_c", "wkv_c", "bkv_c", "wo_c", "bo_c", "g2", "be2",
                    "w1", "b1", "w2", "b2", "g3", "be3"]
    for name in weight_order:
        arr = params[name]
        inputs.append(arr)
        in_specs.append(const_spec(arr.shape))

    kernel = functools.partial(
        _decoder_layer_kernel, nhead=H, tq=tq, tgt_is_causal=tgt_is_causal,
        has_sa_kpm=has_sa_kpm, has_ca_kpm=has_ca_kpm, has_ca_bias=has_ca_bias)

    # Scoped-VMEM limit sized from the working set, capped so it is valid on
    # v7x (64 MiB physical per TensorCore).
    weight_bytes = sum(int(params[n].size) * params[n].dtype.itemsize
                       for n in weight_order)
    act_bytes = 4 * (St * D + Sm * D + 2 * St * D + 2 * Sm * D
                     + H * tq * max(St, Sm) + tq * F + 6 * tq * D)
    est = 2 * weight_bytes + 3 * act_bytes + (4 << 20)
    vmem_limit = int(min(64 << 20, max(32 << 20, est)))

    out = pl.pallas_call(
        kernel,
        out_shape=jax.ShapeDtypeStruct((B, St, D), tgt.dtype),
        grid_spec=pltpu.PrefetchScalarGridSpec(
            num_scalar_prefetch=0,
            grid=(B, n_q_blocks),
            in_specs=in_specs,
            out_specs=pl.BlockSpec((1, tq, D), lambda b, q: (b, q, 0)),
        ),
        compiler_params=pltpu.CompilerParams(
            dimension_semantics=("parallel", "parallel"),
            vmem_limit_bytes=vmem_limit),
    )(*inputs)
    return out


# ----------------------------------------------------------------------------
# Parameters: matmul weights stored bf16 (MXU operands), biases / LN params f32.
# Weights are pre-transposed to (in, out); K,V packed per attention.
# ----------------------------------------------------------------------------
def init_params(key, d_model, nhead, dim_feedforward):
    ks = jax.random.split(key, 16)
    s = 1.0 / float(d_model) ** 0.5
    sf = 1.0 / float(dim_feedforward) ** 0.5

    def w(k, shape, scale):
        return jax.random.uniform(k, shape, F32, -scale, scale).astype(BF16)

    def b(k, shape, scale):
        return jax.random.uniform(k, shape, F32, -scale, scale)

    ones = jnp.ones((1, d_model), F32)
    zeros = jnp.zeros((1, d_model), F32)
    D, Fd = d_model, dim_feedforward
    return {
        # self-attention: Q proj + packed K,V proj + output proj
        "wq_s": w(ks[0], (D, D), s), "bq_s": b(ks[1], (1, D), s),
        "wkv_s": w(ks[2], (D, 2 * D), s), "bkv_s": b(ks[3], (1, 2 * D), s),
        "wo_s": w(ks[4], (D, D), s), "bo_s": b(ks[5], (1, D), s),
        "g1": ones, "be1": zeros,
        # cross-attention: Q from x, packed K,V from memory + output proj
        "wq_c": w(ks[6], (D, D), s), "bq_c": b(ks[7], (1, D), s),
        "wkv_c": w(ks[8], (D, 2 * D), s), "bkv_c": b(ks[9], (1, 2 * D), s),
        "wo_c": w(ks[10], (D, D), s), "bo_c": b(ks[11], (1, D), s),
        "g2": ones, "be2": zeros,
        # feed-forward
        "w1": w(ks[12], (D, Fd), s), "b1": b(ks[13], (1, Fd), s),
        "w2": w(ks[14], (Fd, D), sf), "b2": b(ks[15], (1, D), sf),
        "g3": ones, "be3": zeros,
    }


# ----------------------------------------------------------------------------
# Pure-JAX reference (mirrors the PyTorch forward, norm_first=False, eval mode,
# with the same bf16-operand / f32-accumulate matmul numerics as the kernel).
# ----------------------------------------------------------------------------
def flash_decoder_layer_ref(tgt, memory, params, *, nhead,
                            tgt_key_padding_mask=None,
                            memory_key_padding_mask=None,
                            cross_attn_bias=None,
                            tgt_is_causal=False):
    B, St, D = tgt.shape
    Sm = memory.shape[1]
    H = nhead
    hd = D // H
    scale = 1.0 / float(hd) ** 0.5

    def mm(a, w):
        return jnp.matmul(a.astype(BF16), w.astype(BF16),
                          preferred_element_type=F32)

    def ln(h, g, b):
        mu = h.mean(-1, keepdims=True)
        var = ((h - mu) ** 2).mean(-1, keepdims=True)
        return (h - mu) / jnp.sqrt(var + LN_EPS) * g + b

    def heads(t, S):
        return t.reshape(B, S, H, hd).transpose(0, 2, 1, 3)

    def attn(q, k, v, bias):
        Sq, Sk = q.shape[1], k.shape[1]
        qh = heads(q * scale, Sq).astype(BF16)
        kh = heads(k, Sk).astype(BF16)
        vh = heads(v, Sk).astype(BF16)
        s = jnp.einsum("bhqd,bhkd->bhqk", qh, kh, preferred_element_type=F32)
        if bias is not None:
            s = s + bias
        p = jax.nn.softmax(s, axis=-1)
        o = jnp.einsum("bhqk,bhkd->bhqd", p.astype(BF16), vh,
                       preferred_element_type=F32)
        return o.transpose(0, 2, 1, 3).reshape(B, Sq, D)

    def kb(mask, S):
        if mask is None:
            return None
        return jnp.where(mask, NEG_INF, 0.0).astype(F32).reshape(B, 1, 1, S)

    x0 = tgt.astype(F32)

    sa_bias = kb(tgt_key_padding_mask, St)
    if tgt_is_causal:
        c = jnp.where(jnp.arange(St)[None, :] > jnp.arange(St)[:, None],
                      NEG_INF, 0.0).astype(F32)
        sa_bias = c if sa_bias is None else sa_bias + c
    q = mm(x0, params["wq_s"]) + params["bq_s"]
    kv = mm(x0, params["wkv_s"]) + params["bkv_s"]
    sa = attn(q, kv[..., :D], kv[..., D:], sa_bias)
    sa = mm(sa, params["wo_s"]) + params["bo_s"]
    x = ln(x0 + sa, params["g1"], params["be1"])

    ca_bias = kb(memory_key_padding_mask, Sm)
    if cross_attn_bias is not None:
        cb = jnp.broadcast_to(cross_attn_bias, (B, H, St, Sm))
        cb = cb.astype(BF16).astype(F32)          # matches the bf16 DMA'd bias
        ca_bias = cb if ca_bias is None else ca_bias + cb
    qc = mm(x, params["wq_c"]) + params["bq_c"]
    kvc = mm(memory.astype(F32), params["wkv_c"]) + params["bkv_c"]
    ca = attn(qc, kvc[..., :D], kvc[..., D:], ca_bias)
    ca = mm(ca, params["wo_c"]) + params["bo_c"]
    x = ln(x + ca, params["g2"], params["be2"])

    h = jnp.maximum(mm(x, params["w1"]) + params["b1"], 0.0)
    ff = mm(h, params["w2"]) + params["b2"]
    x = ln(x + ff, params["g3"], params["be3"])
    return x.astype(tgt.dtype)


# ----------------------------------------------------------------------------
# Demo / self-test
# ----------------------------------------------------------------------------
if __name__ == "__main__":
    B, St, Sm = 2, 8, 16          # batch, target seq, memory seq
    D, H, F = 128, 4, 256         # d_model (lane-dense), nhead, dim_feedforward

    key = jax.random.PRNGKey(0)
    kt, km, kp, kc = jax.random.split(key, 4)
    tgt = jax.random.normal(kt, (B, St, D), F32)
    memory = jax.random.normal(km, (B, Sm, D), F32)
    params = init_params(kp, D, H, F)

    # torch convention: True = padded / ignored (module applies ~mask internally)
    tgt_kpm = jnp.zeros((B, St), dtype=bool).at[:, -1].set(True)
    mem_kpm = jnp.zeros((B, Sm), dtype=bool).at[:, -2:].set(True)
    cross_bias = 0.1 * jax.random.normal(kc, (B, H, St, Sm), F32)

    out = flash_decoder_layer(tgt, memory, params, nhead=H,
                              tgt_key_padding_mask=tgt_kpm,
                              memory_key_padding_mask=mem_kpm,
                              cross_attn_bias=cross_bias,
                              tgt_is_causal=False)
    out = jax.block_until_ready(out)

    ref = flash_decoder_layer_ref(tgt, memory, params, nhead=H,
                                  tgt_key_padding_mask=tgt_kpm,
                                  memory_key_padding_mask=mem_kpm,
                                  cross_attn_bias=cross_bias,
                                  tgt_is_causal=False)

    assert out.shape == (B, St, D)
    # Tolerance covers bf16 MXU operands (both paths), the EUP approximate
    # reciprocal in the kernel softmax, and one-pass vs two-pass LayerNorm.
    err = float(jnp.max(jnp.abs(out - ref)))
    assert jnp.allclose(out, ref, rtol=2e-2, atol=2e-2), f"max abs err {err}"

    print("KERNEL_OK")
</pallas_src>

<mosaic_0001>
module attributes {stable_mosaic.version = 11 : i64} {
  func.func @_decoder_layer_kernel(%arg0: i32, %arg1: i32, %arg2: memref<1x8x128xf32, #tpu.memory_space<vmem>>, %arg3: memref<1x16x128xf32, #tpu.memory_space<vmem>>, %arg4: memref<1x1x8xf32, #tpu.memory_space<vmem>>, %arg5: memref<1x1x16xf32, #tpu.memory_space<vmem>>, %arg6: memref<1x4x8x16xbf16, #tpu.memory_space<vmem>>, %arg7: memref<128x128xbf16, #tpu.memory_space<vmem>>, %arg8: memref<1x128xf32, #tpu.memory_space<vmem>>, %arg9: memref<128x256xbf16, #tpu.memory_space<vmem>>, %arg10: memref<1x256xf32, #tpu.memory_space<vmem>>, %arg11: memref<128x128xbf16, #tpu.memory_space<vmem>>, %arg12: memref<1x128xf32, #tpu.memory_space<vmem>>, %arg13: memref<1x128xf32, #tpu.memory_space<vmem>>, %arg14: memref<1x128xf32, #tpu.memory_space<vmem>>, %arg15: memref<128x128xbf16, #tpu.memory_space<vmem>>, %arg16: memref<1x128xf32, #tpu.memory_space<vmem>>, %arg17: memref<128x256xbf16, #tpu.memory_space<vmem>>, %arg18: memref<1x256xf32, #tpu.memory_space<vmem>>, %arg19: memref<128x128xbf16, #tpu.memory_space<vmem>>, %arg20: memref<1x128xf32, #tpu.memory_space<vmem>>, %arg21: memref<1x128xf32, #tpu.memory_space<vmem>>, %arg22: memref<1x128xf32, #tpu.memory_space<vmem>>, %arg23: memref<128x256xbf16, #tpu.memory_space<vmem>>, %arg24: memref<1x256xf32, #tpu.memory_space<vmem>>, %arg25: memref<256x128xbf16, #tpu.memory_space<vmem>>, %arg26: memref<1x128xf32, #tpu.memory_space<vmem>>, %arg27: memref<1x128xf32, #tpu.memory_space<vmem>>, %arg28: memref<1x128xf32, #tpu.memory_space<vmem>>, %arg29: memref<1x8x128xf32, #tpu.memory_space<vmem>>) attributes {dimension_semantics = [#tpu.dimension_semantics<parallel>, #tpu.dimension_semantics<parallel>], iteration_bounds = array<i64: 2, 1>, scalar_prefetch = 0 : i64, scratch_operands = 0 : i64, tpu.core_type = #tpu.core_type<tc>, window_params = [{transform_indices = @transform_0, window_bounds = array<i64: 1, 8, 128>}, {transform_indices = @transform_1, window_bounds = array<i64: 1, 16, 128>}, {transform_indices = @transform_2, window_bounds = array<i64: 1, 1, 8>}, {transform_indices = @transform_3, window_bounds = array<i64: 1, 1, 16>}, {transform_indices = @transform_4, window_bounds = array<i64: 1, 4, 8, 16>}, {pipeline_mode = #tpu.pipeline_mode<synchronous>, transform_indices = @transform_5, window_bounds = array<i64: 128, 128>}, {pipeline_mode = #tpu.pipeline_mode<synchronous>, transform_indices = @transform_6, window_bounds = array<i64: 1, 128>}, {pipeline_mode = #tpu.pipeline_mode<synchronous>, transform_indices = @transform_7, window_bounds = array<i64: 128, 256>}, {pipeline_mode = #tpu.pipeline_mode<synchronous>, transform_indices = @transform_8, window_bounds = array<i64: 1, 256>}, {pipeline_mode = #tpu.pipeline_mode<synchronous>, transform_indices = @transform_9, window_bounds = array<i64: 128, 128>}, {pipeline_mode = #tpu.pipeline_mode<synchronous>, transform_indices = @transform_10, window_bounds = array<i64: 1, 128>}, {pipeline_mode = #tpu.pipeline_mode<synchronous>, transform_indices = @transform_11, window_bounds = array<i64: 1, 128>}, {pipeline_mode = #tpu.pipeline_mode<synchronous>, transform_indices = @transform_12, window_bounds = array<i64: 1, 128>}, {pipeline_mode = #tpu.pipeline_mode<synchronous>, transform_indices = @transform_13, window_bounds = array<i64: 128, 128>}, {pipeline_mode = #tpu.pipeline_mode<synchronous>, transform_indices = @transform_14, window_bounds = array<i64: 1, 128>}, {pipeline_mode = #tpu.pipeline_mode<synchronous>, transform_indices = @transform_15, window_bounds = array<i64: 128, 256>}, {pipeline_mode = #tpu.pipeline_mode<synchronous>, transform_indices = @transform_16, window_bounds = array<i64: 1, 256>}, {pipeline_mode = #tpu.pipeline_mode<synchronous>, transform_indices = @transform_17, window_bounds = array<i64: 128, 128>}, {pipeline_mode = #tpu.pipeline_mode<synchronous>, transform_indices = @transform_18, window_bounds = array<i64: 1, 128>}, {pipeline_mode = #tpu.pipeline_mode<synchronous>, transform_indices = @transform_19, window_bounds = array<i64: 1, 128>}, {pipeline_mode = #tpu.pipeline_mode<synchronous>, transform_indices = @transform_20, window_bounds = array<i64: 1, 128>}, {pipeline_mode = #tpu.pipeline_mode<synchronous>, transform_indices = @transform_21, window_bounds = array<i64: 128, 256>}, {pipeline_mode = #tpu.pipeline_mode<synchronous>, transform_indices = @transform_22, window_bounds = array<i64: 1, 256>}, {pipeline_mode = #tpu.pipeline_mode<synchronous>, transform_indices = @transform_23, window_bounds = array<i64: 256, 128>}, {pipeline_mode = #tpu.pipeline_mode<synchronous>, transform_indices = @transform_24, window_bounds = array<i64: 1, 128>}, {pipeline_mode = #tpu.pipeline_mode<synchronous>, transform_indices = @transform_25, window_bounds = array<i64: 1, 128>}, {pipeline_mode = #tpu.pipeline_mode<synchronous>, transform_indices = @transform_26, window_bounds = array<i64: 1, 128>}, {transform_indices = @transform_27, window_bounds = array<i64: 1, 8, 128>}]} {
    %c8_i32 = arith.constant 8 : i32
    %0 = arith.muli %arg1, %c8_i32 : i32
    %1 = tpu.assume_multiple %0, 8 : i32
    %c0 = arith.constant 0 : index
    %2 = arith.index_cast %1 : i32 to index
    %c0_0 = arith.constant 0 : index
    %3 = vector.load %arg2[%c0, %2, %c0_0] : memref<1x8x128xf32, #tpu.memory_space<vmem>>, vector<1x8x128xf32>
    %4 = vector.shape_cast %3 : vector<1x8x128xf32> to vector<8x128xf32>
    %c0_1 = arith.constant 0 : index
    %c0_2 = arith.constant 0 : index
    %c0_3 = arith.constant 0 : index
    %5 = vector.load %arg2[%c0_1, %c0_2, %c0_3] : memref<1x8x128xf32, #tpu.memory_space<vmem>>, vector<1x8x128xf32>
    %6 = vector.shape_cast %5 : vector<1x8x128xf32> to vector<8x128xf32>
    %7 = arith.truncf %6 : vector<8x128xf32> to vector<8x128xbf16>
    %8 = arith.truncf %4 : vector<8x128xf32> to vector<8x128xbf16>
    %c0_4 = arith.constant 0 : index
    %c0_5 = arith.constant 0 : index
    %9 = vector.load %arg7[%c0_4, %c0_5] : memref<128x128xbf16, #tpu.memory_space<vmem>>, vector<128x128xbf16>
    %cst = arith.constant dense<0.000000e+00> : vector<8x128xf32>
    %10 = tpu.matmul %8, %9, %cst {dimension_numbers = #tpu.dot_dimension_numbers<[1], [0], [0], [1], [0, 0, 1, 1], [], []>} : vector<8x128xbf16>, vector<128x128xbf16>, vector<8x128xf32> -> vector<8x128xf32>
    %c0_6 = arith.constant 0 : index
    %c0_7 = arith.constant 0 : index
    %11 = vector.load %arg8[%c0_6, %c0_7] : memref<1x128xf32, #tpu.memory_space<vmem>>, vector<1x128xf32>
    %12 = vector.broadcast %11 : vector<1x128xf32> to vector<8x128xf32>
    %13 = arith.addf %10, %12 : vector<8x128xf32>
    %c0_8 = arith.constant 0 : index
    %c0_9 = arith.constant 0 : index
    %14 = vector.load %arg9[%c0_8, %c0_9] : memref<128x256xbf16, #tpu.memory_space<vmem>>, vector<128x256xbf16>
    %cst_10 = arith.constant dense<0.000000e+00> : vector<8x256xf32>
    %15 = tpu.matmul %7, %14, %cst_10 {dimension_numbers = #tpu.dot_dimension_numbers<[1], [0], [0], [1], [0, 0, 1, 1], [], []>} : vector<8x128xbf16>, vector<128x256xbf16>, vector<8x256xf32> -> vector<8x256xf32>
    %c0_11 = arith.constant 0 : index
    %c0_12 = arith.constant 0 : index
    %16 = vector.load %arg10[%c0_11, %c0_12] : memref<1x256xf32, #tpu.memory_space<vmem>>, vector<1x256xf32>
    %17 = vector.broadcast %16 : vector<1x256xf32> to vector<8x256xf32>
    %18 = arith.addf %15, %17 : vector<8x256xf32>
    %19 = vector.extract_strided_slice %18 {offsets = [0, 0], sizes = [8, 128], strides = [1, 1]} : vector<8x256xf32> to vector<8x128xf32>
    %20 = vector.extract_strided_slice %18 {offsets = [0, 128], sizes = [8, 128], strides = [1, 1]} : vector<8x256xf32> to vector<8x128xf32>
    %c0_13 = arith.constant 0 : index
    %c0_14 = arith.constant 0 : index
    %c0_15 = arith.constant 0 : index
    %21 = vector.load %arg4[%c0_13, %c0_14, %c0_15] : memref<1x1x8xf32, #tpu.memory_space<vmem>>, vector<1x1x8xf32>
    %22 = vector.shape_cast %21 : vector<1x1x8xf32> to vector<1x8xf32>
    %23 = vector.shape_cast %22 : vector<1x8xf32> to vector<1x1x8xf32>
    %cst_16 = arith.constant 0.176776692 : f32
    %24 = vector.broadcast %cst_16 : f32 to vector<8x128xf32>
    %25 = arith.mulf %13, %24 : vector<8x128xf32>
    %26 = vector.shape_cast %25 : vector<8x128xf32> to vector<8x4x32xf32>
    %27 = tpu.transpose %26, [1, 0, 2] : vector<8x4x32xf32> -> vector<4x8x32xf32>
    %28 = arith.truncf %27 : vector<4x8x32xf32> to vector<4x8x32xbf16>
    %29 = vector.shape_cast %19 : vector<8x128xf32> to vector<8x4x32xf32>
    %30 = tpu.transpose %29, [1, 0, 2] : vector<8x4x32xf32> -> vector<4x8x32xf32>
    %31 = arith.truncf %30 : vector<4x8x32xf32> to vector<4x8x32xbf16>
    %32 = vector.shape_cast %20 : vector<8x128xf32> to vector<8x4x32xf32>
    %33 = tpu.transpose %32, [1, 0, 2] : vector<8x4x32xf32> -> vector<4x8x32xf32>
    %34 = arith.truncf %33 : vector<4x8x32xf32> to vector<4x8x32xbf16>
    %cst_17 = arith.constant dense<0.000000e+00> : vector<4x8x8xf32>
    %35 = tpu.matmul %28, %31, %cst_17 {dimension_numbers = #tpu.dot_dimension_numbers<[2], [2], [1], [1], [0, 0, 0, 1, 1, 1], [0], [0]>} : vector<4x8x32xbf16>, vector<4x8x32xbf16>, vector<4x8x8xf32> -> vector<4x8x8xf32>
    %36 = vector.broadcast %23 : vector<1x1x8xf32> to vector<4x8x8xf32>
    %37 = arith.addf %35, %36 : vector<4x8x8xf32>
    %cst_18 = arith.constant dense<0xFF800000> : vector<4x8xf32>
    %38 = vector.multi_reduction <maximumf>, %37, %cst_18 [2] : vector<4x8x8xf32> to vector<4x8xf32>
    %39 = vector.shape_cast %38 : vector<4x8xf32> to vector<4x8x1xf32>
    %40 = vector.broadcast %39 : vector<4x8x1xf32> to vector<4x8x8xf32>
    %41 = arith.subf %37, %40 : vector<4x8x8xf32>
    %42 = math.exp %41 : vector<4x8x8xf32>
    %cst_19 = arith.constant dense<0.000000e+00> : vector<4x8xf32>
    %43 = vector.multi_reduction <add>, %42, %cst_19 [2] : vector<4x8x8xf32> to vector<4x8xf32>
    %44 = vector.shape_cast %43 : vector<4x8xf32> to vector<4x8x1xf32>
    %45 = tpu.reciprocal %44 {approx = true} : vector<4x8x1xf32> -> vector<4x8x1xf32>
    %46 = vector.broadcast %45 : vector<4x8x1xf32> to vector<4x8x8xf32>
    %47 = arith.mulf %42, %46 : vector<4x8x8xf32>
    %48 = arith.truncf %47 : vector<4x8x8xf32> to vector<4x8x8xbf16>
    %cst_20 = arith.constant dense<0.000000e+00> : vector<4x8x32xf32>
    %49 = tpu.matmul %48, %34, %cst_20 {dimension_numbers = #tpu.dot_dimension_numbers<[2], [1], [1], [2], [0, 0, 0, 1, 1, 2], [0], [0]>} : vector<4x8x8xbf16>, vector<4x8x32xbf16>, vector<4x8x32xf32> -> vector<4x8x32xf32>
    %50 = tpu.transpose %49, [1, 0, 2] : vector<4x8x32xf32> -> vector<8x4x32xf32>
    %51 = vector.shape_cast %50 : vector<8x4x32xf32> to vector<8x128xf32>
    %52 = arith.truncf %51 : vector<8x128xf32> to vector<8x128xbf16>
    %c0_21 = arith.constant 0 : index
    %c0_22 = arith.constant 0 : index
    %53 = vector.load %arg11[%c0_21, %c0_22] : memref<128x128xbf16, #tpu.memory_space<vmem>>, vector<128x128xbf16>
    %cst_23 = arith.constant dense<0.000000e+00> : vector<8x128xf32>
    %54 = tpu.matmul %52, %53, %cst_23 {dimension_numbers = #tpu.dot_dimension_numbers<[1], [0], [0], [1], [0, 0, 1, 1], [], []>} : vector<8x128xbf16>, vector<128x128xbf16>, vector<8x128xf32> -> vector<8x128xf32>
    %c0_24 = arith.constant 0 : index
    %c0_25 = arith.constant 0 : index
    %55 = vector.load %arg12[%c0_24, %c0_25] : memref<1x128xf32, #tpu.memory_space<vmem>>, vector<1x128xf32>
    %56 = vector.broadcast %55 : vector<1x128xf32> to vector<8x128xf32>
    %57 = arith.addf %54, %56 : vector<8x128xf32>
    %58 = arith.addf %4, %57 : vector<8x128xf32>
    %c0_26 = arith.constant 0 : index
    %c0_27 = arith.constant 0 : index
    %59 = vector.load %arg13[%c0_26, %c0_27] : memref<1x128xf32, #tpu.memory_space<vmem>>, vector<1x128xf32>
    %c0_28 = arith.constant 0 : index
    %c0_29 = arith.constant 0 : index
    %60 = vector.load %arg14[%c0_28, %c0_29] : memref<1x128xf32, #tpu.memory_space<vmem>>, vector<1x128xf32>
    %cst_30 = arith.constant dense<0.000000e+00> : vector<8xf32>
    %61 = vector.multi_reduction <add>, %58, %cst_30 [1] : vector<8x128xf32> to vector<8xf32>
    %62 = vector.shape_cast %61 : vector<8xf32> to vector<8x1xf32>
    %cst_31 = arith.constant 1.280000e+02 : f32
    %63 = vector.broadcast %cst_31 : f32 to vector<8x1xf32>
    %64 = arith.divf %62, %63 : vector<8x1xf32>
    %65 = arith.mulf %58, %58 : vector<8x128xf32>
    %cst_32 = arith.constant dense<0.000000e+00> : vector<8xf32>
    %66 = vector.multi_reduction <add>, %65, %cst_32 [1] : vector<8x128xf32> to vector<8xf32>
    %67 = vector.shape_cast %66 : vector<8xf32> to vector<8x1xf32>
    %cst_33 = arith.constant 1.280000e+02 : f32
    %68 = vector.broadcast %cst_33 : f32 to vector<8x1xf32>
    %69 = arith.divf %67, %68 : vector<8x1xf32>
    %70 = arith.mulf %64, %64 : vector<8x1xf32>
    %71 = arith.subf %69, %70 : vector<8x1xf32>
    %cst_34 = arith.constant 0.000000e+00 : f32
    %72 = vector.broadcast %cst_34 : f32 to vector<8x1xf32>
    %73 = arith.maximumf %71, %72 : vector<8x1xf32>
    %74 = vector.broadcast %64 : vector<8x1xf32> to vector<8x128xf32>
    %75 = arith.subf %58, %74 : vector<8x128xf32>
    %cst_35 = arith.constant 9.99999974E-6 : f32
    %76 = vector.broadcast %cst_35 : f32 to vector<8x1xf32>
    %77 = arith.addf %73, %76 : vector<8x1xf32>
    %78 = math.rsqrt %77 : vector<8x1xf32>
    %79 = vector.broadcast %78 : vector<8x1xf32> to vector<8x128xf32>
    %80 = arith.mulf %75, %79 : vector<8x128xf32>
    %81 = vector.broadcast %59 : vector<1x128xf32> to vector<8x128xf32>
    %82 = arith.mulf %80, %81 : vector<8x128xf32>
    %83 = vector.broadcast %60 : vector<1x128xf32> to vector<8x128xf32>
    %84 = arith.addf %82, %83 : vector<8x128xf32>
    %85 = arith.truncf %84 : vector<8x128xf32> to vector<8x128xbf16>
    %c0_36 = arith.constant 0 : index
    %c0_37 = arith.constant 0 : index
    %86 = vector.load %arg15[%c0_36, %c0_37] : memref<128x128xbf16, #tpu.memory_space<vmem>>, vector<128x128xbf16>
    %cst_38 = arith.constant dense<0.000000e+00> : vector<8x128xf32>
    %87 = tpu.matmul %85, %86, %cst_38 {dimension_numbers = #tpu.dot_dimension_numbers<[1], [0], [0], [1], [0, 0, 1, 1], [], []>} : vector<8x128xbf16>, vector<128x128xbf16>, vector<8x128xf32> -> vector<8x128xf32>
    %c0_39 = arith.constant 0 : index
    %c0_40 = arith.constant 0 : index
    %88 = vector.load %arg16[%c0_39, %c0_40] : memref<1x128xf32, #tpu.memory_space<vmem>>, vector<1x128xf32>
    %89 = vector.broadcast %88 : vector<1x128xf32> to vector<8x128xf32>
    %90 = arith.addf %87, %89 : vector<8x128xf32>
    %c0_41 = arith.constant 0 : index
    %c0_42 = arith.constant 0 : index
    %c0_43 = arith.constant 0 : index
    %91 = vector.load %arg3[%c0_41, %c0_42, %c0_43] : memref<1x16x128xf32, #tpu.memory_space<vmem>>, vector<1x16x128xf32>
    %92 = vector.shape_cast %91 : vector<1x16x128xf32> to vector<16x128xf32>
    %93 = arith.truncf %92 : vector<16x128xf32> to vector<16x128xbf16>
    %c0_44 = arith.constant 0 : index
    %c0_45 = arith.constant 0 : index
    %94 = vector.load %arg17[%c0_44, %c0_45] : memref<128x256xbf16, #tpu.memory_space<vmem>>, vector<128x256xbf16>
    %cst_46 = arith.constant dense<0.000000e+00> : vector<16x256xf32>
    %95 = tpu.matmul %93, %94, %cst_46 {dimension_numbers = #tpu.dot_dimension_numbers<[1], [0], [0], [1], [0, 0, 1, 1], [], []>} : vector<16x128xbf16>, vector<128x256xbf16>, vector<16x256xf32> -> vector<16x256xf32>
    %c0_47 = arith.constant 0 : index
    %c0_48 = arith.constant 0 : index
    %96 = vector.load %arg18[%c0_47, %c0_48] : memref<1x256xf32, #tpu.memory_space<vmem>>, vector<1x256xf32>
    %97 = vector.broadcast %96 : vector<1x256xf32> to vector<16x256xf32>
    %98 = arith.addf %95, %97 : vector<16x256xf32>
    %99 = vector.extract_strided_slice %98 {offsets = [0, 0], sizes = [16, 128], strides = [1, 1]} : vector<16x256xf32> to vector<16x128xf32>
    %100 = vector.extract_strided_slice %98 {offsets = [0, 128], sizes = [16, 128], strides = [1, 1]} : vector<16x256xf32> to vector<16x128xf32>
    %c0_49 = arith.constant 0 : index
    %c0_50 = arith.constant 0 : index
    %c0_51 = arith.constant 0 : index
    %101 = vector.load %arg5[%c0_49, %c0_50, %c0_51] : memref<1x1x16xf32, #tpu.memory_space<vmem>>, vector<1x1x16xf32>
    %102 = vector.shape_cast %101 : vector<1x1x16xf32> to vector<1x16xf32>
    %103 = vector.shape_cast %102 : vector<1x16xf32> to vector<1x1x16xf32>
    %c0_52 = arith.constant 0 : index
    %c0_53 = arith.constant 0 : index
    %c0_54 = arith.constant 0 : index
    %c0_55 = arith.constant 0 : index
    %104 = vector.load %arg6[%c0_52, %c0_53, %c0_54, %c0_55] : memref<1x4x8x16xbf16, #tpu.memory_space<vmem>>, vector<1x4x8x16xbf16>
    %105 = vector.shape_cast %104 : vector<1x4x8x16xbf16> to vector<4x8x16xbf16>
    %106 = arith.extf %105 : vector<4x8x16xbf16> to vector<4x8x16xf32>
    %107 = vector.broadcast %103 : vector<1x1x16xf32> to vector<4x8x16xf32>
    %108 = arith.addf %106, %107 : vector<4x8x16xf32>
    %cst_56 = arith.constant 0.176776692 : f32
    %109 = vector.broadcast %cst_56 : f32 to vector<8x128xf32>
    %110 = arith.mulf %90, %109 : vector<8x128xf32>
    %111 = vector.shape_cast %110 : vector<8x128xf32> to vector<8x4x32xf32>
    %112 = tpu.transpose %111, [1, 0, 2] : vector<8x4x32xf32> -> vector<4x8x32xf32>
    %113 = arith.truncf %112 : vector<4x8x32xf32> to vector<4x8x32xbf16>
    %114 = vector.shape_cast %99 : vector<16x128xf32> to vector<16x4x32xf32>
    %115 = tpu.transpose %114, [1, 0, 2] : vector<16x4x32xf32> -> vector<4x16x32xf32>
    %116 = arith.truncf %115 : vector<4x16x32xf32> to vector<4x16x32xbf16>
    %117 = vector.shape_cast %100 : vector<16x128xf32> to vector<16x4x32xf32>
    %118 = tpu.transpose %117, [1, 0, 2] : vector<16x4x32xf32> -> vector<4x16x32xf32>
    %119 = arith.truncf %118 : vector<4x16x32xf32> to vector<4x16x32xbf16>
    %cst_57 = arith.constant dense<0.000000e+00> : vector<4x8x16xf32>
    %120 = tpu.matmul %113, %116, %cst_57 {dimension_numbers = #tpu.dot_dimension_numbers<[2], [2], [1], [1], [0, 0, 0, 1, 1, 1], [0], [0]>} : vector<4x8x32xbf16>, vector<4x16x32xbf16>, vector<4x8x16xf32> -> vector<4x8x16xf32>
    %121 = arith.addf %120, %108 : vector<4x8x16xf32>
    %cst_58 = arith.constant dense<0xFF800000> : vector<4x8xf32>
    %122 = vector.multi_reduction <maximumf>, %121, %cst_58 [2] : vector<4x8x16xf32> to vector<4x8xf32>
    %123 = vector.shape_cast %122 : vector<4x8xf32> to vector<4x8x1xf32>
    %124 = vector.broadcast %123 : vector<4x8x1xf32> to vector<4x8x16xf32>
    %125 = arith.subf %121, %124 : vector<4x8x16xf32>
    %126 = math.exp %125 : vector<4x8x16xf32>
    %cst_59 = arith.constant dense<0.000000e+00> : vector<4x8xf32>
    %127 = vector.multi_reduction <add>, %126, %cst_59 [2] : vector<4x8x16xf32> to vector<4x8xf32>
    %128 = vector.shape_cast %127 : vector<4x8xf32> to vector<4x8x1xf32>
    %129 = tpu.reciprocal %128 {approx = true} : vector<4x8x1xf32> -> vector<4x8x1xf32>
    %130 = vector.broadcast %129 : vector<4x8x1xf32> to vector<4x8x16xf32>
    %131 = arith.mulf %126, %130 : vector<4x8x16xf32>
    %132 = arith.truncf %131 : vector<4x8x16xf32> to vector<4x8x16xbf16>
    %cst_60 = arith.constant dense<0.000000e+00> : vector<4x8x32xf32>
    %133 = tpu.matmul %132, %119, %cst_60 {dimension_numbers = #tpu.dot_dimension_numbers<[2], [1], [1], [2], [0, 0, 0, 1, 1, 2], [0], [0]>} : vector<4x8x16xbf16>, vector<4x16x32xbf16>, vector<4x8x32xf32> -> vector<4x8x32xf32>
    %134 = tpu.transpose %133, [1, 0, 2] : vector<4x8x32xf32> -> vector<8x4x32xf32>
    %135 = vector.shape_cast %134 : vector<8x4x32xf32> to vector<8x128xf32>
    %136 = arith.truncf %135 : vector<8x128xf32> to vector<8x128xbf16>
    %c0_61 = arith.constant 0 : index
    %c0_62 = arith.constant 0 : index
    %137 = vector.load %arg19[%c0_61, %c0_62] : memref<128x128xbf16, #tpu.memory_space<vmem>>, vector<128x128xbf16>
    %cst_63 = arith.constant dense<0.000000e+00> : vector<8x128xf32>
    %138 = tpu.matmul %136, %137, %cst_63 {dimension_numbers = #tpu.dot_dimension_numbers<[1], [0], [0], [1], [0, 0, 1, 1], [], []>} : vector<8x128xbf16>, vector<128x128xbf16>, vector<8x128xf32> -> vector<8x128xf32>
    %c0_64 = arith.constant 0 : index
    %c0_65 = arith.constant 0 : index
    %139 = vector.load %arg20[%c0_64, %c0_65] : memref<1x128xf32, #tpu.memory_space<vmem>>, vector<1x128xf32>
    %140 = vector.broadcast %139 : vector<1x128xf32> to vector<8x128xf32>
    %141 = arith.addf %138, %140 : vector<8x128xf32>
    %142 = arith.addf %84, %141 : vector<8x128xf32>
    %c0_66 = arith.constant 0 : index
    %c0_67 = arith.constant 0 : index
    %143 = vector.load %arg21[%c0_66, %c0_67] : memref<1x128xf32, #tpu.memory_space<vmem>>, vector<1x128xf32>
    %c0_68 = arith.constant 0 : index
    %c0_69 = arith.constant 0 : index
    %144 = vector.load %arg22[%c0_68, %c0_69] : memref<1x128xf32, #tpu.memory_space<vmem>>, vector<1x128xf32>
    %cst_70 = arith.constant dense<0.000000e+00> : vector<8xf32>
    %145 = vector.multi_reduction <add>, %142, %cst_70 [1] : vector<8x128xf32> to vector<8xf32>
    %146 = vector.shape_cast %145 : vector<8xf32> to vector<8x1xf32>
    %cst_71 = arith.constant 1.280000e+02 : f32
    %147 = vector.broadcast %cst_71 : f32 to vector<8x1xf32>
    %148 = arith.divf %146, %147 : vector<8x1xf32>
    %149 = arith.mulf %142, %142 : vector<8x128xf32>
    %cst_72 = arith.constant dense<0.000000e+00> : vector<8xf32>
    %150 = vector.multi_reduction <add>, %149, %cst_72 [1] : vector<8x128xf32> to vector<8xf32>
    %151 = vector.shape_cast %150 : vector<8xf32> to vector<8x1xf32>
    %cst_73 = arith.constant 1.280000e+02 : f32
    %152 = vector.broadcast %cst_73 : f32 to vector<8x1xf32>
    %153 = arith.divf %151, %152 : vector<8x1xf32>
    %154 = arith.mulf %148, %148 : vector<8x1xf32>
    %155 = arith.subf %153, %154 : vector<8x1xf32>
    %cst_74 = arith.constant 0.000000e+00 : f32
    %156 = vector.broadcast %cst_74 : f32 to vector<8x1xf32>
    %157 = arith.maximumf %155, %156 : vector<8x1xf32>
    %158 = vector.broadcast %148 : vector<8x1xf32> to vector<8x128xf32>
    %159 = arith.subf %142, %158 : vector<8x128xf32>
    %cst_75 = arith.constant 9.99999974E-6 : f32
    %160 = vector.broadcast %cst_75 : f32 to vector<8x1xf32>
    %161 = arith.addf %157, %160 : vector<8x1xf32>
    %162 = math.rsqrt %161 : vector<8x1xf32>
    %163 = vector.broadcast %162 : vector<8x1xf32> to vector<8x128xf32>
    %164 = arith.mulf %159, %163 : vector<8x128xf32>
    %165 = vector.broadcast %143 : vector<1x128xf32> to vector<8x128xf32>
    %166 = arith.mulf %164, %165 : vector<8x128xf32>
    %167 = vector.broadcast %144 : vector<1x128xf32> to vector<8x128xf32>
    %168 = arith.addf %166, %167 : vector<8x128xf32>
    %169 = arith.truncf %168 : vector<8x128xf32> to vector<8x128xbf16>
    %c0_76 = arith.constant 0 : index
    %c0_77 = arith.constant 0 : index
    %170 = vector.load %arg23[%c0_76, %c0_77] : memref<128x256xbf16, #tpu.memory_space<vmem>>, vector<128x256xbf16>
    %cst_78 = arith.constant dense<0.000000e+00> : vector<8x256xf32>
    %171 = tpu.matmul %169, %170, %cst_78 {dimension_numbers = #tpu.dot_dimension_numbers<[1], [0], [0], [1], [0, 0, 1, 1], [], []>} : vector<8x128xbf16>, vector<128x256xbf16>, vector<8x256xf32> -> vector<8x256xf32>
    %c0_79 = arith.constant 0 : index
    %c0_80 = arith.constant 0 : index
    %172 = vector.load %arg24[%c0_79, %c0_80] : memref<1x256xf32, #tpu.memory_space<vmem>>, vector<1x256xf32>
    %173 = vector.broadcast %172 : vector<1x256xf32> to vector<8x256xf32>
    %174 = arith.addf %171, %173 : vector<8x256xf32>
    %cst_81 = arith.constant 0.000000e+00 : f32
    %175 = vector.broadcast %cst_81 : f32 to vector<8x256xf32>
    %176 = arith.maximumf %174, %175 : vector<8x256xf32>
    %177 = arith.truncf %176 : vector<8x256xf32> to vector<8x256xbf16>
    %c0_82 = arith.constant 0 : index
    %c0_83 = arith.constant 0 : index
    %178 = vector.load %arg25[%c0_82, %c0_83] : memref<256x128xbf16, #tpu.memory_space<vmem>>, vector<256x128xbf16>
    %cst_84 = arith.constant dense<0.000000e+00> : vector<8x128xf32>
    %179 = tpu.matmul %177, %178, %cst_84 {dimension_numbers = #tpu.dot_dimension_numbers<[1], [0], [0], [1], [0, 0, 1, 1], [], []>} : vector<8x256xbf16>, vector<256x128xbf16>, vector<8x128xf32> -> vector<8x128xf32>
    %c0_85 = arith.constant 0 : index
    %c0_86 = arith.constant 0 : index
    %180 = vector.load %arg26[%c0_85, %c0_86] : memref<1x128xf32, #tpu.memory_space<vmem>>, vector<1x128xf32>
    %181 = vector.broadcast %180 : vector<1x128xf32> to vector<8x128xf32>
    %182 = arith.addf %179, %181 : vector<8x128xf32>
    %183 = arith.addf %168, %182 : vector<8x128xf32>
    %c0_87 = arith.constant 0 : index
    %c0_88 = arith.constant 0 : index
    %184 = vector.load %arg27[%c0_87, %c0_88] : memref<1x128xf32, #tpu.memory_space<vmem>>, vector<1x128xf32>
    %c0_89 = arith.constant 0 : index
    %c0_90 = arith.constant 0 : index
    %185 = vector.load %arg28[%c0_89, %c0_90] : memref<1x128xf32, #tpu.memory_space<vmem>>, vector<1x128xf32>
    %cst_91 = arith.constant dense<0.000000e+00> : vector<8xf32>
    %186 = vector.multi_reduction <add>, %183, %cst_91 [1] : vector<8x128xf32> to vector<8xf32>
    %187 = vector.shape_cast %186 : vector<8xf32> to vector<8x1xf32>
    %cst_92 = arith.constant 1.280000e+02 : f32
    %188 = vector.broadcast %cst_92 : f32 to vector<8x1xf32>
    %189 = arith.divf %187, %188 : vector<8x1xf32>
    %190 = arith.mulf %183, %183 : vector<8x128xf32>
    %cst_93 = arith.constant dense<0.000000e+00> : vector<8xf32>
    %191 = vector.multi_reduction <add>, %190, %cst_93 [1] : vector<8x128xf32> to vector<8xf32>
    %192 = vector.shape_cast %191 : vector<8xf32> to vector<8x1xf32>
    %cst_94 = arith.constant 1.280000e+02 : f32
    %193 = vector.broadcast %cst_94 : f32 to vector<8x1xf32>
    %194 = arith.divf %192, %193 : vector<8x1xf32>
    %195 = arith.mulf %189, %189 : vector<8x1xf32>
    %196 = arith.subf %194, %195 : vector<8x1xf32>
    %cst_95 = arith.constant 0.000000e+00 : f32
    %197 = vector.broadcast %cst_95 : f32 to vector<8x1xf32>
    %198 = arith.maximumf %196, %197 : vector<8x1xf32>
    %199 = vector.broadcast %189 : vector<8x1xf32> to vector<8x128xf32>
    %200 = arith.subf %183, %199 : vector<8x128xf32>
    %cst_96 = arith.constant 9.99999974E-6 : f32
    %201 = vector.broadcast %cst_96 : f32 to vector<8x1xf32>
    %202 = arith.addf %198, %201 : vector<8x1xf32>
    %203 = math.rsqrt %202 : vector<8x1xf32>
    %204 = vector.broadcast %203 : vector<8x1xf32> to vector<8x128xf32>
    %205 = arith.mulf %200, %204 : vector<8x128xf32>
    %206 = vector.broadcast %184 : vector<1x128xf32> to vector<8x128xf32>
    %207 = arith.mulf %205, %206 : vector<8x128xf32>
    %208 = vector.broadcast %185 : vector<1x128xf32> to vector<8x128xf32>
    %209 = arith.addf %207, %208 : vector<8x128xf32>
    %c0_97 = arith.constant 0 : index
    %c0_98 = arith.constant 0 : index
    %c0_99 = arith.constant 0 : index
    %210 = vector.load %arg29[%c0_97, %c0_98, %c0_99] : memref<1x8x128xf32, #tpu.memory_space<vmem>>, vector<1x8x128xf32>
    %211 = vector.shape_cast %210 : vector<1x8x128xf32> to vector<8x128xf32>
    %212 = vector.shape_cast %209 : vector<8x128xf32> to vector<1x8x128xf32>
    tpu.vector_store %arg29[%c0_97, %c0_98, %c0_99], %212 {strides = array<i32>} : memref<1x8x128xf32, #tpu.memory_space<vmem>>, vector<1x8x128xf32>,
    return
  }
  func.func @transform_0(%arg0: i32, %arg1: i32) -> (i32, i32, i32) {
    %c0_i32 = arith.constant 0 : i32
    %c0_i32_0 = arith.constant 0 : i32
    %c0_i32_1 = arith.constant 0 : i32
    return %arg0, %c0_i32, %c0_i32_0 : i32, i32, i32
  }
  func.func @transform_1(%arg0: i32, %arg1: i32) -> (i32, i32, i32) {
    %c0_i32 = arith.constant 0 : i32
    %c0_i32_0 = arith.constant 0 : i32
    %c0_i32_1 = arith.constant 0 : i32
    return %arg0, %c0_i32, %c0_i32_0 : i32, i32, i32
  }
  func.func @transform_2(%arg0: i32, %arg1: i32) -> (i32, i32, i32) {
    %c0_i32 = arith.constant 0 : i32
    %c0_i32_0 = arith.constant 0 : i32
    %c0_i32_1 = arith.constant 0 : i32
    return %arg0, %c0_i32, %c0_i32_0 : i32, i32, i32
  }
  func.func @transform_3(%arg0: i32, %arg1: i32) -> (i32, i32, i32) {
    %c0_i32 = arith.constant 0 : i32
    %c0_i32_0 = arith.constant 0 : i32
    %c0_i32_1 = arith.constant 0 : i32
    return %arg0, %c0_i32, %c0_i32_0 : i32, i32, i32
  }
  func.func @transform_4(%arg0: i32, %arg1: i32) -> (i32, i32, i32, i32) {
    %c0_i32 = arith.constant 0 : i32
    %c0_i32_0 = arith.constant 0 : i32
    %c0_i32_1 = arith.constant 0 : i32
    return %arg0, %c0_i32, %arg1, %c0_i32_0 : i32, i32, i32, i32
  }
  func.func @transform_5(%arg0: i32, %arg1: i32) -> (i32, i32) {
    %c0_i32 = arith.constant 0 : i32
    %c0_i32_0 = arith.constant 0 : i32
    %c0_i32_1 = arith.constant 0 : i32
    return %c0_i32, %c0_i32_0 : i32, i32
  }
  func.func @transform_6(%arg0: i32, %arg1: i32) -> (i32, i32) {
    %c0_i32 = arith.constant 0 : i32
    %c0_i32_0 = arith.constant 0 : i32
    %c0_i32_1 = arith.constant 0 : i32
    return %c0_i32, %c0_i32_0 : i32, i32
  }
  func.func @transform_7(%arg0: i32, %arg1: i32) -> (i32, i32) {
    %c0_i32 = arith.constant 0 : i32
    %c0_i32_0 = arith.constant 0 : i32
    %c0_i32_1 = arith.constant 0 : i32
    return %c0_i32, %c0_i32_0 : i32, i32
  }
  func.func @transform_8(%arg0: i32, %arg1: i32) -> (i32, i32) {
    %c0_i32 = arith.constant 0 : i32
    %c0_i32_0 = arith.constant 0 : i32
    %c0_i32_1 = arith.constant 0 : i32
    return %c0_i32, %c0_i32_0 : i32, i32
  }
  func.func @transform_9(%arg0: i32, %arg1: i32) -> (i32, i32) {
    %c0_i32 = arith.constant 0 : i32
    %c0_i32_0 = arith.constant 0 : i32
    %c0_i32_1 = arith.constant 0 : i32
    return %c0_i32, %c0_i32_0 : i32, i32
  }
  func.func @transform_10(%arg0: i32, %arg1: i32) -> (i32, i32) {
    %c0_i32 = arith.constant 0 : i32
    %c0_i32_0 = arith.constant 0 : i32
    %c0_i32_1 = arith.constant 0 : i32
    return %c0_i32, %c0_i32_0 : i32, i32
  }
  func.func @transform_11(%arg0: i32, %arg1: i32) -> (i32, i32) {
    %c0_i32 = arith.constant 0 : i32
    %c0_i32_0 = arith.constant 0 : i32
    %c0_i32_1 = arith.constant 0 : i32
    return %c0_i32, %c0_i32_0 : i32, i32
  }
  func.func @transform_12(%arg0: i32, %arg1: i32) -> (i32, i32) {
    %c0_i32 = arith.constant 0 : i32
    %c0_i32_0 = arith.constant 0 : i32
    %c0_i32_1 = arith.constant 0 : i32
    return %c0_i32, %c0_i32_0 : i32, i32
  }
  func.func @transform_13(%arg0: i32, %arg1: i32) -> (i32, i32) {
    %c0_i32 = arith.constant 0 : i32
    %c0_i32_0 = arith.constant 0 : i32
    %c0_i32_1 = arith.constant 0 : i32
    return %c0_i32, %c0_i32_0 : i32, i32
  }
  func.func @transform_14(%arg0: i32, %arg1: i32) -> (i32, i32) {
    %c0_i32 = arith.constant 0 : i32
    %c0_i32_0 = arith.constant 0 : i32
    %c0_i32_1 = arith.constant 0 : i32
    return %c0_i32, %c0_i32_0 : i32, i32
  }
  func.func @transform_15(%arg0: i32, %arg1: i32) -> (i32, i32) {
    %c0_i32 = arith.constant 0 : i32
    %c0_i32_0 = arith.constant 0 : i32
    %c0_i32_1 = arith.constant 0 : i32
    return %c0_i32, %c0_i32_0 : i32, i32
  }
  func.func @transform_16(%arg0: i32, %arg1: i32) -> (i32, i32) {
    %c0_i32 = arith.constant 0 : i32
    %c0_i32_0 = arith.constant 0 : i32
    %c0_i32_1 = arith.constant 0 : i32
    return %c0_i32, %c0_i32_0 : i32, i32
  }
  func.func @transform_17(%arg0: i32, %arg1: i32) -> (i32, i32) {
    %c0_i32 = arith.constant 0 : i32
    %c0_i32_0 = arith.constant 0 : i32
    %c0_i32_1 = arith.constant 0 : i32
    return %c0_i32, %c0_i32_0 : i32, i32
  }
  func.func @transform_18(%arg0: i32, %arg1: i32) -> (i32, i32) {
    %c0_i32 = arith.constant 0 : i32
    %c0_i32_0 = arith.constant 0 : i32
    %c0_i32_1 = arith.constant 0 : i32
    return %c0_i32, %c0_i32_0 : i32, i32
  }
  func.func @transform_19(%arg0: i32, %arg1: i32) -> (i32, i32) {
    %c0_i32 = arith.constant 0 : i32
    %c0_i32_0 = arith.constant 0 : i32
    %c0_i32_1 = arith.constant 0 : i32
    return %c0_i32, %c0_i32_0 : i32, i32
  }
  func.func @transform_20(%arg0: i32, %arg1: i32) -> (i32, i32) {
    %c0_i32 = arith.constant 0 : i32
    %c0_i32_0 = arith.constant 0 : i32
    %c0_i32_1 = arith.constant 0 : i32
    return %c0_i32, %c0_i32_0 : i32, i32
  }
  func.func @transform_21(%arg0: i32, %arg1: i32) -> (i32, i32) {
    %c0_i32 = arith.constant 0 : i32
    %c0_i32_0 = arith.constant 0 : i32
    %c0_i32_1 = arith.constant 0 : i32
    return %c0_i32, %c0_i32_0 : i32, i32
  }
  func.func @transform_22(%arg0: i32, %arg1: i32) -> (i32, i32) {
    %c0_i32 = arith.constant 0 : i32
    %c0_i32_0 = arith.constant 0 : i32
    %c0_i32_1 = arith.constant 0 : i32
    return %c0_i32, %c0_i32_0 : i32, i32
  }
  func.func @transform_23(%arg0: i32, %arg1: i32) -> (i32, i32) {
    %c0_i32 = arith.constant 0 : i32
    %c0_i32_0 = arith.constant 0 : i32
    %c0_i32_1 = arith.constant 0 : i32
    return %c0_i32, %c0_i32_0 : i32, i32
  }
  func.func @transform_24(%arg0: i32, %arg1: i32) -> (i32, i32) {
    %c0_i32 = arith.constant 0 : i32
    %c0_i32_0 = arith.constant 0 : i32
    %c0_i32_1 = arith.constant 0 : i32
    return %c0_i32, %c0_i32_0 : i32, i32
  }
  func.func @transform_25(%arg0: i32, %arg1: i32) -> (i32, i32) {
    %c0_i32 = arith.constant 0 : i32
    %c0_i32_0 = arith.constant 0 : i32
    %c0_i32_1 = arith.constant 0 : i32
    return %c0_i32, %c0_i32_0 : i32, i32
  }
  func.func @transform_26(%arg0: i32, %arg1: i32) -> (i32, i32) {
    %c0_i32 = arith.constant 0 : i32
    %c0_i32_0 = arith.constant 0 : i32
    %c0_i32_1 = arith.constant 0 : i32
    return %c0_i32, %c0_i32_0 : i32, i32
  }
  func.func @transform_27(%arg0: i32, %arg1: i32) -> (i32, i32, i32) {
    %c0_i32 = arith.constant 0 : i32
    %c0_i32_0 = arith.constant 0 : i32
    return %arg0, %arg1, %c0_i32 : i32, i32, i32
  }
}

</mosaic_0001>

<bundles_post_ra>
// kernel: tpu_custom_call.1
= control target key start
LH: loop header
LB: loop body
LE: loop exit
PB: predicated region body
PF: predicated region fallthrough
CT: control target
= control target key end

     0   :  { %s7877_s0 = inlined_call_operand.hbm [shape: f32[2,8,128], index: 0, kind: input, shape index: {}]   ;;  %s7878_s1 = inlined_call_operand.hbm [shape: f32[2,16,128], index: 1, kind: input, shape index: {}]   ;;  %s7879_s2 = inlined_call_operand.hbm [shape: f32[2,1,8], index: 2, kind: input, shape index: {}]   ;;  %s7880_s3 = inlined_call_operand.hbm [shape: f32[2,1,16], index: 3, kind: input, shape index: {}]   ;;  %s7881_s4 = inlined_call_operand.hbm [shape: bf16[2,4,8,16], index: 4, kind: input, shape index: {}]   ;;  %s7882_s5 = inlined_call_operand.hbm [shape: bf16[128,128], index: 5, kind: input, shape index: {}]   ;;  %s7883_s6 = inlined_call_operand.hbm [shape: f32[1,128], index: 6, kind: input, shape index: {}]   ;;  %s7884_s7 = inlined_call_operand.hbm [shape: bf16[128,256], index: 7, kind: input, shape index: {}]   ;;  %s7885_s8 = inlined_call_operand.hbm [shape: f32[1,256], index: 8, kind: input, shape index: {}]   ;;  %s7886_s9 = inlined_call_operand.hbm [shape: bf16[128,128], index: 9, kind: input, shape index: {}]   ;;  %s7887_s10 = inlined_call_operand.hbm [shape: f32[1,128], index: 10, kind: input, shape index: {}]   ;;  %s7888_s11 = inlined_call_operand.hbm [shape: f32[1,128], index: 11, kind: input, shape index: {}]   ;;  %s7889_s12 = inlined_call_operand.hbm [shape: f32[1,128], index: 12, kind: input, shape index: {}]   ;;  %s7890_s13 = inlined_call_operand.hbm [shape: bf16[128,128], index: 13, kind: input, shape index: {}]   ;;  %s7891_s14 = inlined_call_operand.hbm [shape: f32[1,128], index: 14, kind: input, shape index: {}]   ;;  %s7892_s15 = inlined_call_operand.hbm [shape: bf16[128,256], index: 15, kind: input, shape index: {}]   ;;  %s7893_s16 = inlined_call_operand.hbm [shape: f32[1,256], index: 16, kind: input, shape index: {}]   ;;  %s7894_s17 = inlined_call_operand.vmem [shape: bf16[128,128], index: 17, kind: input, shape index: {}]   ;;  %s7895_s18 = inlined_call_operand.vmem [shape: f32[1,128], index: 18, kind: input, shape index: {}]   ;;  %s7896_s19 = inlined_call_operand.vmem [shape: f32[1,128], index: 19, kind: input, shape index: {}]   ;;  %s7897_s20 = inlined_call_operand.vmem [shape: f32[1,128], index: 20, kind: input, shape index: {}]   ;;  %s7898_s21 = inlined_call_operand.hbm [shape: bf16[128,256], index: 21, kind: input, shape index: {}]   ;;  %s7899_s22 = inlined_call_operand.vmem [shape: f32[1,256], index: 22, kind: input, shape index: {}]   ;;  %s7900_s23 = inlined_call_operand.hbm [shape: bf16[256,128], index: 23, kind: input, shape index: {}]   ;;  %s7901_s24 = inlined_call_operand.vmem [shape: f32[1,128], index: 24, kind: input, shape index: {}]   ;;  %s7902_s25 = inlined_call_operand.vmem [shape: f32[1,128], index: 25, kind: input, shape index: {}]   ;;  %s7903_s26 = inlined_call_operand.vmem [shape: f32[1,128], index: 26, kind: input, shape index: {}]   ;;  %s7904_s27 = inlined_call_operand.hbm [shape: f32[2,8,128], index: 27, kind: output, shape index: {}]  }
   0x1   :  { %7966 = sst [smem:[#allocation57_spill]] %s7877_s0 }
   0x2   :  { %7967 = sst [smem:[#allocation58_spill]] %s7878_s1 }
   0x3   :  { %7968 = sst [smem:[#allocation59_spill]] %s7879_s2 }
   0x4   :  { %7969 = sst [smem:[#allocation60_spill]] %s7880_s3 }
   0x5   :  { %7970 = sst [smem:[#allocation61_spill]] %s7881_s4 }
   0x6   :  { %7971 = sst [smem:[#allocation62_spill]] %s7882_s5 }
   0x7   :  { %7972 = sst [smem:[#allocation63_spill]] %s7883_s6 }
   0x8   :  { %7973 = sst [smem:[#allocation64_spill]] %s7884_s7 }
   0x9   :  { %7974 = sst [smem:[#allocation65_spill]] %s7885_s8 }
   0xa   :  { %7975 = sst [smem:[#allocation66_spill]] %s7886_s9 }
   0xb   :  { %7976 = sst [smem:[#allocation67_spill]] %s7887_s10 }
   0xc   :  { %7977 = sst [smem:[#allocation68_spill]] %s7888_s11 }
   0xd   :  { %7978 = sst [smem:[#allocation69_spill]] %s7890_s13 }
   0xe   :  { %7979 = sst [smem:[#allocation70_spill]] %s7892_s15 }
   0xf   :  { %7980 = sst [smem:[#allocation71_spill]] %s7894_s17 }
  0x10   :  { %7981 = sst [smem:[#allocation72_spill]] %s7895_s18 }
  0x11   :  { %7982 = sst [smem:[#allocation73_spill]] %s7896_s19 }
  0x12   :  { %7983 = sst [smem:[#allocation74_spill]] %s7897_s20 }
  0x13   :  { %7984 = sst [smem:[#allocation75_spill]] %s7898_s21 }
  0x14   :  { %7985 = sst [smem:[#allocation76_spill]] %s7899_s22 }
  0x15   :  { %7986 = sst [smem:[#allocation77_spill]] %s7901_s24 }
  0x16   :  { %7987 = sst [smem:[#allocation78_spill]] %s7902_s25 }
  0x17   :  { %7988 = sst [smem:[#allocation79_spill]] %s7903_s26 }
  0x18   :  { %7989 = sst [smem:[#allocation80_spill]] %s7904_s27 }
  0x19   :  { %32 = vsyncpa [#allocation3], 0 }
  0x1a   :  { %34 = vsyncpa [#allocation3 + $0x1], 0 }
  0x1b   :  { %35 = vsyncpa [#allocation6], 0 }
  0x1c   :  { %37 = vsyncpa [#allocation6 + $0x1], 0 }
  0x1d   :  { %38 = vsyncpa [#allocation9], 0 }
  0x1e   :  { %40 = vsyncpa [#allocation9 + $0x1], 0 }
  0x1f   :  { %41 = vsyncpa [#allocation12], 0 }
  0x20   :  { %42 = vsyncpa [#allocation15], 0 }
  0x21   :  { %43 = vsyncpa [#allocation18], 0 }
  0x22   :  { %44 = vsyncpa [#allocation21], 0 }
  0x23   :  { %45 = vsyncpa [#allocation24], 0 }
  0x24   :  { %46 = vsyncpa [#allocation27], 0 }
  0x25   :  { %47 = vsyncpa [#allocation30], 0 }
  0x26   :  { %48 = vsyncpa [#allocation4], 0 }
  0x27   :  { %50 = vsyncpa [#allocation4 + $0x1], 0  ;;  %s6723_s7 = smov 0   ;;  %s6725_s4 = smov 0  }
  0x28   :  { %s6727_s8 = smov 0   ;;  %s6729_s30 = smov 0  }
  0x29   :  { %s6731_s9 = smov 0   ;;  %s6733_s5 = smov 0  }
  0x2a LB: > { %7990 = sst [smem:[#allocation44_spill]] %s6529_s7  ;;  %s6754_s28 = sadd.s32 4294967295, %s6549_s5   ;;  %s6549_s5 = sphi %s6733_s5, %s56_s5   ;;  %s6545_s9 = sphi %s6731_s9, %s8089_s9   ;;  %s6541_s30 = sphi %s6729_s30, %s8088_s30   ;;  %s6537_s8 = sphi %s6727_s8, %s8086_s8   ;;  %s6533_s4 = sphi %s6725_s4, %s8085_s4   ;;  %s6529_s7 = sphi %s6723_s7, %s8084_s7  }
  0x2b   : > { %7991 = sst [smem:[#allocation45_spill]] %s6533_s4  ;;  %p5024_p0 = scmp.ge.s32.totalorder %s6549_s5, 1 }
  0x2c   : > { %7992 = sst [smem:[#allocation46_spill]] %s6537_s8  ;;  %p7925_p1 = scmp.eq.s32.totalorder %s6754_s28, 0 }
  0x2d   : > { %7993 = sst [smem:[#allocation47_spill]] %s6541_s30  ;;  %p695_p2 = scmp.lt.s32.totalorder %s6549_s5, 3 }
  0x2e   : > { %7994 = sst [smem:[#allocation48_spill]] %s6549_s5  ;;  %s6551_s10 = smov [#allocation11]  }
  0x2f   : > { %7995 = sst [smem:[#allocation49_spill]] %s6754_s28  ;;  %p6759_p3 = pnand %p5024_p0, %p695_p2 }
  0x30   : > { %s707_s29 = sshll.u32 %s6551_s10, 4  ;;  %s6552_s6 = smov [#allocation14]   ;;  %s6763_s29 = int_to_ptr.vmem [resolvable:$true] %s707_s29 }
  0x31   : > { %s7996_s0 = scalar_select %p6759_p3, 1, 0 }
  0x32   : > { %p5563_p4 = pneg %p6759_p3  ;;  %s731_s11 = sshll.u32 %s6552_s6, 4  ;;  %s6774_s11 = int_to_ptr.vmem [resolvable:$true] %s731_s11 }
  0x33   : > { %7997 = sst [smem:[#allocation50_spill]] %s7996_s0  ;;  %s7999_s27 = sld [smem:[#allocation62_spill]] }
  0x34   : > { %p6770_p6 = pnand %p5563_p4, %p7925_p1 }
  0x36   : > { %s7998_s1 = scalar_select %p6770_p6, 1, 0 }
  0x37   : > { %p6784_p8 = pneg %p6770_p6 }
  0x39   : > { %s5889_s26 = scalar_lea.hbm %s7999_s27, 1024 }
  0x3a   : > { %p5890_p7 = scmp.ne.s32.totalorder %s7999_s27, %s5889_s26  ;;  %p5896_p11 = scmp.lt.u32.totalorder %s5889_s26, %s7999_s27 }
  0x3b   : > { %s8000_s30 = scalar_select %p6784_p8, 1, 0 }
  0x3c   : > { %p5892_p9 = pnand %p6784_p8, %p5890_p7 }
  0x3e   : > { %p5893_p10 = pneg %p5892_p9 }
  0x40   : > { %p5898_p12 = pnand %p5896_p11, %p5893_p10 }
  0x42   : > { %5901 = shalt.err (!%p5898_p12)
}
  0x43   : > { %s5902_s25 = scalar_lea.vmem %s6763_s29, 1024  ;;  %p5910_p4 = scmp.lt.s32.totalorder %s6763_s29, %s6763_s29 }
  0x44   : > { %p5903_p13 = scmp.ne.s32.totalorder %s6763_s29, %s5902_s25  ;;  %p5911_p5 = scmp.lt.s32.totalorder %s5902_s25, %s5902_s25 }
  0x46   : > { %p5905_p0 = pnand %p5903_p13, %p6784_p8  ;;  %p5912_p7 = por %p5911_p5, %p5910_p4 }
  0x48   : > { %p5906_p2 = pneg %p5905_p0 }
  0x4a   : > { %p5913_p9 = pnand %p5912_p7, %p5906_p2 }
  0x4c   : > { %5916 = shalt.err (!%p5913_p9)
}
  0x4d   : > { %s7919_s2 = smov 64   ;;  %s7921_s24 = smov 4  }
  0x4e   : > { %5566 = dma.hbm_to_vmem [thread:$0]  (!%p6770_p6), %s7999_s27, 1024, %s6763_s29, [#allocation12], %s7919_s2, %s7919_s2, %s7921_s24  }
  0x4f   : > { %s8001_s22 = sld [smem:[#allocation64_spill]] }
  0x55   : > { %s5917_s25 = scalar_lea.hbm %s8001_s22, 2048 }
  0x56   : > { %p5918_p5 = scmp.ne.s32.totalorder %s8001_s22, %s5917_s25  ;;  %p5924_p12 = scmp.lt.u32.totalorder %s5917_s25, %s8001_s22 }
  0x58   : > { %p5920_p10 = pnand %p5918_p5, %p6784_p8 }
  0x5a   : > { %p5921_p11 = pneg %p5920_p10 }
  0x5c   : > { %p5926_p13 = pnand %p5924_p12, %p5921_p11 }
  0x5e   : > { %5929 = shalt.err (!%p5926_p13)
}
  0x5f   : > { %s5930_s29 = scalar_lea.vmem %s6774_s11, 2048  ;;  %p5938_p7 = scmp.lt.s32.totalorder %s6774_s11, %s6774_s11 }
  0x60   : > { %p5931_p0 = scmp.ne.s32.totalorder %s6774_s11, %s5930_s29  ;;  %p5939_p9 = scmp.lt.s32.totalorder %s5930_s29, %s5930_s29 }
  0x62   : > { %p5933_p2 = pnand %p5931_p0, %p6784_p8  ;;  %p5940_p5 = por %p5939_p9, %p5938_p7 }
  0x64   : > { %p5934_p4 = pneg %p5933_p2 }
  0x66   : > { %p5941_p10 = pnand %p5940_p5, %p5934_p4 }
  0x68   : > { %5944 = shalt.err (!%p5941_p10)
}
  0x69   : > { %s7927_s19 = smov 128   ;;  %s7929_s17 = smov 8  }
  0x6a   : > { %5572 = dma.hbm_to_vmem [thread:$0]  (!%p6770_p6), %s8001_s22, 2048, %s6774_s11, [#allocation15], %s7927_s19, %s7927_s19, %s7929_s17  }
  0x6b   : > { %s6557_s26 = smov [#allocation17]   ;;  %s6558_s10 = smov [#allocation20]  }
  0x6c   : > { %s755_s3 = sshll.u32 %s6557_s26, 4  ;;  %s780_s6 = sshll.u32 %s6558_s10, 4  ;;  %s756_s3 = int_to_ptr.vmem [resolvable:$true] %s755_s3  ;;  %s6834_s6 = int_to_ptr.vmem [resolvable:$true] %s780_s6 }
  0x6d   : > { %s8002_s2 = sld [smem:[#allocation66_spill]] }
  0x73   : > { %s5945_s24 = scalar_lea.hbm %s8002_s2, 1024 }
  0x74   : > { %p5946_p11 = scmp.ne.s32.totalorder %s8002_s2, %s5945_s24  ;;  %p5952_p0 = scmp.lt.u32.totalorder %s5945_s24, %s8002_s2 }
  0x76   : > { %p5948_p12 = pnand %p5946_p11, %p6784_p8 }
  0x78   : > { %p5949_p13 = pneg %p5948_p12 }
  0x7a   : > { %p5954_p2 = pnand %p5952_p0, %p5949_p13 }
  0x7c   : > { %5957 = shalt.err (!%p5954_p2)
}
  0x7d   : > { %s5958_s20 = scalar_lea.vmem %s756_s3, 1024  ;;  %p5966_p5 = scmp.lt.s32.totalorder %s756_s3, %s756_s3 }
  0x7e   : > { %p5959_p4 = scmp.ne.s32.totalorder %s756_s3, %s5958_s20  ;;  %p5967_p10 = scmp.lt.s32.totalorder %s5958_s20, %s5958_s20 }
  0x80   : > { %p5961_p7 = pnand %p5959_p4, %p6784_p8  ;;  %p5968_p1 = por %p5967_p10, %p5966_p5 }
  0x82   : > { %p5962_p9 = pneg %p5961_p7 }
  0x84   : > { %p5969_p3 = pnand %p5968_p1, %p5962_p9 }
  0x86   : > { %5972 = shalt.err (!%p5969_p3)
}
  0x87   : > { %s8003_s27 = smov 4   ;;  %s8004_s0 = smov 64  }
  0x88   : > { %5578 = dma.hbm_to_vmem [thread:$0]  (!%p6770_p6), %s8002_s2, 1024, %s756_s3, [#allocation18], %s8004_s0, %s8004_s0, %s8003_s27  }
  0x89   : > { %s8005_s29 = sld [smem:[#allocation68_spill]] }
  0x8f   : > { %s5973_s18 = scalar_lea.hbm %s8005_s29, 16 }
  0x90   : > { %p5974_p11 = scmp.ne.s32.totalorder %s8005_s29, %s5973_s18  ;;  %p5980_p12 = scmp.lt.u32.totalorder %s5973_s18, %s8005_s29 }
  0x92   : > { %p5976_p1 = pnand %p5974_p11, %p6784_p8 }
  0x94   : > { %p5977_p3 = pneg %p5976_p1 }
  0x96   : > { %p5982_p13 = pnand %p5980_p12, %p5977_p3 }
  0x98   : > { %5985 = shalt.err (!%p5982_p13)
}
  0x99   : > { %s5986_s3 = scalar_lea.vmem %s6834_s6, 16  ;;  %s5993_s19 = scalar_lea.vmem %s6834_s6, 32 }
  0x9a   : > { %p5987_p0 = scmp.ne.s32.totalorder %s6834_s6, %s5986_s3  ;;  %p5994_p7 = scmp.lt.s32.totalorder %s6834_s6, %s6834_s6 }
  0x9b   : > { %p5995_p9 = scmp.lt.s32.totalorder %s5993_s19, %s5986_s3 }
  0x9c   : > { %p5989_p2 = pnand %p5987_p0, %p6784_p8 }
  0x9d   : > { %p5996_p5 = por %p5995_p9, %p5994_p7 }
  0x9e   : > { %p5990_p4 = pneg %p5989_p2 }
  0xa0   : > { %p5997_p10 = pnand %p5996_p5, %p5990_p4 }
  0xa2   : > { %6000 = shalt.err (!%p5997_p10)
}
  0xa3   : > { %5584 = dma.hbm_to_vmem [thread:$0]  (!%p6770_p6), %s8005_s29, 16, %s6834_s6, [#allocation21]  }
  0xa4   : > { %s6559_s24 = smov [#allocation23]   ;;  %s6560_s25 = smov [#allocation26]  }
  0xa5   : > { %s801_s10 = sshll.u32 %s6559_s24, 4  ;;  %s825_s18 = sshll.u32 %s6560_s25, 4  ;;  %s802_s10 = int_to_ptr.vmem [resolvable:$true] %s801_s10  ;;  %s6881_s18 = int_to_ptr.vmem [resolvable:$true] %s825_s18 }
  0xa6   : > { %s8006_s13 = sld [smem:[#allocation69_spill]] }
  0xac   : > { %s6001_s3 = scalar_lea.hbm %s8006_s13, 1024 }
  0xad   : > { %p6002_p11 = scmp.ne.s32.totalorder %s8006_s13, %s6001_s3  ;;  %p6008_p12 = scmp.lt.u32.totalorder %s6001_s3, %s8006_s13 }
  0xaf   : > { %p6004_p1 = pnand %p6002_p11, %p6784_p8 }
  0xb1   : > { %p6005_p3 = pneg %p6004_p1 }
  0xb3   : > { %p6010_p13 = pnand %p6008_p12, %p6005_p3 }
  0xb5   : > { %6013 = shalt.err (!%p6010_p13)
}
  0xb6   : > { %s6014_s26 = scalar_lea.vmem %s802_s10, 1024  ;;  %p6022_p7 = scmp.lt.s32.totalorder %s802_s10, %s802_s10 }
  0xb7   : > { %p6015_p0 = scmp.ne.s32.totalorder %s802_s10, %s6014_s26  ;;  %p6023_p9 = scmp.lt.s32.totalorder %s6014_s26, %s6014_s26 }
  0xb9   : > { %p6017_p2 = pnand %p6015_p0, %p6784_p8  ;;  %p6024_p5 = por %p6023_p9, %p6022_p7 }
  0xbb   : > { %p6018_p4 = pneg %p6017_p2 }
  0xbd   : > { %p6025_p10 = pnand %p6024_p5, %p6018_p4 }
  0xbf   : > { %6028 = shalt.err (!%p6025_p10)
}
  0xc0   : > { %5590 = dma.hbm_to_vmem [thread:$0]  (!%p6770_p6), %s8006_s13, 1024, %s802_s10, [#allocation24], %s8004_s0, %s8004_s0, %s8003_s27  }
  0xc1   : > { %s8007_s15 = sld [smem:[#allocation70_spill]] }
  0xc7   : > { %s6029_s20 = scalar_lea.hbm %s8007_s15, 2048 }
  0xc8   : > { %p6030_p11 = scmp.ne.s32.totalorder %s8007_s15, %s6029_s20  ;;  %p6036_p12 = scmp.lt.u32.totalorder %s6029_s20, %s8007_s15 }
  0xca   : > { %p6032_p1 = pnand %p6030_p11, %p6784_p8 }
  0xcc   : > { %p6033_p3 = pneg %p6032_p1 }
  0xce   : > { %p6038_p13 = pnand %p6036_p12, %p6033_p3 }
  0xd0   : > { %6041 = shalt.err (!%p6038_p13)
}
  0xd1   : > { %s6042_s10 = scalar_lea.vmem %s6881_s18, 2048  ;;  %p6050_p7 = scmp.lt.s32.totalorder %s6881_s18, %s6881_s18 }
  0xd2   : > { %p6043_p0 = scmp.ne.s32.totalorder %s6881_s18, %s6042_s10  ;;  %p6051_p9 = scmp.lt.s32.totalorder %s6042_s10, %s6042_s10 }
  0xd4   : > { %p6045_p2 = pnand %p6043_p0, %p6784_p8  ;;  %p6052_p5 = por %p6051_p9, %p6050_p7 }
  0xd6   : > { %p6046_p4 = pneg %p6045_p2 }
  0xd8   : > { %p6053_p10 = pnand %p6052_p5, %p6046_p4 }
  0xda   : > { %6056 = shalt.err (!%p6053_p10)
}
  0xdb   : > { %s8008_s26 = smov 8   ;;  %s8009_s2 = smov 128  }
  0xdc   : > { %5596 = dma.hbm_to_vmem [thread:$0]  (!%p6770_p6), %s8007_s15, 2048, %s6881_s18, [#allocation27], %s8009_s2, %s8009_s2, %s8008_s26  }
  0xdd   : > { %s6561_s11 = smov [#allocation29]   ;;  %s8010_s21 = sld [smem:[#allocation75_spill]] }
  0xde   : > { %s861_s20 = sshll.u32 %s6561_s11, 4  ;;  %s862_s20 = int_to_ptr.vmem [resolvable:$true] %s861_s20 }
  0xe3   : > { %s6057_s17 = scalar_lea.hbm %s8010_s21, 2048 }
  0xe4   : > { %p6058_p11 = scmp.ne.s32.totalorder %s8010_s21, %s6057_s17  ;;  %p6064_p12 = scmp.lt.u32.totalorder %s6057_s17, %s8010_s21 }
  0xe6   : > { %p6060_p1 = pnand %p6058_p11, %p6784_p8 }
  0xe8   : > { %p6061_p3 = pneg %p6060_p1 }
  0xea   : > { %p6066_p13 = pnand %p6064_p12, %p6061_p3 }
  0xec   : > { %6069 = shalt.err (!%p6066_p13)
}
  0xed   : > { %s6070_s18 = scalar_lea.vmem %s862_s20, 2048  ;;  %p6078_p7 = scmp.lt.s32.totalorder %s862_s20, %s862_s20 }
  0xee   : > { %p6071_p0 = scmp.ne.s32.totalorder %s862_s20, %s6070_s18  ;;  %p6079_p9 = scmp.lt.s32.totalorder %s6070_s18, %s6070_s18 }
  0xf0   : > { %p6073_p2 = pnand %p6071_p0, %p6784_p8  ;;  %p6080_p5 = por %p6079_p9, %p6078_p7 }
  0xf2   : > { %p6074_p4 = pneg %p6073_p2 }
  0xf4   : > { %p6081_p10 = pnand %p6080_p5, %p6074_p4 }
  0xf6   : > { %6084 = shalt.err (!%p6081_p10)
}
  0xf7   : > { %5602 = dma.hbm_to_vmem [thread:$0]  (!%p6770_p6), %s8010_s21, 2048, %s862_s20, [#allocation30], %s8009_s2, %s8009_s2, %s8008_s26  }
  0xf8   : > { %s5023_s24 = sadd.s32 4294967294, %s6549_s5   ;;  %s68_s25 = sadd.s32 1, %s6545_s9 }
  0xf9   : > { %s75_s11 = sadd.s32 1, %s6537_s8  ;;  %p70_p11 = scmp.ge.s32.totalorder %s68_s25, 2 }
  0xfa   : > { %p82_p1 = scmp.ne.s32.totalorder %s6537_s8, %s6533_s4  ;;  %p83_p3 = scmp.eq.s32.totalorder %s6549_s5, 0 }
  0xfb   : > { %p88_p12 = scmp.ne.s32.totalorder %s6533_s4, %s6529_s7  ;;  %s8091_s25 = smov (%p70_p11, %s68_s25), 0 }
  0xfc   : > { %8011 = sst [smem:[#allocation51_spill]] %s8091_s25  ;;  %p84_p13 = por %p83_p3, %p82_p1 }
  0xfd   : > { %p8012_p0 = scmp.eq.s32.totalorder %s6754_s28, 0  ;;  %s72_s20 = ssub.s32 %s6545_s9, %s8091_s25 }
  0xfe   : > { %p682_p4 = scmp.eq.s32.totalorder %s6754_s28, 1  ;;  %p73_p7 = scmp.eq.s32.totalorder %s72_s20, 0 }
  0xff   : > { %p6963_p2 = por %p8012_p0, %p88_p12  ;;  %p688_p9 = scmp.eq.s32.totalorder %s5023_s24, 1 }
 0x100   : > { %p6970_p5 = por %p682_p4, %p82_p1  ;;  %p5640_p10 = scmp.lt.s32.totalorder %s6549_s5, 2 }
 0x101   : > { %s8013_s3 = scalar_select %p6963_p2, 1, 0 }
 0x102   : > { %s8015_s19 = scalar_select %p6970_p5, 1, 0 }
 0x103   : > { %8014 = sst [smem:[#allocation52_spill]] %s8013_s3  ;;  %p6978_p11 = por %p688_p9, %p88_p12 }
 0x104   : > { %8016 = sst [smem:[#allocation53_spill]] %s8015_s19  ;;  %s6983_s10 = sand.u32 1, %s6537_s8  }
 0x105   : > { %s6976_s17 = scalar_select %p73_p7, %s6537_s8, %s75_s11  }
 0x106   : > { %s8018_s6 = scalar_select %p6978_p11, 1, 0 }
 0x107   : > { %8017 = sst [smem:[#allocation54_spill]] %s6976_s17  ;;  %p6985_p3 = pnand %p5640_p10, %p84_p13 }
 0x108   : > { %8019 = sst [smem:[#allocation55_spill]] %s8018_s6  ;;  %s7940_s13 = sand.u32 1, %s6549_s5  }
 0x109   : > { %s8020_s18 = scalar_select %p6985_p3, 1, 0 }
 0x10a   : > { %s7936_s22 = sshll.u32 %s6983_s10, 4  ;;  %s7937_s24 = sshll.u32 %s6545_s9, 8 }
 0x10b   : > { %s922_s20 = scalar_lea.vmem [#allocation5], %s7936_s22  ;;  %s8021_s29 = sld [smem:[#allocation58_spill]] }
 0x10c   : > { %s929_s11 = sshll.u32 %s922_s20, 4  ;;  %s7005_s17 = scalar_lea.sflag [#allocation6], %s7940_s13  ;;  %s7001_s11 = int_to_ptr.vmem [resolvable:$true] %s929_s11 }
 0x10d   : > { %p7011_p12 = pneg %p6985_p3 }
 0x10f   : > { %s8022_s20 = scalar_select %p7011_p12, 1, 0 }
 0x111   : > { %s6999_s25 = scalar_lea.hbm %s8021_s29, %s7937_s24  ;;  %s6090_s22 = scalar_lea.hbm %s8021_s29, 512 }
 0x112   : > { %s6085_s8 = scalar_lea.hbm %s6999_s25, 256  ;;  %p6091_p4 = scmp.lt.u32.totalorder %s6999_s25, %s8021_s29 }
 0x113   : > { %p6086_p1 = scmp.ne.s32.totalorder %s6999_s25, %s6085_s8  ;;  %p6092_p7 = scmp.lt.u32.totalorder %s6090_s22, %s6085_s8 }
 0x114   : > { %p6094_p10 = scmp.lt.u32.totalorder %s6085_s8, %s6999_s25 }
 0x115   : > { %p6088_p13 = pnand %p7011_p12, %p6086_p1  ;;  %p6093_p9 = por %p6092_p7, %p6091_p4 }
 0x117   : > { %p6089_p0 = pneg %p6088_p13  ;;  %p6095_p11 = por %p6094_p10, %p6093_p9 }
 0x119   : > { %p6096_p5 = pnand %p6095_p11, %p6089_p0 }
 0x11b   : > { %6099 = shalt.err (!%p6096_p5)
}
 0x11c   : > { %s6100_s13 = scalar_lea.vmem %s7001_s11, 256  ;;  %s6562_s15 = smov [#allocation5]  }
 0x11d   : > { %p6101_p1 = scmp.ne.s32.totalorder %s7001_s11, %s6100_s13  ;;  %s6105_s21 = sshll.u32 %s6562_s15, 4  ;;  %s6106_s21 = int_to_ptr.vmem [resolvable:$false] %s6105_s21 }
 0x11e   : > { %s6107_s6 = scalar_lea.vmem %s6106_s21, 512  ;;  %p6108_p6 = scmp.lt.s32.totalorder %s7001_s11, %s6106_s21 }
 0x11f   : > { %p6103_p13 = pnand %p6101_p1, %p7011_p12  ;;  %p6109_p8 = scmp.lt.s32.totalorder %s6107_s6, %s6100_s13 }
 0x121   : > { %p6104_p2 = pneg %p6103_p13  ;;  %p6110_p4 = por %p6109_p8, %p6108_p6 }
 0x123   : > { %p6111_p7 = pnand %p6110_p4, %p6104_p2 }
 0x125   : > { %6114 = shalt.err (!%p6111_p7)
}
 0x126   : > { %5612 = dma.hbm_to_vmem [thread:$0]  (!%p6985_p3), %s6999_s25, 256, %s7001_s11, %s7005_s17, %s8009_s2, %s8009_s2, %s8008_s26  }
 0x127   : > { %s8023_s8 = sshll.u32 %s6545_s9, 8  ;;  %s8024_s24 = sld [smem:[#allocation61_spill]] }
 0x128   : > { %s5045_s21 = sshll.u32 %s6545_s9, 4  ;;  %s8025_s6 = sshll.u32 %s6983_s10, 4 }
 0x129   : > { %s7048_s29 = scalar_lea.vmem [#allocation10], %s8025_s6  ;;  %s8026_s3 = sld [smem:[#allocation59_spill]] }
 0x12a   : > { %s8027_s26 = sld [smem:[#allocation60_spill]]  ;;  %s959_s25 = scalar_lea.vmem [#allocation8], %s6983_s10 }
 0x12b   : > { %s966_s11 = sshll.u32 %s959_s25, 4  ;;  %s967_s11 = int_to_ptr.vmem [resolvable:$true] %s966_s11 }
 0x12d   : > { %s7043_s15 = scalar_lea.hbm %s8024_s24, %s8023_s8  ;;  %s8028_s8 = sand.u32 1, %s6549_s5  }
 0x12e   : > { %s7064_s13 = scalar_lea.sflag [#allocation9], %s8028_s8 }
 0x12f   : > { %s7054_s4 = scalar_lea.hbm %s8026_s3, %s5045_s21  ;;  %8029 = sst [smem:[#allocation56_spill]] %s7064_s13 }
 0x130   : > { %s7059_s2 = scalar_lea.hbm %s8027_s26, %s5045_s21  ;;  %s6120_s27 = scalar_lea.hbm %s8027_s26, 32 }
 0x131   : > { %s6115_s22 = scalar_lea.hbm %s7059_s2, 16  ;;  %p6121_p5 = scmp.lt.u32.totalorder %s7059_s2, %s8027_s26 }
 0x132   : > { %p6116_p6 = scmp.ne.s32.totalorder %s7059_s2, %s6115_s22  ;;  %p6122_p11 = scmp.lt.u32.totalorder %s6120_s27, %s6115_s22 }
 0x133   : > { %p6124_p9 = scmp.lt.u32.totalorder %s6115_s22, %s7059_s2 }
 0x134   : > { %p6118_p8 = pnand %p6116_p6, %p7011_p12  ;;  %p6123_p0 = por %p6122_p11, %p6121_p5 }
 0x136   : > { %p6119_p2 = pneg %p6118_p8  ;;  %p6125_p10 = por %p6124_p9, %p6123_p0 }
 0x138   : > { %p6126_p1 = pnand %p6125_p10, %p6119_p2 }
 0x13a   : > { %6129 = shalt.err (!%p6126_p1)
}
 0x13b   : > { %s6130_s6 = scalar_lea.vmem %s967_s11, 16  ;;  %s6563_s25 = smov [#allocation8]  }
 0x13c   : > { %p6131_p13 = scmp.ne.s32.totalorder %s967_s11, %s6130_s6  ;;  %s6135_s8 = sshll.u32 %s6563_s25, 4  ;;  %s6136_s8 = int_to_ptr.vmem [resolvable:$false] %s6135_s8 }
 0x13d   : > { %s6137_s28 = scalar_lea.vmem %s6136_s8, 32  ;;  %p6138_p6 = scmp.lt.s32.totalorder %s967_s11, %s6136_s8 }
 0x13e   : > { %p6133_p4 = pnand %p6131_p13, %p7011_p12  ;;  %p6139_p8 = scmp.lt.s32.totalorder %s6137_s28, %s6130_s6 }
 0x140   : > { %p6134_p7 = pneg %p6133_p4  ;;  %p6140_p3 = por %p6139_p8, %p6138_p6 }
 0x142   : > { %p6141_p5 = pnand %p6140_p3, %p6134_p7 }
 0x144   : > { %6144 = shalt.err (!%p6141_p5)
}
 0x145   : > { %p8030_p11 = scmp.ne.s32.totalorder %s8020_s18, 0  ;;  %s6564_s22 = smov [#allocation13]  }
 0x146   : > { %s721_s19 = sshll.u32 %s6564_s22, 4  ;;  %s6565_s27 = smov [#allocation16]   ;;  %s722_s19 = int_to_ptr.vmem [resolvable:$true] %s721_s19 }
 0x147   : > { %5618 = dma.hbm_to_vmem [thread:$0]  (!%p8030_p11), %s7059_s2, 16, %s967_s11, %s7064_s13  }
 0x148   : > { %s745_s0 = sshll.u32 %s6565_s27, 4  ;;  %s8031_s7 = sld [smem:[#allocation63_spill]]  ;;  %s746_s0 = int_to_ptr.vmem [resolvable:$true] %s745_s0 }
 0x149   : > { %p8033_p2 = scmp.ne.s32.totalorder %s8000_s30, 0 }
 0x14e   : > { %s8032_s26 = smov %s8031_s7  ;;  %s6145_s5 = scalar_lea.hbm %s8031_s7, 16 }
 0x14f   : > { %p6146_p3 = scmp.ne.s32.totalorder %s8032_s26, %s6145_s5  ;;  %p6152_p10 = scmp.lt.u32.totalorder %s6145_s5, %s8032_s26 }
 0x151   : > { %p6148_p0 = pnand %p6146_p3, %p8033_p2 }
 0x153   : > { %p6149_p9 = pneg %p6148_p0 }
 0x155   : > { %p6154_p1 = pnand %p6152_p10, %p6149_p9 }
 0x157   : > { %6157 = shalt.err (!%p6154_p1)
}
 0x158   : > { %s6158_s2 = scalar_lea.vmem %s722_s19, 16  ;;  %s6165_s7 = scalar_lea.vmem %s722_s19, 32 }
 0x159   : > { %p6159_p13 = scmp.ne.s32.totalorder %s722_s19, %s6158_s2  ;;  %p6166_p6 = scmp.lt.s32.totalorder %s722_s19, %s722_s19 }
 0x15a   : > { %p6167_p8 = scmp.lt.s32.totalorder %s6165_s7, %s6158_s2 }
 0x15b   : > { %p6161_p4 = pnand %p6159_p13, %p8033_p2 }
 0x15c   : > { %p6168_p5 = por %p6167_p8, %p6166_p6 }
 0x15d   : > { %p6162_p7 = pneg %p6161_p4 }
 0x15f   : > { %p6169_p11 = pnand %p6168_p5, %p6162_p7 }
 0x161   : > { %6172 = shalt.err (!%p6169_p11)
}
 0x162   : > { %p8034_p3 = scmp.ne.s32.totalorder %s7998_s1, 0  ;;  %s8035_s27 = sld [smem:[#allocation65_spill]] }
 0x164   : > { %5569 = dma.hbm_to_vmem [thread:$0]  (!%p8034_p3), %s8032_s26, 16, %s722_s19, [#allocation12]  }
 0x168   : > { %s6173_s21 = scalar_lea.hbm %s8035_s27, 32 }
 0x169   : > { %p6174_p0 = scmp.ne.s32.totalorder %s8035_s27, %s6173_s21  ;;  %p6180_p11 = scmp.lt.u32.totalorder %s6173_s21, %s8035_s27 }
 0x16b   : > { %p6176_p9 = pnand %p6174_p0, %p8033_p2 }
 0x16d   : > { %p6177_p10 = pneg %p6176_p9 }
 0x16f   : > { %p6182_p1 = pnand %p6180_p11, %p6177_p10 }
 0x171   : > { %6185 = shalt.err (!%p6182_p1)
}
 0x172   : > { %s6186_s2 = scalar_lea.vmem %s746_s0, 32  ;;  %p6194_p6 = scmp.lt.s32.totalorder %s746_s0, %s746_s0 }
 0x173   : > { %p6187_p13 = scmp.ne.s32.totalorder %s746_s0, %s6186_s2  ;;  %p6195_p8 = scmp.lt.s32.totalorder %s6186_s2, %s6186_s2 }
 0x175   : > { %p6189_p4 = pnand %p6187_p13, %p8033_p2  ;;  %p6196_p5 = por %p6195_p8, %p6194_p6 }
 0x177   : > { %p6190_p7 = pneg %p6189_p4 }
 0x179   : > { %p6197_p12 = pnand %p6196_p5, %p6190_p7 }
 0x17b   : > { %6200 = shalt.err (!%p6197_p12)
}
 0x17c   : > { %5575 = dma.hbm_to_vmem [thread:$0]  (!%p8034_p3), %s8035_s27, 32, %s746_s0, [#allocation15]  }
 0x17d   : > { %s6566_s11 = smov [#allocation19]   ;;  %s6567_s5 = smov [#allocation22]  }
 0x17e   : > { %s769_s22 = sshll.u32 %s6566_s11, 4  ;;  %s791_s24 = sshll.u32 %s6567_s5, 4  ;;  %s770_s22 = int_to_ptr.vmem [resolvable:$true] %s769_s22  ;;  %s792_s24 = int_to_ptr.vmem [resolvable:$true] %s791_s24 }
 0x17f   : > { %s8036_s8 = sld [smem:[#allocation67_spill]] }
 0x185   : > { %s8037_s6 = smov %s8036_s8  ;;  %s6201_s28 = scalar_lea.hbm %s8036_s8, 16 }
 0x186   : > { %p6202_p12 = scmp.ne.s32.totalorder %s8037_s6, %s6201_s28  ;;  %p6208_p10 = scmp.lt.u32.totalorder %s6201_s28, %s8037_s6 }
 0x188   : > { %p6204_p0 = pnand %p6202_p12, %p8033_p2 }
 0x18a   : > { %p6205_p9 = pneg %p6204_p0 }
 0x18c   : > { %p6210_p11 = pnand %p6208_p10, %p6205_p9 }
 0x18e   : > { %6213 = shalt.err (!%p6210_p11)
}
 0x18f   : > { %s6214_s0 = scalar_lea.vmem %s770_s22, 16  ;;  %s6221_s7 = scalar_lea.vmem %s770_s22, 32 }
 0x190   : > { %p6215_p1 = scmp.ne.s32.totalorder %s770_s22, %s6214_s0  ;;  %p6222_p7 = scmp.lt.s32.totalorder %s770_s22, %s770_s22 }
 0x191   : > { %p6223_p6 = scmp.lt.s32.totalorder %s6221_s7, %s6214_s0 }
 0x192   : > { %p6217_p13 = pnand %p6215_p1, %p8033_p2 }
 0x193   : > { %p6224_p8 = por %p6223_p6, %p6222_p7 }
 0x194   : > { %p6218_p4 = pneg %p6217_p13 }
 0x196   : > { %p6225_p5 = pnand %p6224_p8, %p6218_p4 }
 0x198   : > { %6228 = shalt.err (!%p6225_p5)
}
 0x199   : > { %5581 = dma.hbm_to_vmem [thread:$0]  (!%p8034_p3), %s8037_s6, 16, %s770_s22, [#allocation18]  }
 0x19a   : > { %s6229_s21 = scalar_lea.hbm %s7889_s12, 16 }
 0x19b   : > { %p6230_p12 = scmp.ne.s32.totalorder %s7889_s12, %s6229_s21  ;;  %p6236_p10 = scmp.lt.u32.totalorder %s6229_s21, %s7889_s12 }
 0x19d   : > { %p6232_p0 = pnand %p6230_p12, %p8033_p2 }
 0x19f   : > { %p6233_p9 = pneg %p6232_p0 }
 0x1a1   : > { %p6238_p11 = pnand %p6236_p10, %p6233_p9 }
 0x1a3   : > { %6241 = shalt.err (!%p6238_p11)
}
 0x1a4   : > { %s6242_s19 = scalar_lea.vmem %s792_s24, 16  ;;  %s6249_s22 = scalar_lea.vmem %s792_s24, 32 }
 0x1a5   : > { %p6243_p1 = scmp.ne.s32.totalorder %s792_s24, %s6242_s19  ;;  %p6250_p7 = scmp.lt.s32.totalorder %s792_s24, %s792_s24 }
 0x1a6   : > { %p6251_p6 = scmp.lt.s32.totalorder %s6249_s22, %s6242_s19 }
 0x1a7   : > { %p6245_p13 = pnand %p6243_p1, %p8033_p2 }
 0x1a8   : > { %p6252_p8 = por %p6251_p6, %p6250_p7 }
 0x1a9   : > { %p6246_p4 = pneg %p6245_p13 }
 0x1ab   : > { %p6253_p5 = pnand %p6252_p8, %p6246_p4 }
 0x1ad   : > { %6256 = shalt.err (!%p6253_p5)
}
 0x1ae   : > { %5587 = dma.hbm_to_vmem [thread:$0]  (!%p8034_p3), %s7889_s12, 16, %s792_s24, [#allocation21]  }
 0x1af   : > { %s6568_s26 = smov [#allocation25]   ;;  %s6569_s13 = smov [#allocation28]  }
 0x1b0   : > { %s815_s11 = sshll.u32 %s6568_s26, 4  ;;  %s839_s5 = sshll.u32 %s6569_s13, 4  ;;  %s816_s11 = int_to_ptr.vmem [resolvable:$true] %s815_s11  ;;  %s840_s5 = int_to_ptr.vmem [resolvable:$true] %s839_s5 }
 0x1b1   : > { %s6257_s8 = scalar_lea.hbm %s7891_s14, 16 }
 0x1b2   : > { %p6258_p12 = scmp.ne.s32.totalorder %s7891_s14, %s6257_s8  ;;  %p6264_p10 = scmp.lt.u32.totalorder %s6257_s8, %s7891_s14 }
 0x1b4   : > { %p6260_p0 = pnand %p6258_p12, %p8033_p2 }
 0x1b6   : > { %p6261_p9 = pneg %p6260_p0 }
 0x1b8   : > { %p6266_p11 = pnand %p6264_p10, %p6261_p9 }
 0x1ba   : > { %6269 = shalt.err (!%p6266_p11)
}
 0x1bb   : > { %s6270_s24 = scalar_lea.vmem %s816_s11, 16  ;;  %s6277_s0 = scalar_lea.vmem %s816_s11, 32 }
 0x1bc   : > { %p6271_p1 = scmp.ne.s32.totalorder %s816_s11, %s6270_s24  ;;  %p6278_p7 = scmp.lt.s32.totalorder %s816_s11, %s816_s11 }
 0x1bd   : > { %p6279_p6 = scmp.lt.s32.totalorder %s6277_s0, %s6270_s24 }
 0x1be   : > { %p6273_p13 = pnand %p6271_p1, %p8033_p2 }
 0x1bf   : > { %p6280_p8 = por %p6279_p6, %p6278_p7 }
 0x1c0   : > { %p6274_p4 = pneg %p6273_p13 }
 0x1c2   : > { %p6281_p5 = pnand %p6280_p8, %p6274_p4 }
 0x1c4   : > { %6284 = shalt.err (!%p6281_p5)
}
 0x1c5   : > { %5593 = dma.hbm_to_vmem [thread:$0]  (!%p8034_p3), %s7891_s14, 16, %s816_s11, [#allocation24]  }
 0x1c6   : > { %s6285_s25 = scalar_lea.hbm %s7893_s16, 32 }
 0x1c7   : > { %p6286_p12 = scmp.ne.s32.totalorder %s7893_s16, %s6285_s25  ;;  %p6292_p10 = scmp.lt.u32.totalorder %s6285_s25, %s7893_s16 }
 0x1c9   : > { %p6288_p0 = pnand %p6286_p12, %p8033_p2 }
 0x1cb   : > { %p6289_p9 = pneg %p6288_p0 }
 0x1cd   : > { %p6294_p11 = pnand %p6292_p10, %p6289_p9 }
 0x1cf   : > { %6297 = shalt.err (!%p6294_p11)
}
 0x1d0   : > { %s6298_s22 = scalar_lea.vmem %s840_s5, 32  ;;  %p6306_p7 = scmp.lt.s32.totalorder %s840_s5, %s840_s5 }
 0x1d1   : > { %p6299_p1 = scmp.ne.s32.totalorder %s840_s5, %s6298_s22  ;;  %p6307_p6 = scmp.lt.s32.totalorder %s6298_s22, %s6298_s22 }
 0x1d3   : > { %p6301_p13 = pnand %p6299_p1, %p8033_p2  ;;  %p6308_p8 = por %p6307_p6, %p6306_p7 }
 0x1d5   : > { %p6302_p4 = pneg %p6301_p13 }
 0x1d7   : > { %p6309_p5 = pnand %p6308_p8, %p6302_p4 }
 0x1d9   : > { %6312 = shalt.err (!%p6309_p5)
}
 0x1da   : > { %5599 = dma.hbm_to_vmem [thread:$0]  (!%p8034_p3), %s7893_s16, 32, %s840_s5, [#allocation27]  }
 0x1db   : > { %s6570_s0 = smov [#allocation31]   ;;  %s5040_s26 = sshll.u32 %s6983_s10, 3 }
 0x1dc   : > { %s877_s7 = sshll.u32 %s6570_s0, 4  ;;  %s6313_s25 = scalar_lea.hbm %s7900_s23, 2048  ;;  %s878_s7 = int_to_ptr.vmem [resolvable:$true] %s877_s7 }
 0x1dd   : > { %p6314_p12 = scmp.ne.s32.totalorder %s7900_s23, %s6313_s25  ;;  %p6320_p10 = scmp.lt.u32.totalorder %s6313_s25, %s7900_s23 }
 0x1df   : > { %p6316_p0 = pnand %p6314_p12, %p8033_p2 }
 0x1e1   : > { %p6317_p9 = pneg %p6316_p0 }
 0x1e3   : > { %p6322_p11 = pnand %p6320_p10, %p6317_p9 }
 0x1e5   : > { %6325 = shalt.err (!%p6322_p11)
}
 0x1e6   : > { %s6326_s5 = scalar_lea.vmem %s878_s7, 2048  ;;  %p6334_p7 = scmp.lt.s32.totalorder %s878_s7, %s878_s7 }
 0x1e7   : > { %p6327_p1 = scmp.ne.s32.totalorder %s878_s7, %s6326_s5  ;;  %p6335_p6 = scmp.lt.s32.totalorder %s6326_s5, %s6326_s5 }
 0x1e9   : > { %p6329_p13 = pnand %p6327_p1, %p8033_p2  ;;  %p6336_p8 = por %p6335_p6, %p6334_p7 }
 0x1eb   : > { %p6330_p4 = pneg %p6329_p13 }
 0x1ed   : > { %p6337_p5 = pnand %p6336_p8, %p6330_p4 }
 0x1ef   : > { %6340 = shalt.err (!%p6337_p5)
}
 0x1f0   : > { %s8038_s22 = smov 4   ;;  %s8039_s11 = smov 64  }
 0x1f1   : > { %5605 = dma.hbm_to_vmem [thread:$0]  (!%p8034_p3), %s7900_s23, 2048, %s878_s7, [#allocation30], %s8039_s11, %s8039_s11, %s8038_s22  }
 0x1f2   : > { %s5041_s30 = sshll.u32 %s6545_s9, 7  ;;  %s8040_s25 = sld [smem:[#allocation57_spill]] }
 0x1f3   : > { %s904_s1 = scalar_lea.vmem [#allocation2], %s5040_s26  ;;  %s901_s2 = scalar_lea.sflag [#allocation3], %s6983_s10 }
 0x1f4   : > { %s911_s28 = sshll.u32 %s904_s1, 4  ;;  %p8041_p12 = scmp.ne.s32.totalorder %s8022_s20, 0  ;;  %s912_s28 = int_to_ptr.vmem [resolvable:$true] %s911_s28 }
 0x1f8   : > { %s7218_s8 = scalar_lea.hbm %s8040_s25, %s5041_s30  ;;  %s6346_s24 = scalar_lea.hbm %s8040_s25, 256 }
 0x1f9   : > { %s6341_s19 = scalar_lea.hbm %s7218_s8, 128  ;;  %p6347_p3 = scmp.lt.u32.totalorder %s7218_s8, %s8040_s25 }
 0x1fa   : > { %p6342_p2 = scmp.ne.s32.totalorder %s7218_s8, %s6341_s19  ;;  %p6348_p10 = scmp.lt.u32.totalorder %s6346_s24, %s6341_s19 }
 0x1fb   : > { %p6350_p1 = scmp.lt.u32.totalorder %s6341_s19, %s7218_s8 }
 0x1fc   : > { %p6344_p0 = pnand %p6342_p2, %p8041_p12  ;;  %p6349_p11 = por %p6348_p10, %p6347_p3 }
 0x1fe   : > { %p6345_p9 = pneg %p6344_p0  ;;  %p6351_p13 = por %p6350_p1, %p6349_p11 }
 0x200   : > { %p6352_p4 = pnand %p6351_p13, %p6345_p9 }
 0x202   : > { %6355 = shalt.err (!%p6352_p4)
}
 0x203   : > { %s6356_s26 = scalar_lea.vmem %s912_s28, 128  ;;  %s6571_s13 = smov [#allocation2]  }
 0x204   : > { %p6357_p7 = scmp.ne.s32.totalorder %s912_s28, %s6356_s26  ;;  %s6361_s21 = sshll.u32 %s6571_s13, 4  ;;  %s6362_s21 = int_to_ptr.vmem [resolvable:$false] %s6361_s21 }
 0x205   : > { %s6363_s1 = scalar_lea.vmem %s6362_s21, 256  ;;  %p6364_p5 = scmp.lt.s32.totalorder %s912_s28, %s6362_s21 }
 0x206   : > { %p6359_p6 = pnand %p6357_p7, %p8041_p12  ;;  %p6365_p2 = scmp.lt.s32.totalorder %s6363_s1, %s6356_s26 }
 0x208   : > { %p6360_p8 = pneg %p6359_p6  ;;  %p6366_p0 = por %p6365_p2, %p6364_p5 }
 0x20a   : > { %p6367_p3 = pnand %p6366_p0, %p6360_p8 }
 0x20c   : > { %6370 = shalt.err (!%p6367_p3)
}
 0x20d   : > { %p8042_p10 = scmp.ne.s32.totalorder %s8020_s18, 0  ;;  %s8043_s19 = sshll.u32 %s7048_s29, 4  ;;  %s7240_s19 = int_to_ptr.vmem [resolvable:$true] %s8043_s19 }
 0x20e   : > { %s942_s7 = scalar_lea.vmem [#allocation7], %s6983_s10  ;;  %s6371_s24 = scalar_lea.hbm %s7054_s4, 16 }
 0x20f   : > { %5609 = dma.hbm_to_vmem [thread:$0]  (!%p8042_p10), %s7218_s8, 128, %s912_s28, %s901_s2  }
 0x210   : > { %s949_s5 = sshll.u32 %s942_s7, 4  ;;  %p6372_p9 = scmp.ne.s32.totalorder %s7054_s4, %s6371_s24  ;;  %s950_s5 = int_to_ptr.vmem [resolvable:$true] %s949_s5 }
 0x211   : > { %s6376_s26 = scalar_lea.hbm %s8026_s3, 32  ;;  %p6377_p13 = scmp.lt.u32.totalorder %s7054_s4, %s8026_s3 }
 0x212   : > { %p6374_p11 = pnand %p6372_p9, %p8041_p12  ;;  %p6378_p4 = scmp.lt.u32.totalorder %s6376_s26, %s6371_s24 }
 0x213   : > { %p6380_p6 = scmp.lt.u32.totalorder %s6371_s24, %s7054_s4 }
 0x214   : > { %p6375_p1 = pneg %p6374_p11  ;;  %p6379_p7 = por %p6378_p4, %p6377_p13 }
 0x216   : > { %p6381_p8 = por %p6380_p6, %p6379_p7 }
 0x218   : > { %p6382_p5 = pnand %p6381_p8, %p6375_p1 }
 0x21a   : > { %6385 = shalt.err (!%p6382_p5)
}
 0x21b   : > { %s6386_s29 = scalar_lea.vmem %s950_s5, 16  ;;  %s6572_s10 = smov [#allocation7]  }
 0x21c   : > { %p6387_p2 = scmp.ne.s32.totalorder %s950_s5, %s6386_s29  ;;  %s6391_s8 = sshll.u32 %s6572_s10, 4  ;;  %s6392_s8 = int_to_ptr.vmem [resolvable:$false] %s6391_s8 }
 0x21d   : > { %s6393_s28 = scalar_lea.vmem %s6392_s8, 32  ;;  %p6394_p9 = scmp.lt.s32.totalorder %s950_s5, %s6392_s8 }
 0x21e   : > { %p6389_p0 = pnand %p6387_p2, %p8041_p12  ;;  %p6395_p11 = scmp.lt.s32.totalorder %s6393_s28, %s6386_s29 }
 0x220   : > { %p6390_p3 = pneg %p6389_p0  ;;  %p6396_p10 = por %p6395_p11, %p6394_p9 }
 0x222   : > { %p6397_p4 = pnand %p6396_p10, %p6390_p3 }
 0x224   : > { %6400 = shalt.err (!%p6397_p4)
}
 0x225   : > { %p8044_p13 = scmp.ne.s32.totalorder %s8020_s18, 0  ;;  %s6401_s2 = scalar_lea.hbm %s7043_s15, 256 }
 0x226   : > { %p6402_p1 = scmp.ne.s32.totalorder %s7043_s15, %s6401_s2  ;;  %s8045_s24 = sld [smem:[#allocation61_spill]] }
 0x227   : > { %5615 = dma.hbm_to_vmem [thread:$0]  (!%p8044_p13), %s7054_s4, 16, %s950_s5, %s7005_s17  }
 0x228   : > { %p6404_p7 = pnand %p6402_p1, %p8041_p12  ;;  %p6410_p2 = scmp.lt.u32.totalorder %s6401_s2, %s7043_s15 }
 0x22a   : > { %p6405_p6 = pneg %p6404_p7 }
 0x22c   : > { %s6406_s0 = scalar_lea.hbm %s8045_s24, 512  ;;  %p6407_p10 = scmp.lt.u32.totalorder %s7043_s15, %s8045_s24 }
 0x22d   : > { %p6408_p8 = scmp.lt.u32.totalorder %s6406_s0, %s6401_s2 }
 0x22f   : > { %p6409_p5 = por %p6408_p8, %p6407_p10 }
 0x231   : > { %p6411_p0 = por %p6410_p2, %p6409_p5 }
 0x233   : > { %p6412_p3 = pnand %p6411_p0, %p6405_p6 }
 0x235   : > { %6415 = shalt.err (!%p6412_p3)
}
 0x236   : > { %s6416_s4 = scalar_lea.vmem %s7240_s19, 256  ;;  %s6573_s17 = smov [#allocation10]  }
 0x237   : > { %p6417_p9 = scmp.ne.s32.totalorder %s7240_s19, %s6416_s4  ;;  %s6421_s5 = sshll.u32 %s6573_s17, 4  ;;  %s6422_s5 = int_to_ptr.vmem [resolvable:$false] %s6421_s5 }
 0x238   : > { %s6423_s13 = scalar_lea.vmem %s6422_s5, 512  ;;  %p6424_p1 = scmp.lt.s32.totalorder %s7240_s19, %s6422_s5 }
 0x239   : > { %p6419_p11 = pnand %p6417_p9, %p8041_p12  ;;  %p6425_p7 = scmp.lt.s32.totalorder %s6423_s13, %s6416_s4 }
 0x23b   : > { %p6420_p4 = pneg %p6419_p11  ;;  %p6426_p10 = por %p6425_p7, %p6424_p1 }
 0x23d   : > { %p6427_p8 = pnand %p6426_p10, %p6420_p4 }
 0x23f   : > { %6430 = shalt.err (!%p6427_p8)
}
 0x240   : > { %s8046_s21 = sld [smem:[#allocation56_spill]]  ;;  %s8047_s20 = sld [smem:[#allocation50_spill]] }
 0x246   : > { %5621 = dma.hbm_to_vmem [thread:$0]  (!%p8044_p13), %s7043_s15, 256, %s7240_s19, %s8046_s21, %s8039_s11, %s8039_s11, %s8038_s22  }
 0x247   : > { %p8048_p12 = scmp.ne.s32.totalorder %s8047_s20, 0 }
 0x248   : > { %s8049_s29 = sld [smem:[#allocation45_spill]] (!%p8048_p12)  ;;  %s8050_s10 = sld [smem:[#allocation52_spill]] (!%p8048_p12) }
 0x249   : > { %997 = sbr.rel (%p8048_p12) target bundleno = 4663 (0x1237), region = 128 }
 0x24e   : > { %s7289_s8 = sand.u32 (!%p8048_p12), 1, %s8049_s29   ;;  %p8051_p6 = scmp.ne.s32.totalorder (!%p8048_p12), %s8050_s10, 0 }
 0x24f   : > { %s5051_s28 = sshll.u32 (!%p8048_p12), %s7289_s8, 3  ;;  %s1000_s2 = scalar_lea.sflag (!%p8048_p12), [#allocation3], %s7289_s8 }
 0x250   : > { %s7295_s18 = scalar_lea.vmem [#allocation2], %s5051_s28 }
 0x251   : > { %6484 = dma.done.wait (%p8051_p6), %s1000_s2, 128  }
 0x252   : > { %6486 = vsyncadd (%p8051_p6), %s1000_s2, 4294967168  ;;  %s8052_s15 = sld [smem:[#allocation49_spill]]  ;;  %s5052_s11 = sshll.u32 %s7289_s8, 4 }
 0x253   : > { %s7303_s1 = scalar_lea.vmem [#allocation5], %s5052_s11 }
 0x258   : > { %s1008_s22 = sand.u32 1, %s8052_s15  }
 0x259   : > { %s1009_s19 = scalar_lea.sflag [#allocation6], %s1008_s22 }
 0x25a   : > { %6488 = dma.done.wait (%p8051_p6), %s1009_s19, 272  }
 0x25b   : > { %6490 = vsyncadd (%p8051_p6), %s1009_s19, 4294967024  ;;  %s1020_s7 = scalar_lea.vmem [#allocation7], %s7289_s8  ;;  %s1026_s0 = scalar_lea.sflag [#allocation9], %s1008_s22 }
 0x25c   : > { %s1028_s30 = scalar_lea.vmem [#allocation8], %s7289_s8 }
 0x25d   : > { %6492 = dma.done.wait (%p8051_p6), %s1026_s0, 272  }
 0x25e   : > { %6494 = vsyncadd (%p8051_p6), %s1026_s0, 4294967024  ;;  %s7315_s26 = scalar_lea.vmem [#allocation10], %s5052_s11  ;;  %p8053_p13 = scmp.eq.s32.totalorder %s8052_s15, 0 }
 0x260   : > { %6496 = dma.done.wait (%p8053_p13), [#allocation12], 1040   ;;  %p8054_p5 = pmov %p8053_p13 }
 0x262   : > { %6498 = vsyncadd (%p8054_p5), [#allocation12], 4294966256  ;;  %p8055_p2 = pmov %p8054_p5 }
 0x264   : > { %6500 = dma.done.wait (%p8055_p2), [#allocation15], 2080   ;;  %p8056_p0 = pmov %p8055_p2 }
 0x266   : > { %6502 = vsyncadd (%p8056_p0), [#allocation15], 4294965216  ;;  %p8057_p3 = pmov %p8056_p0 }
 0x267   : > { %p8058_p9 = pmov %p8056_p0 }
 0x268   : > { %6504 = dma.done.wait (%p8057_p3), [#allocation18], 1040  }
 0x269   : > { %6506 = vsyncadd (%p8058_p9), [#allocation18], 4294966256  ;;  %p8059_p11 = pmov %p8056_p0 }
 0x26a   : > { %p8060_p4 = pmov %p8056_p0 }
 0x26b   : > { %6508 = dma.done.wait (%p8059_p11), [#allocation21], 32  }
 0x26c   : > { %6510 = vsyncadd (%p8060_p4), [#allocation21], 4294967264  ;;  %p8061_p1 = pmov %p8056_p0 }
 0x26d   : > { %p8062_p7 = pmov %p8056_p0 }
 0x26e   : > { %6512 = dma.done.wait (%p8061_p1), [#allocation24], 1040  }
 0x26f   : > { %6514 = vsyncadd (%p8062_p7), [#allocation24], 4294966256  ;;  %p8063_p10 = pmov %p8056_p0 }
 0x270   : > { %p8064_p8 = pmov %p8056_p0 }
 0x271   : > { %6516 = dma.done.wait (%p8063_p10), [#allocation27], 2080  }
 0x272   : > { %6518 = vsyncadd (%p8064_p8), [#allocation27], 4294965216  ;;  %p8065_p12 = pmov %p8056_p0 }
 0x273   : > { %p8066_p6 = pmov %p8056_p0 }
 0x274   : > { %6520 = dma.done.wait (%p8065_p12), [#allocation30], 4096  }
 0x275   : > { %6522 = vsyncadd (%p8066_p6), [#allocation30], 4294963200  ;;  %v6574_v0 = vmov 0.0   ;;  %v6575_v1 = vmov 0   ;;  %vm6576_vm0 = vmmov 0   ;;  %v5733_v4 = vld [vmem:[#allocation11] sm:$0xff]   ;;  %v1318_v28 = vlaneseq }
 0x276   : > { %5319 = vmatprep.subr.bf16.mxu0 %v6574_v0  ;;  %1440 = vmatprep.mubr.bf16.mxu1 %v6575_v1  ;;  %v5730_v2 = vld [vmem:[#allocation14 + $0x4] ss:$8 sps:$4 sm:$0xff]   ;;  %v5732_v3 = vld [vmem:[#allocation14] ss:$8 sps:$4 sm:$0xff]   ;;  %v5734_v5 = vld [vmem:[#allocation14 + $0x14] ss:$8 sps:$4 sm:$0xff]  }
 0x277   : > { %5335 = vmatprep.mubr.msk.bf16.mxu0 %vm6576_vm0, %v6574_v0  ;;  %1408 = vmatprep.subr.bf16.mxu1 %v5730_v2  ;;  %v5736_v6 = vld [vmem:[#allocation14 + $0x10] ss:$8 sps:$4 sm:$0xff]   ;;  %v5737_v7 = vld [vmem:[#allocation11 + $0x8] sm:$0xff]   ;;  %v5742_v11 = vld [vmem:[#allocation14 + $0x34] ss:$8 sps:$4 sm:$0xff]   ;;  %v7363_v29 = vshrl.u32 %v1318_v28, 7 }
 0x278   : > { %1409 = vmatpush1.bf16.msra.mxu1 %v5732_v3  ;;  %5320 = vmatpush3.bf16.msra.mxu0 %v5733_v4  ;;  %v5738_v8 = vld [vmem:[#allocation14 + $0x24] ss:$8 sps:$4 sm:$0xff]   ;;  %v5740_v9 = vld [vmem:[#allocation14 + $0x20] ss:$8 sps:$4 sm:$0xff]   ;;  %v5744_v12 = vld [vmem:[#allocation14 + $0x30] ss:$8 sps:$4 sm:$0xff]  }
 0x279   : > { %1410 = vmatprep.subr.bf16.mxu1 %v5734_v5  ;;  %5321 = vmatprep.subr.bf16.mxu0 %v6574_v0  ;;  %v5741_v10 = vld [vmem:[#allocation11 + $0x10] sm:$0xff]   ;;  %v5745_v13 = vld [vmem:[#allocation11 + $0x18] sm:$0xff]   ;;  %v5748_v15 = vld [vmem:[#allocation14 + $0x40] ss:$8 sps:$4 sm:$0xff]   ;;  %v7366_v30 = vsub.s32 0, %v7363_v29  ;;  %s6577_s4 = smov 32  }
 0x27a   : > { %v5746_v14 = vld [vmem:[#allocation14 + $0x44] ss:$8 sps:$4 sm:$0xff]   ;;  %v5750_v17 = vld [vmem:[#allocation14 + $0x54] ss:$8 sps:$4 sm:$0xff]   ;;  %v5752_v18 = vld [vmem:[#allocation14 + $0x50] ss:$8 sps:$4 sm:$0xff]  }
 0x27b   : > { %v5749_v16 = vld [vmem:[#allocation11 + $0x20] sm:$0xff]   ;;  %v5753_v19 = vld [vmem:[#allocation11 + $0x28] sm:$0xff]   ;;  %v5757_v22 = vld [vmem:[#allocation11 + $0x30] sm:$0xff]   ;;  %s6578_s17 = smov 96   ;;  %s6579_s5 = smov 64   ;;  %vm1907_vm1 = vcmask 261120  }
 0x27c   : > { %1411 = vmatpush1.bf16.msra.mxu1 %v5736_v6  ;;  %5322 = vmatpush3.bf16.msra.mxu0 %v5737_v7  ;;  %v5754_v20 = vld [vmem:[#allocation14 + $0x64] ss:$8 sps:$4 sm:$0xff]   ;;  %v5756_v21 = vld [vmem:[#allocation14 + $0x60] ss:$8 sps:$4 sm:$0xff]   ;;  %v5758_v23 = vld [vmem:[#allocation14 + $0x74] ss:$8 sps:$4 sm:$0xff]  }
 0x27d   : > { %1412 = vmatprep.subr.bf16.mxu1 %v5738_v8  ;;  %5323 = vmatprep.subr.bf16.mxu0 %v6574_v0  ;;  %v5760_v24 = vld [vmem:[#allocation14 + $0x70] ss:$8 sps:$4 sm:$0xff]   ;;  %v7368_v31 = vld [vmem:[#allocation16] sm:$0x3]  ;;  %v5069_v33 = vld [vmem:[#allocation13] ss:$0 sm:$0xff] }
 0x27e   : > { %v1186_v25 = vld [vmem:[%s7295_s18] sm:$0xff]  ;;  %v1321_v32 = vrot.slane %v7368_v31, %v7366_v30  ;;  %v6580_v45 = vmov 1983009808   ;;  %v6581_v47 = vmov 1934713408   ;;  %vm2092_vm2 = vcmask 64512  }
 0x27f   : > { %v5761_v26 = vld [vmem:[#allocation11 + $0x38] sm:$0xff]   ;;  %v1187_v27 = vpack.c.bf16 %v1186_v25, %v1186_v25  ;;  %v1464_v46 = vunpack.c.l.s4 %v6580_v45  ;;  %v1496_v48 = vunpack.c.l.s4 %v6581_v47  ;;  %vm2144_vm3 = vcmask 1043456   ;;  %s8067_s20 = sld [smem:[#allocation71_spill]]  ;;  %s8069_s10 = sld [smem:[#allocation73_spill]] }
 0x280   : > { %1413 = vmatpush1.bf16.msra.mxu1 %v5740_v9  ;;  %5324 = vmatpush3.bf16.msra.mxu0 %v5741_v10  ;;  %vm2475_vm4 = vcmask 523264   ;;  %vm2477_vm5 = vcmask 785408   ;;  %vm3835_vm6 = vcmask 130048   ;;  %s8070_s15 = sld [smem:[#allocation74_spill]]  ;;  %s8071_s19 = sld [smem:[#allocation76_spill]] }
 0x281   : > { %1414 = vmatprep.subr.bf16.mxu1 %v5742_v11  ;;  %5325 = vmatprep.subr.bf16.mxu0 %v6574_v0  ;;  %v1465_v49 = vunpack.c.0.s8 %v1464_v46  ;;  %v1497_v52 = vunpack.c.0.s8 %v1496_v48  ;;  %s8072_s0 = sld [smem:[#allocation77_spill]]  ;;  %s8075_s21 = sld [smem:[#allocation78_spill]] }
 0x282   : > { %s8076_s29 = sld [smem:[#allocation79_spill]]  ;;  %s1181_s2 = scalar_lea.vmem [#allocation32], %s5051_s28 }
 0x283   : > { %v7381_v53 = vsub.s32 %v1465_v49, %v7363_v29  ;;  %v7384_v60 = vsub.s32 %v1497_v52, %v7363_v29  ;;  %s8077_s11 = sld [smem:[#allocation80_spill]]  ;;  %s6582_s28 = smov [#allocation32]  }
 0x284   : > { %1415 = vmatpush1.bf16.msra.mxu1 %v5744_v12  ;;  %5326 = vmatpush3.bf16.msra.mxu0 %v5745_v13 }
 0x285   : > { %1416 = vmatprep.subr.bf16.mxu1 %v5746_v14  ;;  %5327 = vmatprep.subr.bf16.mxu0 %v6574_v0 }
 0x288   : > { %1417 = vmatpush1.bf16.msra.mxu1 %v5748_v15  ;;  %5328 = vmatpush3.bf16.msra.mxu0 %v5749_v16 }
 0x289   : > { %1418 = vmatprep.subr.bf16.mxu1 %v5750_v17  ;;  %5329 = vmatprep.subr.bf16.mxu0 %v6574_v0 }
 0x28c   : > { %1419 = vmatpush1.bf16.msra.mxu1 %v5752_v18  ;;  %5330 = vmatpush3.bf16.msra.mxu0 %v5753_v19 }
 0x28d   : > { %1420 = vmatprep.subr.bf16.mxu1 %v5754_v20  ;;  %5331 = vmatprep.subr.bf16.mxu0 %v6574_v0 }
 0x290   : > { %1421 = vmatpush1.bf16.msra.mxu1 %v5756_v21  ;;  %5332 = vmatpush3.bf16.msra.mxu0 %v5757_v22 }
 0x291   : > { %1422 = vmatprep.subr.bf16.mxu1 %v5758_v23  ;;  %5333 = vmatprep.subr.bf16.mxu0 %v6574_v0 }
 0x294   : > { %1423 = vmatpush1.bf16.msra.mxu1 %v5760_v24  ;;  %5334 = vmatpush3.bf16.msra.mxu0 %v5761_v26 }
 0x295   : > { %5339 = vmatprep.subr.bf16.mxu1 %v6574_v0  ;;  %5363 = vmatprep.subr.bf16.mxu0 %v6574_v0 }
 0x297   : > { %1441 = vmatmul.mubr.bf16.vlgmr.msra.gmra.mrb[0].mxu1 %v1187_v27  ;;  %5336 = vmatmul.mubr.bf16.vlgmr.msra.gmra.mrb[0].mxu0 %v1187_v27 }
 0x298   : > { %5341 = vmatprep.mubr.msk.bf16.mxu1 %vm6576_vm0, %v6574_v0  ;;  %5365 = vmatprep.mubr.msk.bf16.mxu0 %vm6576_vm0, %v6574_v0 }
 0x36a   : > { %v1442_v34 = vpop.f32.mrb[0].mxu1  ;;  %v1294_v37 = vpop.f32.mrb[0].mxu0 }
 0x36b   : > { %v1443_v35 = vadd.f32 %v1442_v34, %v1321_v32  ;;  %v7372_v36 = vpop.f32.mrb[1].mxu1  ;;  %v1295_v38 = vadd.f32 %v5069_v33, %v1294_v37  ;;  %v5337_v40 = vpop.f32.mrb[1].mxu0 }
 0x36c   : > { %v1446_v39 = vpop.f32.mrb[2].mxu1  ;;  %v1297_v42 = vpop.f32.mrb[2].mxu0 }
 0x36d   : > { %v1447_v41 = vpop.f32.mrb[3].mxu1  ;;  %1608 = vrot.lane.b32.xlu1 %v1443_v35, %s6577_s4  ;;  %1602 = vrot.lane.b32.xlu0 %v1443_v35, %s6578_s17  ;;  %v1450_v43 = vmul.f32 0.17677669, %v1295_v38  ;;  %v5338_v44 = vpop.f32.mrb[3].mxu0 }
 0x371   : > { %1605 = vrot.lane.b32.xlu0 %v1443_v35, %s6579_s5  ;;  %1452 = vrot.lane.b32.xlu1 %v1450_v43, %s6578_s17 }
 0x375   : > { %1455 = vrot.lane.b32.xlu0 %v1450_v43, %s6579_s5  ;;  %1458 = vrot.lane.b32.xlu1 %v1450_v43, %s6577_s4 }
 0x3df   : > { %v1609_v50 = vpop.permute.xlu1 %1608  ;;  %v1603_v51 = vpop.permute.xlu0 %1602 }
 0x3e0   : > { %v1627_v54 = vcombine.low %v1603_v51, %v1609_v50  ;;  %v1628_v55 = vcombine.high %v1603_v51, %v1609_v50 }
 0x3e2   : > { %v1635_v61 = vrot.slane %v1627_v54, %v7381_v53  ;;  %v1642_v62 = vrot.slane %v1628_v55, %v7381_v53 }
 0x3e3   : > { %v1606_v56 = vpop.permute.xlu0 %1605  ;;  %v1453_v57 = vpop.permute.xlu1 %1452 }
 0x3e4   : > { %v1611_v58 = vcombine.low %v1443_v35, %v1606_v56  ;;  %v1612_v59 = vcombine.high %v1443_v35, %v1606_v56 }
 0x3e6   : > { %v1619_v63 = vrot.slane %v1611_v58, %v7381_v53  ;;  %v1626_v2 = vrot.slane %v1612_v59, %v7381_v53 }
 0x3e7   : > { %v1456_v3 = vpop.permute.xlu0 %1455  ;;  %v1459_v4 = vpop.permute.xlu1 %1458 }
 0x3e8   : > { %v1643_v5 = vcombine.low %v1619_v63, %v1635_v61  ;;  %v1644_v6 = vcombine.high %v1619_v63, %v1635_v61  ;;  %v1659_v7 = vcombine.low %v1626_v2, %v1642_v62  ;;  %v1660_v8 = vcombine.high %v1626_v2, %v1642_v62 }
 0x3e9   : > { %v1461_v9 = vcombine.low %v1450_v43, %v1456_v3  ;;  %v1462_v10 = vcombine.high %v1450_v43, %v1456_v3  ;;  %v1477_v11 = vcombine.low %v1453_v57, %v1459_v4  ;;  %v1478_v12 = vcombine.high %v1453_v57, %v1459_v4 }
 0x3ea   : > { %v1651_v13 = vrot.slane %v1643_v5, %v7384_v60  ;;  %v1658_v14 = vrot.slane %v1644_v6, %v7384_v60  ;;  %v1667_v15 = vrot.slane %v1659_v7, %v7384_v60  ;;  %v1674_v16 = vrot.slane %v1660_v8, %v7384_v60 }
 0x3eb   : > { %v1469_v17 = vrot.slane %v1461_v9, %v7381_v53  ;;  %v1476_v18 = vrot.slane %v1462_v10, %v7381_v53  ;;  %v1485_v19 = vrot.slane %v1477_v11, %v7381_v53  ;;  %v1492_v20 = vrot.slane %v1478_v12, %v7381_v53 }
 0x3ec   : > { %v1679_v21 = vcombine.low %v1651_v13, %v1658_v14  ;;  %v5096_v22 = vcombine.high %v1651_v13, %v1658_v14  ;;  %v1695_v23 = vcombine.low %v1667_v15, %v1674_v16  ;;  %v5097_v24 = vcombine.high %v1667_v15, %v1674_v16 }
 0x3ed   : > { %v1493_v25 = vcombine.low %v1469_v17, %v1485_v19  ;;  %v1494_v26 = vcombine.high %v1469_v17, %v1485_v19  ;;  %v1509_v27 = vcombine.low %v1476_v18, %v1492_v20  ;;  %v1510_v28 = vcombine.high %v1476_v18, %v1492_v20 }
 0x3ee   : > { %v1686_v32 = vrot.slane %v1679_v21, %v7381_v53  ;;  %v1694_v33 = vrot.slane %v5096_v22, %v7381_v53  ;;  %v1702_v34 = vrot.slane %v1695_v23, %v7381_v53  ;;  %v1710_v35 = vrot.slane %v5097_v24, %v7381_v53 }
 0x3ef   : > { %v1501_v37 = vrot.slane %v1493_v25, %v7384_v60  ;;  %v1508_v38 = vrot.slane %v1494_v26, %v7384_v60  ;;  %v1517_v39 = vrot.slane %v1509_v27, %v7384_v60  ;;  %v1524_v40 = vrot.slane %v1510_v28, %v7384_v60  ;;  %v5100_v25 = vld [vmem:[%s1020_s7] ss:$0 sm:$0xff] }
 0x3f0   : > { %v1711_v41 = vcombine.low %v1686_v32, %v1694_v33  ;;  %v1727_v42 = vcombine.low %v1702_v34, %v1710_v35  ;;  %v1712_v63 = vcombine.high %v1686_v32, %v1694_v33  ;;  %v1728_v2 = vcombine.high %v1702_v34, %v1710_v35 }
 0x3f1   : > { %v1529_v43 = vcombine.low %v1501_v37, %v1508_v38  ;;  %v5094_v44 = vcombine.high %v1501_v37, %v1508_v38  ;;  %v1545_v45 = vcombine.low %v1517_v39, %v1524_v40  ;;  %v5095_v46 = vcombine.high %v1517_v39, %v1524_v40 }
 0x3f2   : > { %v1719_v47 = vrot.slane %v1711_v41, %v7384_v60  ;;  %v1735_v48 = vrot.slane %v1727_v42, %v7384_v60  ;;  %v1726_v5 = vrot.slane %v1712_v63, %v7384_v60  ;;  %v1742_v6 = vrot.slane %v1728_v2, %v7384_v60 }
 0x3f3   : > { %v1536_v49 = vrot.slane %v1529_v43, %v7381_v53  ;;  %v1544_v50 = vrot.slane %v5094_v44, %v7381_v53  ;;  %v1552_v51 = vrot.slane %v1545_v45, %v7381_v53  ;;  %v1560_v52 = vrot.slane %v5095_v46, %v7381_v53 }
 0x3f4   : > { %v1743_v54 = vcombine.low %v1719_v47, %v1735_v48  ;;  %v1744_v62 = vcombine.high %v1719_v47, %v1735_v48  ;;  %v1745_v9 = vcombine.low %v1726_v5, %v1742_v6  ;;  %v1746_v18 = vcombine.high %v1726_v5, %v1742_v6 }
 0x3f5   : > { %v1561_v55 = vcombine.low %v1536_v49, %v1544_v50  ;;  %v1577_v56 = vcombine.low %v1552_v51, %v1560_v52  ;;  %v1562_v10 = vcombine.high %v1536_v49, %v1544_v50  ;;  %v1578_v11 = vcombine.high %v1552_v51, %v1560_v52 }
 0x3f6   : > { %v1747_v57 = vpack.c.bf16 %v1743_v54, %v1743_v54  ;;  %v1748_v4 = vpack.c.bf16 %v1744_v62, %v1744_v62  ;;  %v1749_v13 = vpack.c.bf16 %v1745_v9, %v1745_v9  ;;  %v1750_v20 = vpack.c.bf16 %v1746_v18, %v1746_v18 }
 0x3f7   : > { %v1569_v58 = vrot.slane %v1561_v55, %v7384_v60  ;;  %v1585_v59 = vrot.slane %v1577_v56, %v7384_v60  ;;  %v1576_v15 = vrot.slane %v1562_v10, %v7384_v60  ;;  %v1592_v16 = vrot.slane %v1578_v11, %v7384_v60 }
 0x3f8   : > { %v1912_v61 = vsel %vm1907_vm1, %v1747_v57, 0  ;;  %v1958_v8 = vsel %vm1907_vm1, %v1748_v4, 0  ;;  %v2004_v17 = vsel %vm1907_vm1, %v1749_v13, 0  ;;  %v2050_v22 = vsel %vm1907_vm1, %v1750_v20, 0 }
 0x3f9   : > { %5340 = vmatpush3.bf16.xpose.msra.mxu1 %v1912_v61  ;;  %v1593_v3 = vcombine.low %v1569_v58, %v1585_v59  ;;  %v1594_v12 = vcombine.high %v1569_v58, %v1585_v59  ;;  %v1595_v19 = vcombine.low %v1576_v15, %v1592_v16  ;;  %v1596_v23 = vcombine.high %v1576_v15, %v1592_v16 }
 0x3fa   : > { %5345 = vmatprep.subr.bf16.mxu1 %v6574_v0  ;;  %v7443_v46 = vsub.s32 1, %v7363_v29 }
 0x3fb   : > { %v1597_v7 = vpack.c.bf16 %v1593_v3, %v1593_v3  ;;  %v1598_v14 = vpack.c.bf16 %v1594_v12, %v1594_v12  ;;  %v1599_v21 = vpack.c.bf16 %v1595_v19, %v1595_v19  ;;  %v1600_v24 = vpack.c.bf16 %v1596_v23, %v1596_v23 }
 0x3fc   : > { %v1325_v49 = vrot.slane %v7368_v31, %v7443_v46 }
 0x3fe   : > { %v1445_v55 = vadd.f32 %v7372_v36, %v1325_v49 }
 0x400   : > { %5342 = vmatmul.mubr.msk.bf16.vlgmr.msra.gmra.mrb[4].mxu1 %vm1907_vm1, %v1597_v7 }
 0x401   : > { %5346 = vmatpush3.bf16.xpose.msra.mxu1 %v1958_v8  ;;  %5347 = vmatprep.mubr.msk.bf16.mxu1 %vm6576_vm0, %v6574_v0 }
 0x402   : > { %5351 = vmatprep.subr.bf16.mxu1 %v6574_v0 }
 0x408   : > { %5348 = vmatmul.mubr.msk.bf16.vlgmr.msra.gmra.mrb[8].mxu1 %vm1907_vm1, %v1598_v14 }
 0x409   : > { %5352 = vmatpush3.bf16.xpose.msra.mxu1 %v2004_v17  ;;  %5353 = vmatprep.mubr.msk.bf16.mxu1 %vm6576_vm0, %v6574_v0 }
 0x40a   : > { %5357 = vmatprep.subr.bf16.mxu1 %v6574_v0 }
 0x410   : > { %5354 = vmatmul.mubr.msk.bf16.vlgmr.msra.gmra.mrb[12].mxu1 %vm1907_vm1, %v1599_v21 }
 0x411   : > { %5358 = vmatpush3.bf16.xpose.msra.mxu1 %v2050_v22  ;;  %5359 = vmatprep.mubr.msk.bf16.mxu1 %vm6576_vm0, %v6574_v0 }
 0x412   : > { %5369 = vmatprep.subr.bf16.mxu1 %v6574_v0 }
 0x418   : > { %5360 = vmatmul.mubr.msk.bf16.vlgmr.msra.gmra.mrb[16].mxu1 %vm1907_vm1, %v1600_v24 }
 0x419   : > { %5371 = vmatprep.mubr.msk.bf16.mxu1 %vm6576_vm0, %v6574_v0 }
 0x4d3   : > { %v1948_v26 = vpop.f32.mrb[4].mxu1 }
 0x4d4   : > { %v1949_v27 = vadd.f32 %v5100_v25, %v1948_v26  ;;  %v5343_v28 = vpop.f32.mrb[5].mxu1 }
 0x4d5   : > { %v1951_v32 = vpop.f32.mrb[6].mxu1 }
 0x4d6   : > { %v5344_v33 = vpop.f32.mrb[7].mxu1  ;;  %v2093_v34 = vsel %vm2092_vm2, %v1949_v27, -inf }
 0x4d7   : > { %2094 = vmax.xlane.f32.xlu0 %v2093_v34 }
 0x4db   : > { %v1994_v35 = vpop.f32.mrb[8].mxu1 }
 0x4dc   : > { %v1995_v37 = vadd.f32 %v5100_v25, %v1994_v35  ;;  %v5349_v38 = vpop.f32.mrb[9].mxu1 }
 0x4dd   : > { %v1997_v39 = vpop.f32.mrb[10].mxu1 }
 0x4de   : > { %v5350_v40 = vpop.f32.mrb[11].mxu1  ;;  %v2096_v41 = vsel %vm2092_vm2, %v1995_v37, -inf }
 0x4df   : > { %2097 = vmax.xlane.f32.xlu1 %v2096_v41 }
 0x4e3   : > { %v2040_v42 = vpop.f32.mrb[12].mxu1 }
 0x4e4   : > { %v2041_v43 = vadd.f32 %v5100_v25, %v2040_v42  ;;  %v5355_v44 = vpop.f32.mrb[13].mxu1 }
 0x4e5   : > { %v2043_v45 = vpop.f32.mrb[14].mxu1 }
 0x4e6   : > { %v5356_v47 = vpop.f32.mrb[15].mxu1  ;;  %v2099_v48 = vsel %vm2092_vm2, %v2041_v43, -inf }
 0x4e7   : > { %2100 = vmax.xlane.f32.xlu0 %v2099_v48 }
 0x4eb   : > { %v2086_v50 = vpop.f32.mrb[16].mxu1 }
 0x4ec   : > { %v2087_v51 = vadd.f32 %v5100_v25, %v2086_v50  ;;  %v5361_v52 = vpop.f32.mrb[17].mxu1 }
 0x4ed   : > { %v2089_v54 = vpop.f32.mrb[18].mxu1 }
 0x4ee   : > { %v5362_v56 = vpop.f32.mrb[19].mxu1  ;;  %v2102_v57 = vsel %vm2092_vm2, %v2087_v51, -inf }
 0x4ef   : > { %2103 = vmax.xlane.f32.xlu0 %v2102_v57 }
 0x4f0   : > { %1752 = vrot.lane.b32.xlu1 %v1445_v55, %s6578_s17 }
 0x564   : > { %v2095_v29 = vpop.xlane.xlu0 %2094 }
 0x565   : > { %v2105_v58 = vsub.f32 %v1949_v27, %v2095_v29 }
 0x567   : > { %v2109_v59 = vmul.f32 1.442695, %v2105_v58 }
 0x569   : > { %5850 = vpow2.f32 %v2109_v59 }
 0x56c   : > { %v2098_v61 = vpop.xlane.xlu1 %2097 }
 0x56d   : > { %v2106_v62 = vsub.f32 %v1995_v37, %v2098_v61 }
 0x56f   : > { %v2111_v63 = vmul.f32 1.442695, %v2106_v62 }
 0x570   : > { %v1753_v14 = vpop.permute.xlu1 %1752 }
 0x571   : > { %5852 = vpow2.f32 %v2111_v63 }
 0x573   : > { %v7451_v31 = vpop.eup %5850 }
 0x574   : > { %v2117_v2 = vsel %vm2092_vm2, %v7451_v31, 0.0  ;;  %v2101_v4 = vpop.xlane.xlu0 %2100 }
 0x575   : > { %2118 = vadd.xlane.f32.xlu1 %v2117_v2  ;;  %v2107_v5 = vsub.f32 %v2041_v43, %v2101_v4 }
 0x577   : > { %v2113_v6 = vmul.f32 1.442695, %v2107_v5 }
 0x579   : > { %5854 = vpow2.f32 %v2113_v6 }
 0x57b   : > { %v7455_v36 = vpop.eup %5852 }
 0x57c   : > { %v2120_v3 = vsel %vm2092_vm2, %v7455_v36, 0.0  ;;  %v2104_v7 = vpop.xlane.xlu0 %2103 }
 0x57d   : > { %2121 = vadd.xlane.f32.xlu0 %v2120_v3  ;;  %v2108_v8 = vsub.f32 %v2087_v51, %v2104_v7 }
 0x57f   : > { %v2115_v9 = vmul.f32 1.442695, %v2108_v8 }
 0x581   : > { %5856 = vpow2.f32 %v2115_v9 }
 0x583   : > { %v7461_v10 = vpop.eup %5854 }
 0x584   : > { %v2123_v11 = vsel %vm2092_vm2, %v7461_v10, 0.0 }
 0x586   : > { %1758 = vrot.lane.b32.xlu1 %v1445_v55, %s6577_s4 }
 0x58b   : > { %v7465_v12 = vpop.eup %5856 }
 0x58c   : > { %v2126_v13 = vsel %vm2092_vm2, %v7465_v12, 0.0 }
 0x593   : > { %1755 = vrot.lane.b32.xlu0 %v1445_v55, %s6579_s5 }
 0x5aa   : > { %2124 = vadd.xlane.f32.xlu1 %v2123_v11 }
 0x5b2   : > { %2127 = vadd.xlane.f32.xlu0 %v2126_v13 }
 0x602   : > { %v2119_v15 = vpop.xlane.xlu1 %2118 }
 0x603   : > { %5858 = vrcp.f32 %v2119_v15 }
 0x606   : > { %v1759_v16 = vpop.permute.xlu1 %1758 }
 0x607   : > { %v1777_v18 = vcombine.low %v1753_v14, %v1759_v16  ;;  %v1778_v19 = vcombine.high %v1753_v14, %v1759_v16 }
 0x609   : > { %v1785_v23 = vrot.slane %v1777_v18, %v7381_v53  ;;  %v1792_v24 = vrot.slane %v1778_v19, %v7381_v53 }
 0x60a   : > { %v2122_v17 = vpop.xlane.xlu0 %2121 }
 0x60b   : > { %5860 = vrcp.f32 %v2122_v17 }
 0x60d   : > { %v5859_v52 = vpop.eup %5858 }
 0x60e   : > { %v1756_v20 = vpop.permute.xlu0 %1755  ;;  %v2133_v63 = vmul.f32 %v5859_v52, %v7451_v31 }
 0x60f   : > { %v1761_v21 = vcombine.low %v1445_v55, %v1756_v20  ;;  %v1762_v22 = vcombine.high %v1445_v55, %v1756_v20 }
 0x610   : > { %v2137_v9 = vpack.c.bf16 %v2133_v63, %v2133_v63 }
 0x611   : > { %v1769_v25 = vrot.slane %v1761_v21, %v7381_v53  ;;  %v1776_v26 = vrot.slane %v1762_v22, %v7381_v53  ;;  %v5762_v21 = vld [vmem:[#allocation17] sm:$0xff]   ;;  %v5763_v22 = vld [vmem:[#allocation17 + $0x8] sm:$0xff]  }
 0x613   : > { %v1793_v27 = vcombine.low %v1769_v25, %v1785_v23  ;;  %v1794_v28 = vcombine.high %v1769_v25, %v1785_v23  ;;  %v1809_v32 = vcombine.low %v1776_v26, %v1792_v24  ;;  %v1810_v33 = vcombine.high %v1776_v26, %v1792_v24  ;;  %v5765_v23 = vld [vmem:[#allocation17 + $0x18] sm:$0xff]   ;;  %v5767_v24 = vld [vmem:[#allocation17 + $0x28] sm:$0xff]  }
 0x615   : > { %v1801_v34 = vrot.slane %v1793_v27, %v7384_v60  ;;  %v1808_v35 = vrot.slane %v1794_v28, %v7384_v60  ;;  %v1817_v37 = vrot.slane %v1809_v32, %v7384_v60  ;;  %v1824_v38 = vrot.slane %v1810_v33, %v7384_v60  ;;  %v5861_v29 = vpop.eup %5860 }
 0x616   : > { %v2134_v2 = vmul.f32 %v5861_v29, %v7455_v36 }
 0x617   : > { %v1829_v39 = vcombine.low %v1801_v34, %v1808_v35  ;;  %v5098_v40 = vcombine.high %v1801_v34, %v1808_v35  ;;  %v1845_v41 = vcombine.low %v1817_v37, %v1824_v38  ;;  %v5099_v42 = vcombine.high %v1817_v37, %v1824_v38 }
 0x618   : > { %v2138_v11 = vpack.c.bf16 %v2134_v2, %v2134_v2 }
 0x619   : > { %v1836_v43 = vrot.slane %v1829_v39, %v7381_v53  ;;  %v1844_v44 = vrot.slane %v5098_v40, %v7381_v53  ;;  %v1852_v45 = vrot.slane %v1845_v41, %v7381_v53  ;;  %v1860_v47 = vrot.slane %v5099_v42, %v7381_v53 }
 0x61b   : > { %v1861_v48 = vcombine.low %v1836_v43, %v1844_v44  ;;  %v1877_v49 = vcombine.low %v1852_v45, %v1860_v47  ;;  %v1862_v50 = vcombine.high %v1836_v43, %v1844_v44  ;;  %v1878_v51 = vcombine.high %v1852_v45, %v1860_v47 }
 0x61d   : > { %v1869_v54 = vrot.slane %v1861_v48, %v7384_v60  ;;  %v1885_v55 = vrot.slane %v1877_v49, %v7384_v60  ;;  %v1876_v56 = vrot.slane %v1862_v50, %v7384_v60  ;;  %v1892_v57 = vrot.slane %v1878_v51, %v7384_v60 }
 0x61f   : > { %v1893_v58 = vcombine.low %v1869_v54, %v1885_v55  ;;  %v1894_v59 = vcombine.high %v1869_v54, %v1885_v55  ;;  %v1895_v61 = vcombine.low %v1876_v56, %v1892_v57  ;;  %v1896_v62 = vcombine.high %v1876_v56, %v1892_v57 }
 0x621   : > { %v1897_v3 = vpack.c.bf16 %v1893_v58, %v1893_v58  ;;  %v1898_v4 = vpack.c.bf16 %v1894_v59, %v1894_v59  ;;  %v1899_v7 = vpack.c.bf16 %v1895_v61, %v1895_v61  ;;  %v1900_v8 = vpack.c.bf16 %v1896_v62, %v1896_v62  ;;  %v5768_v58 = vld [vmem:[#allocation17 + $0x30] sm:$0xff]  }
 0x623   : > { %v2146_v5 = vsel %vm2144_vm3, %v1897_v3, 0  ;;  %v2192_v6 = vsel %vm2144_vm3, %v1898_v4, 0  ;;  %v2238_v31 = vsel %vm2144_vm3, %v1899_v7, 0  ;;  %v2284_v36 = vsel %vm2144_vm3, %v1900_v8, 0 }
 0x624   : > { %5364 = vmatpush3.bf16.msra.mxu0 %v2146_v5  ;;  %5370 = vmatpush3.bf16.msra.mxu1 %v2192_v6  ;;  %v5769_v6 = vld [vmem:[#allocation17 + $0x38] sm:$0xff]  }
 0x625   : > { %5375 = vmatprep.subr.bf16.mxu0 %v6574_v0  ;;  %5381 = vmatprep.subr.bf16.mxu1 %v6574_v0 }
 0x627   : > { %5366 = vmatmul.mubr.msk.bf16.vlgmr.msra.gmra.mrb[4].mxu0 %vm2092_vm2, %v2137_v9  ;;  %5372 = vmatmul.mubr.msk.bf16.vlgmr.msra.gmra.mrb[20].mxu1 %vm2092_vm2, %v2138_v11 }
 0x628   : > { %5376 = vmatpush3.bf16.msra.mxu0 %v2238_v31  ;;  %5382 = vmatpush3.bf16.msra.mxu1 %v2284_v36 }
 0x629   : > { %5377 = vmatprep.mubr.msk.bf16.mxu0 %vm6576_vm0, %v6574_v0  ;;  %5383 = vmatprep.mubr.msk.bf16.mxu1 %vm6576_vm0, %v6574_v0 }
 0x62a   : > { %5387 = vmatprep.subr.bf16.mxu0 %v6574_v0  ;;  %5407 = vmatprep.subr.bf16.mxu1 %v6574_v0 }
 0x637   : > { %v2125_v13 = vpop.xlane.xlu1 %2124 }
 0x638   : > { %5862 = vrcp.f32 %v2125_v13 }
 0x63f   : > { %v2128_v14 = vpop.xlane.xlu0 %2127 }
 0x640   : > { %5864 = vrcp.f32 %v2128_v14 }
 0x642   : > { %v5863_v15 = vpop.eup %5862 }
 0x643   : > { %v2135_v16 = vmul.f32 %v5863_v15, %v7461_v10  ;;  %v5764_v10 = vld [vmem:[#allocation17 + $0x10] sm:$0xff]  }
 0x645   : > { %v2139_v17 = vpack.c.bf16 %v2135_v16, %v2135_v16 }
 0x647   : > { %5378 = vmatmul.mubr.msk.bf16.vlgmr.msra.gmra.mrb[8].mxu0 %vm2092_vm2, %v2139_v17 }
 0x648   : > { %5403 = vmatprep.mubr.msk.bf16.mxu0 %vm6576_vm0, %v6574_v0  ;;  %5388 = vmatpush3.bf16.msra.mxu0 %v5762_v21 }
 0x649   : > { %5389 = vmatprep.subr.bf16.mxu0 %v6574_v0 }
 0x64a   : > { %v5865_v18 = vpop.eup %5864 }
 0x64b   : > { %v2136_v19 = vmul.f32 %v5865_v18, %v7465_v12  ;;  %v5766_v12 = vld [vmem:[#allocation17 + $0x20] sm:$0xff]  }
 0x64c   : > { %5390 = vmatpush3.bf16.msra.mxu0 %v5763_v22 }
 0x64d   : > { %v2140_v20 = vpack.c.bf16 %v2136_v19, %v2136_v19  ;;  %5391 = vmatprep.subr.bf16.mxu0 %v6574_v0 }
 0x64f   : > { %5384 = vmatmul.mubr.msk.bf16.vlgmr.msra.gmra.mrb[24].mxu1 %vm2092_vm2, %v2140_v20 }
 0x650   : > { %5423 = vmatprep.mubr.msk.bf16.mxu1 %vm6576_vm0, %v6574_v0  ;;  %5392 = vmatpush3.bf16.msra.mxu0 %v5764_v10 }
 0x651   : > { %5393 = vmatprep.subr.bf16.mxu0 %v6574_v0 }
 0x654   : > { %5394 = vmatpush3.bf16.msra.mxu0 %v5765_v23 }
 0x655   : > { %5395 = vmatprep.subr.bf16.mxu0 %v6574_v0 }
 0x658   : > { %5396 = vmatpush3.bf16.msra.mxu0 %v5766_v12 }
 0x659   : > { %5397 = vmatprep.subr.bf16.mxu0 %v6574_v0 }
 0x65c   : > { %5398 = vmatpush3.bf16.msra.mxu0 %v5767_v24 }
 0x65d   : > { %5399 = vmatprep.subr.bf16.mxu0 %v6574_v0 }
 0x660   : > { %5400 = vmatpush3.bf16.msra.mxu0 %v5768_v58  ;;  %v5888_v58 = vld [vmem:[%s7295_s18] sm:$0xff]  ;;  %s4726_s18 = sshll.u32 %s1181_s2, 4  ;;  %s7830_s18 = int_to_ptr.vmem [resolvable:$true] %s4726_s18 }
 0x661   : > { %5401 = vmatprep.subr.bf16.mxu0 %v6574_v0  ;;  %s6431_s7 = scalar_lea.vmem %s7830_s18, 128 }
 0x662   : > { %p6432_p13 = scmp.ne.s32.totalorder %s7830_s18, %s6431_s7 }
 0x664   : > { %5402 = vmatpush3.bf16.msra.mxu0 %v5769_v6  ;;  %v5800_v6 = vld [vmem:[#allocation23 + $0x30] sm:$0xff]  }
 0x6fa   : > { %v2182_v25 = vpop.f32.mrb[4].mxu0  ;;  %v2228_v26 = vpop.f32.mrb[20].mxu1 }
 0x6fb   : > { %v5367_v27 = vpop.f32.mrb[5].mxu0  ;;  %v5373_v28 = vpop.f32.mrb[21].mxu1 }
 0x6fc   : > { %v2185_v32 = vpop.f32.mrb[6].mxu0  ;;  %v2231_v33 = vpop.f32.mrb[22].mxu1  ;;  %v5770_v28 = vld [vmem:[#allocation26] ss:$8 sps:$4 sm:$0xff]  }
 0x6fd   : > { %v5368_v34 = vpop.f32.mrb[7].mxu0  ;;  %v5374_v35 = vpop.f32.mrb[23].mxu1  ;;  %v5772_v32 = vld [vmem:[#allocation26 + $0x4] ss:$8 sps:$4 sm:$0xff]   ;;  %v5775_v33 = vld [vmem:[#allocation26 + $0x14] ss:$8 sps:$4 sm:$0xff]  }
 0x6fe   : > { %2846 = vmatprep.subr.bf16.mxu0 %v5772_v32  ;;  %v5773_v34 = vld [vmem:[#allocation26 + $0x10] ss:$8 sps:$4 sm:$0xff]   ;;  %v5778_v35 = vld [vmem:[#allocation26 + $0x24] ss:$8 sps:$4 sm:$0xff]   ;;  %v5121_v32 = vld [vmem:[#allocation22] ss:$0 sm:$0xff] }
 0x71a   : > { %v2274_v37 = vpop.f32.mrb[8].mxu0 }
 0x71b   : > { %v2326_v38 = vcombine.low %v2182_v25, %v2274_v37  ;;  %v2327_v39 = vcombine.high %v2182_v25, %v2274_v37  ;;  %v5379_v40 = vpop.f32.mrb[9].mxu0  ;;  %v5776_v37 = vld [vmem:[#allocation26 + $0x20] ss:$8 sps:$4 sm:$0xff]  }
 0x71c   : > { %v2277_v41 = vpop.f32.mrb[10].mxu0  ;;  %v5779_v40 = vld [vmem:[#allocation26 + $0x30] ss:$8 sps:$4 sm:$0xff]  }
 0x71d   : > { %v5380_v42 = vpop.f32.mrb[11].mxu0  ;;  %v2334_v49 = vrot.slane %v2326_v38, %v7381_v53  ;;  %v2341_v50 = vrot.slane %v2327_v39, %v7381_v53  ;;  %v5794_v38 = vld [vmem:[#allocation23] sm:$0xff]  }
 0x71e   : > { %v5781_v39 = vld [vmem:[#allocation26 + $0x34] ss:$8 sps:$4 sm:$0xff]   ;;  %5408 = vmatpush3.bf16.msra.mxu1 %v5794_v38  ;;  %v5784_v41 = vld [vmem:[#allocation26 + $0x44] ss:$8 sps:$4 sm:$0xff]   ;;  %v5782_v42 = vld [vmem:[#allocation26 + $0x40] ss:$8 sps:$4 sm:$0xff]  }
 0x71f   : > { %5409 = vmatprep.subr.bf16.mxu1 %v6574_v0 }
 0x722   : > { %v2320_v43 = vpop.f32.mrb[24].mxu1 }
 0x723   : > { %v2342_v44 = vcombine.low %v2228_v26, %v2320_v43  ;;  %v2343_v45 = vcombine.high %v2228_v26, %v2320_v43  ;;  %v5385_v47 = vpop.f32.mrb[25].mxu1  ;;  %v5787_v43 = vld [vmem:[#allocation26 + $0x54] ss:$8 sps:$4 sm:$0xff]  }
 0x724   : > { %v2323_v48 = vpop.f32.mrb[26].mxu1  ;;  %v5788_v47 = vld [vmem:[#allocation26 + $0x60] ss:$8 sps:$4 sm:$0xff]  }
 0x725   : > { %v2350_v51 = vrot.slane %v2342_v44, %v7381_v53  ;;  %v2357_v52 = vrot.slane %v2343_v45, %v7381_v53  ;;  %v5386_v54 = vpop.f32.mrb[27].mxu1  ;;  %v5785_v44 = vld [vmem:[#allocation26 + $0x50] ss:$8 sps:$4 sm:$0xff]   ;;  %v5790_v45 = vld [vmem:[#allocation26 + $0x64] ss:$8 sps:$4 sm:$0xff]  }
 0x726   : > { %v5793_v48 = vld [vmem:[#allocation26 + $0x74] ss:$8 sps:$4 sm:$0xff]   ;;  %v5111_v54 = vld [vmem:[#allocation19] ss:$0 sm:$0xff] }
 0x727   : > { %v2358_v55 = vcombine.low %v2334_v49, %v2350_v51  ;;  %v2359_v56 = vcombine.high %v2334_v49, %v2350_v51  ;;  %v2374_v57 = vcombine.low %v2341_v50, %v2357_v52  ;;  %v2375_v29 = vcombine.high %v2341_v50, %v2357_v52  ;;  %v5791_v49 = vld [vmem:[#allocation26 + $0x70] ss:$8 sps:$4 sm:$0xff]  }
 0x728   : > { %v2735_v50 = vld [vmem:[%s7303_s1] sm:$0xff]  ;;  %v2736_v51 = vld [vmem:[%s7303_s1 + $0x8] sm:$0xff]  ;;  %s4712_s1 = scalar_lea.sflag [#allocation4], %s7289_s8 }
 0x729   : > { %v2366_v59 = vrot.slane %v2358_v55, %v7384_v60  ;;  %v2373_v61 = vrot.slane %v2359_v56, %v7384_v60  ;;  %v2382_v62 = vrot.slane %v2374_v57, %v7384_v60  ;;  %v2389_v63 = vrot.slane %v2375_v29, %v7384_v60 }
 0x72a   : > { %v2737_v52 = vpack.c.bf16 %v2736_v51, %v2735_v50 }
 0x72b   : > { %v2394_v2 = vcombine.low %v2366_v59, %v2373_v61  ;;  %v5109_v3 = vcombine.high %v2366_v59, %v2373_v61  ;;  %v2410_v4 = vcombine.low %v2382_v62, %v2389_v63  ;;  %v5110_v5 = vcombine.high %v2382_v62, %v2389_v63  ;;  %v5795_v63 = vld [vmem:[#allocation23 + $0x8] sm:$0xff]  }
 0x72c   : > { %5410 = vmatpush3.bf16.msra.mxu1 %v5795_v63 }
 0x72d   : > { %v2401_v7 = vrot.slane %v2394_v2, %v7381_v53  ;;  %v2409_v8 = vrot.slane %v5109_v3, %v7381_v53  ;;  %v2417_v9 = vrot.slane %v2410_v4, %v7381_v53  ;;  %v2425_v11 = vrot.slane %v5110_v5, %v7381_v53  ;;  %5411 = vmatprep.subr.bf16.mxu1 %v6574_v0  ;;  %v5796_v2 = vld [vmem:[#allocation23 + $0x10] sm:$0xff]   ;;  %v5797_v3 = vld [vmem:[#allocation23 + $0x18] sm:$0xff]   ;;  %v5798_v4 = vld [vmem:[#allocation23 + $0x20] sm:$0xff]  }
 0x72e   : > { %v5799_v5 = vld [vmem:[#allocation23 + $0x28] sm:$0xff]  }
 0x72f   : > { %v2427_v31 = vcombine.high %v2401_v7, %v2409_v8  ;;  %v2443_v36 = vcombine.high %v2417_v9, %v2425_v11  ;;  %v2426_v13 = vcombine.low %v2401_v7, %v2409_v8  ;;  %v2442_v14 = vcombine.low %v2417_v9, %v2425_v11  ;;  %v5801_v7 = vld [vmem:[#allocation23 + $0x38] sm:$0xff]   ;;  %v2754_v8 = vld [vmem:[#allocation28] sm:$0x3] }
 0x730   : > { %5412 = vmatpush3.bf16.msra.mxu1 %v5796_v2  ;;  %v2759_v9 = vrot.slane %v2754_v8, %v7366_v30  ;;  %v2763_v11 = vrot.slane %v2754_v8, %v7443_v46 }
 0x731   : > { %v2441_v15 = vrot.slane %v2427_v31, %v7384_v60  ;;  %v2457_v16 = vrot.slane %v2443_v36, %v7384_v60  ;;  %v2434_v17 = vrot.slane %v2426_v13, %v7384_v60  ;;  %v2450_v18 = vrot.slane %v2442_v14, %v7384_v60  ;;  %5413 = vmatprep.subr.bf16.mxu1 %v6574_v0 }
 0x733   : > { %v2460_v19 = vcombine.low %v2441_v15, %v2457_v16  ;;  %v2459_v20 = vcombine.high %v2434_v17, %v2450_v18  ;;  %v2461_v21 = vcombine.high %v2441_v15, %v2457_v16  ;;  %v2458_v22 = vcombine.low %v2434_v17, %v2450_v18 }
 0x734   : > { %5414 = vmatpush3.bf16.msra.mxu1 %v5797_v3 }
 0x735   : > { %2467 = vrot.lane.b32.xlu1 %v2460_v19, %s6579_s5  ;;  %2463 = vrot.lane.b32.xlu0 %v2459_v20, %s6577_s4 }
 0x736   : > { %5415 = vmatprep.subr.bf16.mxu1 %v6574_v0 }
 0x738   : > { %5416 = vmatpush3.bf16.msra.mxu1 %v5798_v4 }
 0x739   : > { %2471 = vrot.lane.b32.xlu1 %v2461_v21, %s6578_s17  ;;  %5417 = vmatprep.subr.bf16.mxu1 %v6574_v0 }
 0x73c   : > { %5418 = vmatpush3.bf16.msra.mxu1 %v5799_v5 }
 0x73d   : > { %5419 = vmatprep.subr.bf16.mxu1 %v6574_v0 }
 0x740   : > { %5420 = vmatpush3.bf16.msra.mxu1 %v5800_v6 }
 0x741   : > { %5421 = vmatprep.subr.bf16.mxu1 %v6574_v0 }
 0x744   : > { %5422 = vmatpush3.bf16.msra.mxu1 %v5801_v7 }
 0x745   : > { %5427 = vmatprep.subr.bf16.mxu1 %v6574_v0 }
 0x7a7   : > { %v2468_v10 = vpop.permute.xlu1 %2467  ;;  %v2464_v23 = vpop.permute.xlu0 %2463 }
 0x7a8   : > { %v2474_v12 = vsel %vm1907_vm1, %v2458_v22, %v2464_v23 }
 0x7a9   : > { %v2476_v25 = vsel %vm2475_vm4, %v2474_v12, %v2468_v10 }
 0x7ab   : > { %v2472_v24 = vpop.permute.xlu1 %2471 }
 0x7ac   : > { %v2478_v26 = vsel %vm2477_vm5, %v2476_v25, %v2472_v24 }
 0x7ad   : > { %v2479_v27 = vpack.c.bf16 %v2478_v26, %v2478_v26 }
 0x7af   : > { %5404 = vmatmul.mubr.bf16.vlgmr.msra.gmra.mrb[12].mxu0 %v2479_v27  ;;  %v5120_v27 = vld [vmem:[#allocation20] ss:$0 sm:$0xff] }
 0x7b0   : > { %2878 = vmatprep.mubr.bf16.mxu0 %v6575_v1  ;;  %2847 = vmatpush1.bf16.msra.mxu0 %v5770_v28 }
 0x7b1   : > { %2848 = vmatprep.subr.bf16.mxu0 %v5775_v33 }
 0x7b4   : > { %2849 = vmatpush1.bf16.msra.mxu0 %v5773_v34 }
 0x7b5   : > { %2850 = vmatprep.subr.bf16.mxu0 %v5778_v35 }
 0x7b8   : > { %2851 = vmatpush1.bf16.msra.mxu0 %v5776_v37 }
 0x7b9   : > { %2852 = vmatprep.subr.bf16.mxu0 %v5781_v39 }
 0x7bc   : > { %2853 = vmatpush1.bf16.msra.mxu0 %v5779_v40 }
 0x7bd   : > { %2854 = vmatprep.subr.bf16.mxu0 %v5784_v41 }
 0x7c0   : > { %2855 = vmatpush1.bf16.msra.mxu0 %v5782_v42 }
 0x7c1   : > { %2856 = vmatprep.subr.bf16.mxu0 %v5787_v43 }
 0x7c4   : > { %2857 = vmatpush1.bf16.msra.mxu0 %v5785_v44 }
 0x7c5   : > { %2858 = vmatprep.subr.bf16.mxu0 %v5790_v45 }
 0x7c8   : > { %2859 = vmatpush1.bf16.msra.mxu0 %v5788_v47 }
 0x7c9   : > { %2860 = vmatprep.subr.bf16.mxu0 %v5793_v48 }
 0x7cc   : > { %2861 = vmatpush1.bf16.msra.mxu0 %v5791_v49 }
 0x7cd   : > { %5451 = vmatprep.subr.bf16.mxu0 %v6574_v0 }
 0x7cf   : > { %2879 = vmatmul.mubr.bf16.vlgmr.msra.gmra.mrb[16].mxu0 %v2737_v52 }
 0x7d0   : > { %5453 = vmatprep.mubr.msk.bf16.mxu0 %vm6576_vm0, %v6574_v0 }
 0x882   : > { %v2585_v55 = vpop.f32.mrb[12].mxu0 }
 0x883   : > { %v2586_v56 = vadd.f32 %v5111_v54, %v2585_v55  ;;  %v5405_v57 = vpop.f32.mrb[13].mxu0 }
 0x884   : > { %v2588_v29 = vpop.f32.mrb[14].mxu0 }
 0x885   : > { %v2591_v59 = vadd.f32 %v5888_v58, %v2586_v56  ;;  %v5406_v61 = vpop.f32.mrb[15].mxu0 }
 0x887   : > { %2594 = vadd.xlane.f32.xlu0 %v2591_v59  ;;  %v2598_v62 = vmul.f32 %v2591_v59, %v2591_v59 }
 0x889   : > { %2599 = vadd.xlane.f32.xlu1 %v2598_v62 }
 0x8a2   : > { %v2880_v31 = vpop.f32.mrb[16].mxu0 }
 0x8a3   : > { %v2881_v36 = vadd.f32 %v2880_v31, %v2759_v9  ;;  %v2882_v13 = vpop.f32.mrb[17].mxu0 }
 0x8a4   : > { %v7555_v14 = vadd.f32 %v2882_v13, %v2763_v11  ;;  %v2884_v15 = vpop.f32.mrb[18].mxu0 }
 0x8a5   : > { %v2885_v16 = vadd.f32 %v2884_v15, %v2759_v9  ;;  %3061 = vrot.lane.b32.xlu0 %v2881_v36, %s6578_s17  ;;  %v2886_v17 = vpop.f32.mrb[19].mxu0 }
 0x8a6   : > { %v7558_v18 = vadd.f32 %v2886_v17, %v2763_v11 }
 0x8a7   : > { %3063 = vrot.lane.b32.xlu1 %v2885_v16, %s6578_s17 }
 0x8a9   : > { %3067 = vrot.lane.b32.xlu0 %v2881_v36, %s6579_s5 }
 0x8ab   : > { %3069 = vrot.lane.b32.xlu1 %v2885_v16, %s6579_s5 }
 0x8ad   : > { %3073 = vrot.lane.b32.xlu0 %v2881_v36, %s6577_s4 }
 0x8af   : > { %3075 = vrot.lane.b32.xlu1 %v2885_v16, %s6577_s4 }
 0x914   : > { %v2595_v19 = vpop.xlane.xlu0 %2594 }
 0x915   : > { %v2597_v20 = vmul.f32 0.0078125, %v2595_v19 }
 0x916   : > { %v2600_v21 = vpop.xlane.xlu1 %2599 }
 0x917   : > { %v2602_v22 = vmul.f32 %v2597_v20, %v2597_v20  ;;  %v2601_v10 = vmul.f32 0.0078125, %v2600_v21  ;;  %v2605_v25 = vsub.f32 %v2591_v59, %v2597_v20 }
 0x918   : > { %v3062_v37 = vpop.permute.xlu0 %3061 }
 0x919   : > { %v2603_v23 = vsub.f32 %v2601_v10, %v2602_v22 }
 0x91a   : > { %v3064_v38 = vpop.permute.xlu1 %3063 }
 0x91b   : > { %v2604_v12 = vmax.f32 %v2603_v23, 0.0 }
 0x91c   : > { %v3068_v39 = vpop.permute.xlu0 %3067 }
 0x91d   : > { %v2606_v24 = vadd.f32 1e-05, %v2604_v12  ;;  %v3079_v40 = vcombine.low %v2881_v36, %v3068_v39  ;;  %v3080_v42 = vcombine.high %v2881_v36, %v3068_v39 }
 0x91e   : > { %v3070_v41 = vpop.permute.xlu1 %3069 }
 0x91f   : > { %5866 = vrsqrt.f32 %v2606_v24  ;;  %v3147_v43 = vcombine.low %v2885_v16, %v3070_v41  ;;  %v3148_v44 = vcombine.high %v2885_v16, %v3070_v41  ;;  %v3087_v47 = vrot.slane %v3079_v40, %v7381_v53 }
 0x920   : > { %v3074_v45 = vpop.permute.xlu0 %3073  ;;  %v3094_v52 = vrot.slane %v3080_v42, %v7381_v53 }
 0x921   : > { %v3095_v48 = vcombine.low %v3062_v37, %v3074_v45  ;;  %v3096_v49 = vcombine.high %v3062_v37, %v3074_v45  ;;  %v3155_v50 = vrot.slane %v3147_v43, %v7381_v53  ;;  %v3162_v51 = vrot.slane %v3148_v44, %v7381_v53 }
 0x922   : > { %v3076_v54 = vpop.permute.xlu1 %3075 }
 0x923   : > { %v3163_v55 = vcombine.low %v3064_v38, %v3076_v54  ;;  %v3164_v56 = vcombine.high %v3064_v38, %v3076_v54  ;;  %v3103_v57 = vrot.slane %v3095_v48, %v7381_v53  ;;  %v3110_v29 = vrot.slane %v3096_v49, %v7381_v53 }
 0x925   : > { %v3171_v58 = vrot.slane %v3163_v55, %v7381_v53  ;;  %v3178_v59 = vrot.slane %v3164_v56, %v7381_v53  ;;  %v3111_v61 = vcombine.low %v3087_v47, %v3103_v57  ;;  %v3112_v62 = vcombine.high %v3087_v47, %v3103_v57 }
 0x926   : > { %v3127_v63 = vcombine.low %v3094_v52, %v3110_v29  ;;  %v3128_v2 = vcombine.high %v3094_v52, %v3110_v29 }
 0x927   : > { %v3179_v3 = vcombine.low %v3155_v50, %v3171_v58  ;;  %v3180_v4 = vcombine.high %v3155_v50, %v3171_v58  ;;  %v3195_v5 = vcombine.low %v3162_v51, %v3178_v59  ;;  %v3196_v6 = vcombine.high %v3162_v51, %v3178_v59 }
 0x928   : > { %v3119_v7 = vrot.slane %v3111_v61, %v7384_v60  ;;  %v3126_v8 = vrot.slane %v3112_v62, %v7384_v60  ;;  %v3135_v9 = vrot.slane %v3127_v63, %v7384_v60  ;;  %v3142_v11 = vrot.slane %v3128_v2, %v7384_v60 }
 0x929   : > { %v5867_v26 = vpop.eup %5866  ;;  %v3187_v31 = vrot.slane %v3179_v3, %v7384_v60  ;;  %v3194_v36 = vrot.slane %v3180_v4, %v7384_v60  ;;  %v3203_v13 = vrot.slane %v3195_v5, %v7384_v60  ;;  %v3210_v15 = vrot.slane %v3196_v6, %v7384_v60  ;;  %v5122_v5 = vld [vmem:[#allocation25] ss:$0 sm:$0xff] }
 0x92a   : > { %v2608_v28 = vmul.f32 %v5867_v26, %v2605_v25  ;;  %v3215_v16 = vcombine.low %v3119_v7, %v3126_v8  ;;  %v5150_v17 = vcombine.high %v3119_v7, %v3126_v8  ;;  %v3231_v19 = vcombine.low %v3135_v9, %v3142_v11 }
 0x92b   : > { %v5151_v20 = vcombine.high %v3135_v9, %v3142_v11  ;;  %v3283_v21 = vcombine.low %v3187_v31, %v3194_v36  ;;  %v5152_v22 = vcombine.high %v3187_v31, %v3194_v36  ;;  %v3299_v10 = vcombine.low %v3203_v13, %v3210_v15 }
 0x92c   : > { %v2615_v33 = vmul.f32 %v5120_v27, %v2608_v28  ;;  %v5153_v23 = vcombine.high %v3203_v13, %v3210_v15  ;;  %v3222_v12 = vrot.slane %v3215_v16, %v7381_v53  ;;  %v3230_v24 = vrot.slane %v5150_v17, %v7381_v53 }
 0x92d   : > { %v3238_v25 = vrot.slane %v3231_v19, %v7381_v53  ;;  %v3246_v26 = vrot.slane %v5151_v20, %v7381_v53  ;;  %v3290_v27 = vrot.slane %v3283_v21, %v7381_v53  ;;  %v3298_v28 = vrot.slane %v5152_v22, %v7381_v53 }
 0x92e   : > { %v7565_v34 = vadd.f32 %v5121_v32, %v2615_v33  ;;  %v3306_v32 = vrot.slane %v3299_v10, %v7381_v53  ;;  %v3314_v33 = vrot.slane %v5153_v23, %v7381_v53  ;;  %v3248_v40 = vcombine.high %v3222_v12, %v3230_v24 }
 0x92f   : > { %v3263_v37 = vcombine.low %v3238_v25, %v3246_v26  ;;  %v3315_v38 = vcombine.low %v3290_v27, %v3298_v28  ;;  %v3264_v41 = vcombine.high %v3238_v25, %v3246_v26  ;;  %v3316_v42 = vcombine.high %v3290_v27, %v3298_v28 }
 0x930   : > { %v2623_v35 = vpack.c.bf16 %v7565_v34, %v7565_v34  ;;  %v3331_v39 = vcombine.low %v3306_v32, %v3314_v33  ;;  %v3332_v43 = vcombine.high %v3306_v32, %v3314_v33  ;;  %v3262_v49 = vrot.slane %v3248_v40, %v7384_v60 }
 0x931   : > { %v3271_v45 = vrot.slane %v3263_v37, %v7384_v60  ;;  %v3323_v47 = vrot.slane %v3315_v38, %v7384_v60  ;;  %v3278_v50 = vrot.slane %v3264_v41, %v7384_v60  ;;  %v3330_v51 = vrot.slane %v3316_v42, %v7384_v60 }
 0x932   : > { %5424 = vmatmul.mubr.bf16.vlgmr.msra.gmra.mrb[28].mxu1 %v2623_v35  ;;  %v3247_v35 = vcombine.low %v3222_v12, %v3230_v24  ;;  %v3339_v48 = vrot.slane %v3331_v39, %v7384_v60  ;;  %v3346_v52 = vrot.slane %v3332_v43, %v7384_v60 }
 0x933   : > { %5429 = vmatprep.mubr.msk.bf16.mxu1 %vm6576_vm0, %v6574_v0  ;;  %v3281_v29 = vcombine.low %v3262_v49, %v3278_v50  ;;  %v3282_v59 = vcombine.high %v3262_v49, %v3278_v50 }
 0x934   : > { %v3255_v44 = vrot.slane %v3247_v35, %v7384_v60  ;;  %v3347_v55 = vcombine.low %v3323_v47, %v3339_v48  ;;  %v3348_v57 = vcombine.high %v3323_v47, %v3339_v48  ;;  %v3349_v58 = vcombine.low %v3330_v51, %v3346_v52 }
 0x935   : > { %v3350_v61 = vcombine.high %v3330_v51, %v3346_v52 }
 0x936   : > { %v3279_v54 = vcombine.low %v3255_v44, %v3271_v45  ;;  %v3280_v56 = vcombine.high %v3255_v44, %v3271_v45  ;;  %v3353_v2 = vpack.c.bf16 %v3349_v58, %v3281_v29 }
 0x937   : > { %v7603_v3 = vpack.c.bf16 %v3350_v61, %v3282_v59 }
 0x938   : > { %v3351_v62 = vpack.c.bf16 %v3347_v55, %v3279_v54  ;;  %v3352_v63 = vpack.c.bf16 %v3348_v57, %v3280_v56  ;;  %v3747_v58 = vsel %vm1907_vm1, %v3353_v2, 0 }
 0x93a   : > { %v3655_v4 = vsel %vm1907_vm1, %v3351_v62, 0  ;;  %v3701_v51 = vsel %vm1907_vm1, %v3352_v63, 0  ;;  %v3793_v62 = vsel %vm1907_vm1, %v7603_v3, 0 }
 0x93b   : > { %5428 = vmatpush3.bf16.xpose.msra.mxu1 %v3655_v4  ;;  %v5221_v4 = vld [vmem:[%s7315_s26] sm:$0xff]  }
 0x93c   : > { %5433 = vmatprep.subr.bf16.mxu1 %v6574_v0 }
 0xa05   : > { %v2729_v6 = vpop.f32.mrb[28].mxu1 }
 0xa06   : > { %v2730_v7 = vadd.f32 %v5122_v5, %v2729_v6  ;;  %v5425_v8 = vpop.f32.mrb[29].mxu1  ;;  %v5222_v5 = vunpack.c.l.bf16 %v5221_v4  ;;  %v5147_v6 = vld [vmem:[%s1028_s30] ss:$0 sm:$0xff]  ;;  %s8073_s30 = sld [smem:[#allocation47_spill]] }
 0xa07   : > { %v2732_v9 = vpop.f32.mrb[30].mxu1 }
 0xa08   : > { %v2908_v11 = vmul.f32 0.17677669, %v2730_v7  ;;  %v5426_v31 = vpop.f32.mrb[31].mxu1  ;;  %v2904_v7 = vadd.f32 %v5222_v5, %v5147_v6 }
 0xa0a   : > { %2913 = vrot.lane.b32.xlu1 %v2908_v11, %s6579_s5  ;;  %2910 = vrot.lane.b32.xlu0 %v2908_v11, %s6578_s17 }
 0xa0e   : > { %3359 = vrot.lane.b32.xlu1 %v7558_v18, %s6578_s17  ;;  %2916 = vrot.lane.b32.xlu0 %v2908_v11, %s6577_s4 }
 0xa12   : > { %3357 = vrot.lane.b32.xlu0 %v7555_v14, %s6578_s17 }
 0xa7c   : > { %v2914_v36 = vpop.permute.xlu1 %2913  ;;  %v2911_v13 = vpop.permute.xlu0 %2910 }
 0xa7d   : > { %v2919_v15 = vcombine.low %v2908_v11, %v2914_v36  ;;  %v2920_v16 = vcombine.high %v2908_v11, %v2914_v36  ;;  %v5223_v11 = vunpack.c.h.bf16 %v5221_v4 }
 0xa7f   : > { %v2927_v21 = vrot.slane %v2919_v15, %v7381_v53  ;;  %v2934_v22 = vrot.slane %v2920_v16, %v7381_v53  ;;  %v2905_v15 = vadd.f32 %v5223_v11, %v5147_v6  ;;  %v5228_v16 = vld [vmem:[%s7315_s26 + $0x8] sm:$0xff]   ;;  %s8074_s26 = sld [smem:[#allocation53_spill]] }
 0xa80   : > { %v2917_v17 = vpop.permute.xlu0 %2916 }
 0xa81   : > { %v2935_v19 = vcombine.low %v2911_v13, %v2917_v17  ;;  %v2936_v20 = vcombine.high %v2911_v13, %v2917_v17 }
 0xa83   : > { %v2943_v10 = vrot.slane %v2935_v19, %v7381_v53  ;;  %v2950_v23 = vrot.slane %v2936_v20, %v7381_v53 }
 0xa85   : > { %v2951_v12 = vcombine.low %v2927_v21, %v2943_v10  ;;  %v2952_v24 = vcombine.high %v2927_v21, %v2943_v10  ;;  %v2967_v25 = vcombine.low %v2934_v22, %v2950_v23  ;;  %v2968_v26 = vcombine.high %v2934_v22, %v2950_v23  ;;  %p8078_p5 = scmp.ne.s32.totalorder %s8074_s26, 0 }
 0xa86   : > { %v5226_v21 = vunpack.c.l.bf16 %v5228_v16 }
 0xa87   : > { %v2959_v27 = vrot.slane %v2951_v12, %v7384_v60  ;;  %v2966_v28 = vrot.slane %v2952_v24, %v7384_v60  ;;  %v2975_v32 = vrot.slane %v2967_v25, %v7384_v60  ;;  %v2982_v33 = vrot.slane %v2968_v26, %v7384_v60  ;;  %p6433_p2 = pnand %p6432_p13, %p8078_p5 }
 0xa88   : > { %v2906_v12 = vadd.f32 %v5226_v21, %v5147_v6 }
 0xa89   : > { %v2987_v35 = vcombine.low %v2959_v27, %v2966_v28  ;;  %v5148_v37 = vcombine.high %v2959_v27, %v2966_v28  ;;  %v3003_v38 = vcombine.low %v2975_v32, %v2982_v33  ;;  %v5149_v39 = vcombine.high %v2975_v32, %v2982_v33  ;;  %p6434_p0 = pneg %p6433_p2 }
 0xa8a   : > { %v5227_v27 = vunpack.c.h.bf16 %v5228_v16 }
 0xa8b   : > { %v2994_v40 = vrot.slane %v2987_v35, %v7381_v53  ;;  %v3002_v41 = vrot.slane %v5148_v37, %v7381_v53  ;;  %v3010_v42 = vrot.slane %v3003_v38, %v7381_v53  ;;  %v3018_v43 = vrot.slane %v5149_v39, %v7381_v53 }
 0xa8c   : > { %v2907_v35 = vadd.f32 %v5227_v27, %v5147_v6 }
 0xa8d   : > { %v3019_v44 = vcombine.low %v2994_v40, %v3002_v41  ;;  %v3035_v45 = vcombine.low %v3010_v42, %v3018_v43  ;;  %v3020_v52 = vcombine.high %v2994_v40, %v3002_v41  ;;  %v3036_v54 = vcombine.high %v3010_v42, %v3018_v43  ;;  %v3360_v43 = vpop.permute.xlu1 %3359 }
 0xa8f   : > { %v3027_v47 = vrot.slane %v3019_v44, %v7384_v60  ;;  %v3043_v48 = vrot.slane %v3035_v45, %v7384_v60  ;;  %v3034_v57 = vrot.slane %v3020_v52, %v7384_v60  ;;  %v3050_v29 = vrot.slane %v3036_v54, %v7384_v60 }
 0xa91   : > { %v3051_v49 = vcombine.low %v3027_v47, %v3043_v48  ;;  %v3052_v55 = vcombine.high %v3027_v47, %v3043_v48  ;;  %v3053_v59 = vcombine.low %v3034_v57, %v3050_v29  ;;  %v3054_v63 = vcombine.high %v3034_v57, %v3050_v29  ;;  %v7661_v48 = vpop.permute.xlu0 %3357 }
 0xa93   : > { %v3055_v50 = vpack.c.bf16 %v3051_v49, %v3051_v49  ;;  %v3056_v56 = vpack.c.bf16 %v3052_v55, %v3052_v55  ;;  %v3057_v61 = vpack.c.bf16 %v3053_v59, %v3053_v59  ;;  %v3058_v2 = vpack.c.bf16 %v3054_v63, %v3054_v63 }
 0xa95   : > { %5430 = vmatmul.mubr.msk.bf16.vlgmr.msra.gmra.mrb[32].mxu1 %vm1907_vm1, %v3055_v50 }
 0xa96   : > { %5434 = vmatpush3.bf16.xpose.msra.mxu1 %v3701_v51  ;;  %5435 = vmatprep.mubr.msk.bf16.mxu1 %vm6576_vm0, %v6574_v0 }
 0xa97   : > { %5439 = vmatprep.subr.bf16.mxu1 %v6574_v0 }
 0xa9d   : > { %5436 = vmatmul.mubr.msk.bf16.vlgmr.msra.gmra.mrb[36].mxu1 %vm1907_vm1, %v3056_v56 }
 0xa9e   : > { %5440 = vmatpush3.bf16.xpose.msra.mxu1 %v3747_v58  ;;  %5441 = vmatprep.mubr.msk.bf16.mxu1 %vm6576_vm0, %v6574_v0 }
 0xa9f   : > { %5445 = vmatprep.subr.bf16.mxu1 %v6574_v0 }
 0xaa5   : > { %5442 = vmatmul.mubr.msk.bf16.vlgmr.msra.gmra.mrb[40].mxu1 %vm1907_vm1, %v3057_v61 }
 0xaa6   : > { %5446 = vmatpush3.bf16.xpose.msra.mxu1 %v3793_v62  ;;  %5447 = vmatprep.mubr.msk.bf16.mxu1 %vm6576_vm0, %v6574_v0 }
 0xaa7   : > { %5457 = vmatprep.subr.bf16.mxu1 %v6574_v0 }
 0xaad   : > { %5448 = vmatmul.mubr.msk.bf16.vlgmr.msra.gmra.mrb[44].mxu1 %vm1907_vm1, %v3058_v2 }
 0xaae   : > { %5459 = vmatprep.mubr.msk.bf16.mxu1 %vm6576_vm0, %v6574_v0 }
 0xb68   : > { %v3691_v3 = vpop.f32.mrb[32].mxu1 }
 0xb69   : > { %v3692_v8 = vadd.f32 %v3691_v3, %v2904_v7  ;;  %v5431_v9 = vpop.f32.mrb[33].mxu1 }
 0xb6a   : > { %v3694_v31 = vpop.f32.mrb[34].mxu1 }
 0xb6b   : > { %v5432_v36 = vpop.f32.mrb[35].mxu1  ;;  %v3836_v13 = vsel %vm3835_vm6, %v3692_v8, -inf }
 0xb6c   : > { %3837 = vmax.xlane.f32.xlu1 %v3836_v13 }
 0xb70   : > { %v3737_v17 = vpop.f32.mrb[36].mxu1 }
 0xb71   : > { %v3738_v19 = vadd.f32 %v3737_v17, %v2905_v15  ;;  %v5437_v20 = vpop.f32.mrb[37].mxu1 }
 0xb72   : > { %v3740_v22 = vpop.f32.mrb[38].mxu1 }
 0xb73   : > { %v5438_v10 = vpop.f32.mrb[39].mxu1  ;;  %v3839_v23 = vsel %vm3835_vm6, %v3738_v19, -inf }
 0xb74   : > { %3840 = vmax.xlane.f32.xlu0 %v3839_v23 }
 0xb78   : > { %v3783_v24 = vpop.f32.mrb[40].mxu1 }
 0xb79   : > { %v3784_v25 = vadd.f32 %v3783_v24, %v2906_v12  ;;  %v5443_v26 = vpop.f32.mrb[41].mxu1 }
 0xb7a   : > { %v3786_v28 = vpop.f32.mrb[42].mxu1 }
 0xb7b   : > { %v5444_v32 = vpop.f32.mrb[43].mxu1  ;;  %v3842_v33 = vsel %vm3835_vm6, %v3784_v25, -inf }
 0xb7c   : > { %3843 = vmax.xlane.f32.xlu0 %v3842_v33 }
 0xb80   : > { %v3829_v37 = vpop.f32.mrb[44].mxu1 }
 0xb81   : > { %v3830_v38 = vadd.f32 %v3829_v37, %v2907_v35  ;;  %v5449_v39 = vpop.f32.mrb[45].mxu1 }
 0xb82   : > { %v3832_v40 = vpop.f32.mrb[46].mxu1 }
 0xb83   : > { %v5450_v41 = vpop.f32.mrb[47].mxu1  ;;  %v3845_v42 = vsel %vm3835_vm6, %v3830_v38, -inf }
 0xb84   : > { %3846 = vmax.xlane.f32.xlu1 %v3845_v42 }
 0xb92   : > { %3365 = vrot.lane.b32.xlu0 %v7558_v18, %s6579_s5 }
 0xb95   : > { %3363 = vrot.lane.b32.xlu1 %v7555_v14, %s6579_s5 }
 0xbf9   : > { %v3838_v44 = vpop.xlane.xlu1 %3837 }
 0xbfa   : > { %v3848_v45 = vsub.f32 %v3692_v8, %v3838_v44 }
 0xbfc   : > { %v3852_v47 = vmul.f32 1.442695, %v3848_v45 }
 0xbfe   : > { %5868 = vpow2.f32 %v3852_v47 }
 0xc01   : > { %v3841_v49 = vpop.xlane.xlu0 %3840 }
 0xc02   : > { %v3849_v50 = vsub.f32 %v3738_v19, %v3841_v49 }
 0xc04   : > { %v3854_v51 = vmul.f32 1.442695, %v3849_v50 }
 0xc06   : > { %5870 = vpow2.f32 %v3854_v51 }
 0xc08   : > { %v7663_v52 = vpop.eup %5868 }
 0xc09   : > { %v3860_v54 = vsel %vm3835_vm6, %v7663_v52, 0.0  ;;  %v3844_v59 = vpop.xlane.xlu0 %3843 }
 0xc0a   : > { %3861 = vadd.xlane.f32.xlu0 %v3860_v54  ;;  %v3850_v61 = vsub.f32 %v3784_v25, %v3844_v59 }
 0xc0c   : > { %v3856_v62 = vmul.f32 1.442695, %v3850_v61 }
 0xc0d   : > { %v3366_v6 = vpop.permute.xlu0 %3365 }
 0xc0e   : > { %v3443_v3 = vcombine.low %v7558_v18, %v3366_v6  ;;  %v3444_v8 = vcombine.high %v7558_v18, %v3366_v6 }
 0xc10   : > { %v7667_v55 = vpop.eup %5870  ;;  %v3451_v13 = vrot.slane %v3443_v3, %v7381_v53  ;;  %v3458_v15 = vrot.slane %v3444_v8, %v7381_v53 }
 0xc11   : > { %v3863_v56 = vsel %vm3835_vm6, %v7667_v55, 0.0  ;;  %v3847_v57 = vpop.xlane.xlu1 %3846 }
 0xc12   : > { %3864 = vadd.xlane.f32.xlu1 %v3863_v56  ;;  %v3851_v29 = vsub.f32 %v3830_v38, %v3847_v57 }
 0xc14   : > { %v3858_v58 = vmul.f32 1.442695, %v3851_v29 }
 0xc15   : > { %v3364_v9 = vpop.permute.xlu1 %3363 }
 0xc16   : > { %5872 = vpow2.f32 %v3858_v58  ;;  %v3375_v23 = vcombine.low %v7555_v14, %v3364_v9  ;;  %v3376_v26 = vcombine.high %v7555_v14, %v3364_v9 }
 0xc17   : > { %5874 = vpow2.f32 %v3856_v62 }
 0xc18   : > { %v3383_v39 = vrot.slane %v3375_v23, %v7381_v53  ;;  %v3390_v40 = vrot.slane %v3376_v26, %v7381_v53 }
 0xc20   : > { %3371 = vrot.lane.b32.xlu0 %v7558_v18, %s6577_s4  ;;  %v7675_v63 = vpop.eup %5872 }
 0xc21   : > { %v3869_v2 = vsel %vm3835_vm6, %v7675_v63, 0.0  ;;  %v7679_v4 = vpop.eup %5874 }
 0xc22   : > { %v3866_v5 = vsel %vm3835_vm6, %v7679_v4, 0.0 }
 0xc23   : > { %3369 = vrot.lane.b32.xlu1 %v7555_v14, %s6577_s4 }
 0xc3f   : > { %3870 = vadd.xlane.f32.xlu0 %v3869_v2 }
 0xc47   : > { %3867 = vadd.xlane.f32.xlu1 %v3866_v5 }
 0xc97   : > { %v3862_v7 = vpop.xlane.xlu0 %3861 }
 0xc98   : > { %5876 = vrcp.f32 %v3862_v7 }
 0xc9b   : > { %v3372_v11 = vpop.permute.xlu0 %3371 }
 0xc9c   : > { %v3459_v31 = vcombine.low %v3360_v43, %v3372_v11  ;;  %v3460_v36 = vcombine.high %v3360_v43, %v3372_v11 }
 0xc9e   : > { %v3467_v16 = vrot.slane %v3459_v31, %v7381_v53  ;;  %v3474_v17 = vrot.slane %v3460_v36, %v7381_v53 }
 0xc9f   : > { %v3865_v19 = vpop.xlane.xlu1 %3864 }
 0xca0   : > { %v3475_v20 = vcombine.low %v3451_v13, %v3467_v16  ;;  %v3476_v21 = vcombine.high %v3451_v13, %v3467_v16  ;;  %v3491_v22 = vcombine.low %v3458_v15, %v3474_v17  ;;  %v3492_v10 = vcombine.high %v3458_v15, %v3474_v17 }
 0xca1   : > { %5878 = vrcp.f32 %v3865_v19 }
 0xca2   : > { %v3483_v18 = vrot.slane %v3475_v20, %v7384_v60  ;;  %v3490_v12 = vrot.slane %v3476_v21, %v7384_v60  ;;  %v3499_v24 = vrot.slane %v3491_v22, %v7384_v60  ;;  %v3506_v25 = vrot.slane %v3492_v10, %v7384_v60  ;;  %v5877_v8 = vpop.eup %5876 }
 0xca3   : > { %v3370_v27 = vpop.permute.xlu1 %3369 }
 0xca4   : > { %v3579_v28 = vcombine.low %v3483_v18, %v3490_v12  ;;  %v5156_v32 = vcombine.high %v3483_v18, %v3490_v12  ;;  %v3595_v33 = vcombine.low %v3499_v24, %v3506_v25  ;;  %v5157_v35 = vcombine.high %v3499_v24, %v3506_v25 }
 0xca5   : > { %v3391_v37 = vcombine.low %v7661_v48, %v3370_v27  ;;  %v3392_v38 = vcombine.high %v7661_v48, %v3370_v27  ;;  %v3876_v27 = vmul.f32 %v5877_v8, %v7663_v52 }
 0xca6   : > { %v3586_v14 = vrot.slane %v3579_v28, %v7381_v53  ;;  %v3594_v43 = vrot.slane %v5156_v32, %v7381_v53  ;;  %v3602_v44 = vrot.slane %v3595_v33, %v7381_v53  ;;  %v3610_v45 = vrot.slane %v5157_v35, %v7381_v53 }
 0xca7   : > { %v3399_v41 = vrot.slane %v3391_v37, %v7381_v53  ;;  %v3406_v42 = vrot.slane %v3392_v38, %v7381_v53 }
 0xca8   : > { %v3611_v29 = vcombine.low %v3586_v14, %v3594_v43  ;;  %v3627_v58 = vcombine.low %v3602_v44, %v3610_v45  ;;  %v3612_v31 = vcombine.high %v3586_v14, %v3594_v43  ;;  %v3628_v36 = vcombine.high %v3602_v44, %v3610_v45 }
 0xca9   : > { %v3407_v47 = vcombine.low %v3383_v39, %v3399_v41  ;;  %v3408_v48 = vcombine.high %v3383_v39, %v3399_v41  ;;  %v3423_v49 = vcombine.low %v3390_v40, %v3406_v42  ;;  %v3424_v50 = vcombine.high %v3390_v40, %v3406_v42 }
 0xcaa   : > { %v3619_v9 = vrot.slane %v3611_v29, %v7384_v60  ;;  %v3635_v11 = vrot.slane %v3627_v58, %v7384_v60  ;;  %v3626_v23 = vrot.slane %v3612_v31, %v7384_v60  ;;  %v3642_v18 = vrot.slane %v3628_v36, %v7384_v60 }
 0xcab   : > { %v3415_v51 = vrot.slane %v3407_v47, %v7384_v60  ;;  %v3422_v54 = vrot.slane %v3408_v48, %v7384_v60  ;;  %v3431_v56 = vrot.slane %v3423_v49, %v7384_v60  ;;  %v3438_v57 = vrot.slane %v3424_v50, %v7384_v60  ;;  %v5879_v13 = vpop.eup %5878  ;;  %v5802_v50 = vld [vmem:[%s8067_s20] sm:$0xff]  }
 0xcac   : > { %v3643_v24 = vcombine.low %v3619_v9, %v3635_v11  ;;  %v3644_v26 = vcombine.high %v3619_v9, %v3635_v11  ;;  %v3877_v28 = vmul.f32 %v5879_v13, %v7667_v55  ;;  %v3645_v38 = vcombine.low %v3626_v23, %v3642_v18 }
 0xcad   : > { %v3511_v59 = vcombine.low %v3415_v51, %v3422_v54  ;;  %v5154_v61 = vcombine.high %v3415_v51, %v3422_v54  ;;  %v3527_v62 = vcombine.low %v3431_v56, %v3438_v57  ;;  %v5155_v2 = vcombine.high %v3431_v56, %v3438_v57  ;;  %v5806_v51 = vld [vmem:[%s8067_s20 + $0x20] sm:$0xff]   ;;  %v5807_v54 = vld [vmem:[%s8067_s20 + $0x28] sm:$0xff]  }
 0xcae   : > { %v3646_v39 = vcombine.high %v3626_v23, %v3642_v18  ;;  %v3880_v40 = vpack.c.bf16 %v3876_v27, %v3876_v27  ;;  %v3881_v41 = vpack.c.bf16 %v3877_v28, %v3877_v28 }
 0xcaf   : > { %v3518_v5 = vrot.slane %v3511_v59, %v7381_v53  ;;  %v3526_v6 = vrot.slane %v5154_v61, %v7381_v53  ;;  %v3534_v7 = vrot.slane %v3527_v62, %v7381_v53  ;;  %v3542_v3 = vrot.slane %v5155_v2, %v7381_v53 }
 0xcb1   : > { %v3543_v15 = vcombine.low %v3518_v5, %v3526_v6  ;;  %v3559_v16 = vcombine.low %v3534_v7, %v3542_v3  ;;  %v3544_v17 = vcombine.high %v3518_v5, %v3526_v6  ;;  %v3560_v19 = vcombine.high %v3534_v7, %v3542_v3 }
 0xcb3   : > { %v3551_v20 = vrot.slane %v3543_v15, %v7384_v60  ;;  %v3567_v21 = vrot.slane %v3559_v16, %v7384_v60  ;;  %v3558_v22 = vrot.slane %v3544_v17, %v7384_v60  ;;  %v3574_v10 = vrot.slane %v3560_v19, %v7384_v60 }
 0xcb5   : > { %v3575_v12 = vcombine.low %v3551_v20, %v3567_v21  ;;  %v3576_v25 = vcombine.high %v3551_v20, %v3567_v21  ;;  %v3577_v35 = vcombine.low %v3558_v22, %v3574_v10  ;;  %v3578_v37 = vcombine.high %v3558_v22, %v3574_v10 }
 0xcb7   : > { %v3647_v32 = vpack.c.bf16 %v3643_v24, %v3575_v12  ;;  %v3648_v33 = vpack.c.bf16 %v3644_v26, %v3576_v25  ;;  %v3649_v42 = vpack.c.bf16 %v3645_v38, %v3577_v35  ;;  %v3650_v14 = vpack.c.bf16 %v3646_v39, %v3578_v37  ;;  %v5808_v12 = vld [vmem:[%s8067_s20 + $0x30] sm:$0xff]   ;;  %v5809_v37 = vld [vmem:[%s8067_s20 + $0x38] sm:$0xff]  }
 0xcb9   : > { %5452 = vmatpush3.bf16.msra.mxu0 %v3647_v32  ;;  %5458 = vmatpush3.bf16.msra.mxu1 %v3648_v33 }
 0xcba   : > { %5463 = vmatprep.subr.bf16.mxu0 %v6574_v0  ;;  %5469 = vmatprep.subr.bf16.mxu1 %v6574_v0 }
 0xcbc   : > { %5454 = vmatmul.mubr.msk.bf16.vlgmr.msra.gmra.mrb[20].mxu0 %vm3835_vm6, %v3880_v40  ;;  %5460 = vmatmul.mubr.msk.bf16.vlgmr.msra.gmra.mrb[48].mxu1 %vm3835_vm6, %v3881_v41 }
 0xcbd   : > { %5464 = vmatpush3.bf16.msra.mxu0 %v3649_v42  ;;  %5470 = vmatpush3.bf16.msra.mxu1 %v3650_v14 }
 0xcbe   : > { %5471 = vmatprep.mubr.msk.bf16.mxu1 %vm6576_vm0, %v6574_v0  ;;  %5465 = vmatprep.mubr.msk.bf16.mxu0 %vm6576_vm0, %v6574_v0 }
 0xcbf   : > { %5475 = vmatprep.subr.bf16.mxu0 %v6574_v0 }
 0xccc   : > { %v3871_v52 = vpop.xlane.xlu0 %3870 }
 0xccd   : > { %5880 = vrcp.f32 %v3871_v52 }
 0xcd4   : > { %v3868_v55 = vpop.xlane.xlu1 %3867 }
 0xcd5   : > { %5882 = vrcp.f32 %v3868_v55 }
 0xcd7   : > { %v5881_v43 = vpop.eup %5880 }
 0xcd8   : > { %v3879_v44 = vmul.f32 %v5881_v43, %v7675_v63  ;;  %v5803_v63 = vld [vmem:[%s8067_s20 + $0x8] sm:$0xff]  }
 0xcda   : > { %v3883_v45 = vpack.c.bf16 %v3879_v44, %v3879_v44 }
 0xcdc   : > { %5472 = vmatmul.mubr.msk.bf16.vlgmr.msra.gmra.mrb[52].mxu1 %vm3835_vm6, %v3883_v45 }
 0xcdd   : > { %4491 = vmatprep.mubr.bf16.mxu1 %v6575_v1  ;;  %v5804_v1 = vld [vmem:[%s8067_s20 + $0x10] sm:$0xff]  }
 0xcdf   : > { %v5883_v47 = vpop.eup %5882 }
 0xce0   : > { %v3878_v48 = vmul.f32 %v5883_v47, %v7679_v4  ;;  %v5805_v4 = vld [vmem:[%s8067_s20 + $0x18] sm:$0xff]  }
 0xce2   : > { %v3882_v49 = vpack.c.bf16 %v3878_v48, %v3878_v48 }
 0xce4   : > { %5466 = vmatmul.mubr.msk.bf16.vlgmr.msra.gmra.mrb[24].mxu0 %vm3835_vm6, %v3882_v49 }
 0xce5   : > { %5491 = vmatprep.mubr.msk.bf16.mxu0 %vm6576_vm0, %v6574_v0  ;;  %5476 = vmatpush3.bf16.msra.mxu0 %v5802_v50 }
 0xce6   : > { %5477 = vmatprep.subr.bf16.mxu0 %v6574_v0 }
 0xce9   : > { %5478 = vmatpush3.bf16.msra.mxu0 %v5803_v63 }
 0xcea   : > { %5479 = vmatprep.subr.bf16.mxu0 %v6574_v0 }
 0xced   : > { %5480 = vmatpush3.bf16.msra.mxu0 %v5804_v1 }
 0xcee   : > { %5481 = vmatprep.subr.bf16.mxu0 %v6574_v0 }
 0xcf1   : > { %5482 = vmatpush3.bf16.msra.mxu0 %v5805_v4 }
 0xcf2   : > { %5483 = vmatprep.subr.bf16.mxu0 %v6574_v0 }
 0xcf5   : > { %5484 = vmatpush3.bf16.msra.mxu0 %v5806_v51 }
 0xcf6   : > { %5485 = vmatprep.subr.bf16.mxu0 %v6574_v0 }
 0xcf9   : > { %5486 = vmatpush3.bf16.msra.mxu0 %v5807_v54 }
 0xcfa   : > { %5487 = vmatprep.subr.bf16.mxu0 %v6574_v0 }
 0xcfd   : > { %5488 = vmatpush3.bf16.msra.mxu0 %v5808_v12  ;;  %v5839_v12 = vld [vmem:[#allocation31 + $0x10] sm:$0xff]  }
 0xcfe   : > { %5489 = vmatprep.subr.bf16.mxu0 %v6574_v0 }
 0xd01   : > { %5490 = vmatpush3.bf16.msra.mxu0 %v5809_v37 }
 0xd8f   : > { %v3921_v56 = vpop.f32.mrb[20].mxu0  ;;  %v3964_v57 = vpop.f32.mrb[48].mxu1 }
 0xd90   : > { %v5455_v29 = vpop.f32.mrb[21].mxu0  ;;  %v5461_v58 = vpop.f32.mrb[49].mxu1 }
 0xd91   : > { %v3924_v59 = vpop.f32.mrb[22].mxu0  ;;  %v3967_v61 = vpop.f32.mrb[50].mxu1 }
 0xd92   : > { %v5456_v62 = vpop.f32.mrb[23].mxu0  ;;  %v5462_v2 = vpop.f32.mrb[51].mxu1 }
 0xdaf   : > { %v4050_v5 = vpop.f32.mrb[52].mxu1 }
 0xdb0   : > { %v4072_v6 = vcombine.low %v3964_v57, %v4050_v5  ;;  %v4073_v7 = vcombine.high %v3964_v57, %v4050_v5  ;;  %v5473_v3 = vpop.f32.mrb[53].mxu1  ;;  %v5812_v57 = vld [vmem:[#allocation29 + $0x4] ss:$8 sps:$4 sm:$0xff]  }
 0xdb1   : > { %v4053_v8 = vpop.f32.mrb[54].mxu1  ;;  %4459 = vmatprep.subr.bf16.mxu1 %v5812_v57  ;;  %v5813_v3 = vld [vmem:[#allocation29 + $0x10] ss:$8 sps:$4 sm:$0xff]  }
 0xdb2   : > { %v5474_v9 = vpop.f32.mrb[55].mxu1  ;;  %v4080_v16 = vrot.slane %v4072_v6, %v7381_v53  ;;  %v4087_v17 = vrot.slane %v4073_v7, %v7381_v53  ;;  %v5815_v7 = vld [vmem:[#allocation29 + $0x14] ss:$8 sps:$4 sm:$0xff]   ;;  %v5818_v8 = vld [vmem:[#allocation29 + $0x24] ss:$8 sps:$4 sm:$0xff]  }
 0xdb3   : > { %v5816_v9 = vld [vmem:[#allocation29 + $0x20] ss:$8 sps:$4 sm:$0xff]  }
 0xdb7   : > { %v4007_v11 = vpop.f32.mrb[24].mxu0 }
 0xdb8   : > { %v4056_v31 = vcombine.low %v3921_v56, %v4007_v11  ;;  %v4057_v36 = vcombine.high %v3921_v56, %v4007_v11  ;;  %v5467_v13 = vpop.f32.mrb[25].mxu0  ;;  %v5810_v56 = vld [vmem:[#allocation29] ss:$8 sps:$4 sm:$0xff]   ;;  %v5821_v11 = vld [vmem:[#allocation29 + $0x34] ss:$8 sps:$4 sm:$0xff]  }
 0xdb9   : > { %v4010_v15 = vpop.f32.mrb[26].mxu0  ;;  %4460 = vmatpush1.bf16.msra.mxu1 %v5810_v56  ;;  %v5827_v13 = vld [vmem:[#allocation29 + $0x54] ss:$8 sps:$4 sm:$0xff]  }
 0xdba   : > { %v4064_v19 = vrot.slane %v4056_v31, %v7381_v53  ;;  %v4071_v20 = vrot.slane %v4057_v36, %v7381_v53  ;;  %v5468_v21 = vpop.f32.mrb[27].mxu0  ;;  %4461 = vmatprep.subr.bf16.mxu1 %v5815_v7  ;;  %v5819_v31 = vld [vmem:[#allocation29 + $0x30] ss:$8 sps:$4 sm:$0xff]   ;;  %v5824_v36 = vld [vmem:[#allocation29 + $0x44] ss:$8 sps:$4 sm:$0xff]  }
 0xdbb   : > { %v5825_v15 = vld [vmem:[#allocation29 + $0x50] ss:$8 sps:$4 sm:$0xff]   ;;  %v5834_v21 = vld [vmem:[#allocation31 + $0x40] sm:$0xff]  }
 0xdbc   : > { %v4088_v22 = vcombine.low %v4064_v19, %v4080_v16  ;;  %v4089_v10 = vcombine.high %v4064_v19, %v4080_v16  ;;  %v4104_v23 = vcombine.low %v4071_v20, %v4087_v17  ;;  %v4105_v18 = vcombine.high %v4071_v20, %v4087_v17  ;;  %v5830_v16 = vld [vmem:[#allocation29 + $0x64] ss:$8 sps:$4 sm:$0xff]   ;;  %v5828_v17 = vld [vmem:[#allocation29 + $0x60] ss:$8 sps:$4 sm:$0xff]   ;;  %v5833_v19 = vld [vmem:[#allocation29 + $0x74] ss:$8 sps:$4 sm:$0xff]   ;;  %5297 = vmatprep.subr.bf16.mxu0 %v5834_v21 }
 0xdbd   : > { %4462 = vmatpush1.bf16.msra.mxu1 %v5813_v3  ;;  %v5831_v20 = vld [vmem:[#allocation29 + $0x70] ss:$8 sps:$4 sm:$0xff]   ;;  %v5212_v21 = vld [vmem:[%s8075_s21] ss:$0 sm:$0xff] }
 0xdbe   : > { %v4096_v24 = vrot.slane %v4088_v22, %v7384_v60  ;;  %v4103_v25 = vrot.slane %v4089_v10, %v7384_v60  ;;  %v4112_v26 = vrot.slane %v4104_v23, %v7384_v60  ;;  %v4119_v27 = vrot.slane %v4105_v18, %v7384_v60  ;;  %4463 = vmatprep.subr.bf16.mxu1 %v5818_v8  ;;  %v5835_v22 = vld [vmem:[#allocation31] sm:$0xff]   ;;  %v5836_v10 = vld [vmem:[#allocation31 + $0x48] sm:$0xff]   ;;  %v5838_v18 = vld [vmem:[#allocation31 + $0x50] sm:$0xff]  }
 0xdbf   : > { %v5837_v23 = vld [vmem:[#allocation31 + $0x8] sm:$0xff]  }
 0xdc0   : > { %v4124_v28 = vcombine.low %v4096_v24, %v4103_v25  ;;  %v5166_v32 = vcombine.high %v4096_v24, %v4103_v25  ;;  %v4140_v33 = vcombine.low %v4112_v26, %v4119_v27  ;;  %v5167_v35 = vcombine.high %v4112_v26, %v4119_v27  ;;  %v5840_v24 = vld [vmem:[#allocation31 + $0x58] sm:$0xff]   ;;  %v5842_v26 = vld [vmem:[#allocation31 + $0x60] sm:$0xff]  }
 0xdc1   : > { %4464 = vmatpush1.bf16.msra.mxu1 %v5816_v9  ;;  %v5841_v25 = vld [vmem:[#allocation31 + $0x18] sm:$0xff]   ;;  %v5843_v27 = vld [vmem:[#allocation31 + $0x20] sm:$0xff]  }
 0xdc2   : > { %v4131_v38 = vrot.slane %v4124_v28, %v7381_v53  ;;  %v4139_v39 = vrot.slane %v5166_v32, %v7381_v53  ;;  %v4147_v40 = vrot.slane %v4140_v33, %v7381_v53  ;;  %v4155_v41 = vrot.slane %v5167_v35, %v7381_v53  ;;  %4465 = vmatprep.subr.bf16.mxu1 %v5821_v11  ;;  %v5844_v28 = vld [vmem:[#allocation31 + $0x68] sm:$0xff]  }
 0xdc3   : > { %v5845_v32 = vld [vmem:[#allocation31 + $0x28] sm:$0xff]  }
 0xdc4   : > { %v4157_v42 = vcombine.high %v4131_v38, %v4139_v39  ;;  %v4173_v14 = vcombine.high %v4147_v40, %v4155_v41  ;;  %v4156_v52 = vcombine.low %v4131_v38, %v4139_v39  ;;  %v4172_v55 = vcombine.low %v4147_v40, %v4155_v41 }
 0xdc5   : > { %4466 = vmatpush1.bf16.msra.mxu1 %v5819_v31 }
 0xdc6   : > { %v4171_v43 = vrot.slane %v4157_v42, %v7384_v60  ;;  %v4187_v0 = vrot.slane %v4173_v14, %v7384_v60  ;;  %v4164_v44 = vrot.slane %v4156_v52, %v7384_v60  ;;  %v4180_v45 = vrot.slane %v4172_v55, %v7384_v60  ;;  %4467 = vmatprep.subr.bf16.mxu1 %v5824_v36  ;;  %v5177_v55 = vld [vmem:[%s8069_s10] ss:$0 sm:$0xff]  ;;  %s5215_s10 = sshll.u32 %s8073_s30, 7 }
 0xdc8   : > { %v4190_v47 = vcombine.low %v4171_v43, %v4187_v0  ;;  %v4189_v48 = vcombine.high %v4164_v44, %v4180_v45  ;;  %v4191_v49 = vcombine.high %v4171_v43, %v4187_v0  ;;  %v4188_v50 = vcombine.low %v4164_v44, %v4180_v45  ;;  %v5178_v0 = vld [vmem:[%s8070_s15] ss:$0 sm:$0xff] }
 0xdca   : > { %4197 = vrot.lane.b32.xlu1 %v4190_v47, %s6579_s5  ;;  %4193 = vrot.lane.b32.xlu0 %v4189_v48, %s6577_s4  ;;  %s8068_s4 = sld [smem:[#allocation72_spill]]  ;;  %v5846_v48 = vld [vmem:[#allocation31 + $0x70] sm:$0xff]  }
 0xdce   : > { %4201 = vrot.lane.b32.xlu1 %v4191_v49, %s6578_s17  ;;  %v5847_v49 = vld [vmem:[#allocation31 + $0x30] sm:$0xff]  }
 0xdd0   : > { %v5168_v29 = vld [vmem:[%s8068_s4] ss:$0 sm:$0xff] }
 0xe3c   : > { %v4198_v53 = vpop.permute.xlu1 %4197  ;;  %v4194_v63 = vpop.permute.xlu0 %4193 }
 0xe3d   : > { %v4204_v1 = vsel %vm1907_vm1, %v4188_v50, %v4194_v63  ;;  %v5848_v50 = vld [vmem:[#allocation31 + $0x78] sm:$0xff]  }
 0xe3e   : > { %v4205_v51 = vsel %vm2475_vm4, %v4204_v1, %v4198_v53  ;;  %v5849_v53 = vld [vmem:[#allocation31 + $0x38] sm:$0xff]  }
 0xe3f   : > { %v4367_v63 = vld [vmem:[%s8071_s19] sm:$0x3]  ;;  %s7828_s19 = scalar_lea.hbm %s8077_s11, %s5215_s10 }
 0xe40   : > { %v4202_v4 = vpop.permute.xlu1 %4201  ;;  %v4372_v1 = vrot.slane %v4367_v63, %v7366_v30 }
 0xe41   : > { %v4206_v54 = vsel %vm2477_vm5, %v4205_v51, %v4202_v4  ;;  %v4376_v4 = vrot.slane %v4367_v63, %v7443_v46 }
 0xe42   : > { %v4207_v60 = vpack.c.bf16 %v4206_v54, %v4206_v54 }
 0xe44   : > { %5492 = vmatmul.mubr.bf16.vlgmr.msra.gmra.mrb[28].mxu0 %v4207_v60 }
 0xe45   : > { %5298 = vmatpush3.bf16.msra.mxu0 %v5835_v22 }
 0xe46   : > { %5299 = vmatprep.subr.bf16.mxu0 %v5836_v10  ;;  %v5213_v10 = vld [vmem:[%s8076_s29] ss:$0 sm:$0xff] }
 0xe49   : > { %5300 = vmatpush3.bf16.msra.mxu0 %v5837_v23 }
 0xe4a   : > { %5301 = vmatprep.subr.bf16.mxu0 %v5838_v18 }
 0xe4d   : > { %5302 = vmatpush3.bf16.msra.mxu0 %v5839_v12 }
 0xe4e   : > { %5303 = vmatprep.subr.bf16.mxu0 %v5840_v24 }
 0xe51   : > { %5304 = vmatpush3.bf16.msra.mxu0 %v5841_v25 }
 0xe52   : > { %5305 = vmatprep.subr.bf16.mxu0 %v5842_v26 }
 0xe55   : > { %5306 = vmatpush3.bf16.msra.mxu0 %v5843_v27 }
 0xe56   : > { %5307 = vmatprep.subr.bf16.mxu0 %v5844_v28 }
 0xe59   : > { %5308 = vmatpush3.bf16.msra.mxu0 %v5845_v32 }
 0xe5a   : > { %5309 = vmatprep.subr.bf16.mxu0 %v5846_v48 }
 0xe5d   : > { %5310 = vmatpush3.bf16.msra.mxu0 %v5847_v49 }
 0xe5e   : > { %5311 = vmatprep.subr.bf16.mxu0 %v5848_v50 }
 0xe61   : > { %5312 = vmatpush3.bf16.msra.mxu0 %v5849_v53 }
 0xf17   : > { %v4313_v58 = vpop.f32.mrb[28].mxu0 }
 0xf18   : > { %v4314_v59 = vadd.f32 %v5168_v29, %v4313_v58  ;;  %v5493_v61 = vpop.f32.mrb[29].mxu0 }
 0xf19   : > { %v4316_v62 = vpop.f32.mrb[30].mxu0 }
 0xf1a   : > { %v7796_v2 = vadd.f32 %v4314_v59, %v7565_v34  ;;  %v5494_v5 = vpop.f32.mrb[31].mxu0  ;;  %v5822_v34 = vld [vmem:[#allocation29 + $0x40] ss:$8 sps:$4 sm:$0xff]  }
 0xf1b   : > { %4468 = vmatpush1.bf16.msra.mxu1 %v5822_v34  ;;  %v5195_v5 = vld [vmem:[%s8072_s0] ss:$0 sm:$0xff]  ;;  %s6435_s0 = sshll.u32 %s6582_s28, 4  ;;  %s6436_s0 = int_to_ptr.vmem [resolvable:$false] %s6435_s0 }
 0xf1c   : > { %4322 = vadd.xlane.f32.xlu0 %v7796_v2  ;;  %v4325_v6 = vmul.f32 %v7796_v2, %v7796_v2  ;;  %4469 = vmatprep.subr.bf16.mxu1 %v5827_v13  ;;  %s6437_s30 = scalar_lea.vmem %s6436_s0, 256  ;;  %p6438_p3 = scmp.lt.s32.totalorder %s7830_s18, %s6436_s0 }
 0xf1d   : > { %p6439_p9 = scmp.lt.s32.totalorder %s6437_s30, %s6431_s7 }
 0xf1e   : > { %4326 = vadd.xlane.f32.xlu1 %v4325_v6 }
 0xf1f   : > { %4470 = vmatpush1.bf16.msra.mxu1 %v5825_v15  ;;  %p6440_p11 = por %p6439_p9, %p6438_p3 }
 0xf20   : > { %4471 = vmatprep.subr.bf16.mxu1 %v5830_v16 }
 0xf21   : > { %p6441_p4 = pnand %p6440_p11, %p6434_p0 }
 0xf23   : > { %4472 = vmatpush1.bf16.msra.mxu1 %v5828_v17 }
 0xf24   : > { %4473 = vmatprep.subr.bf16.mxu1 %v5833_v19 }
 0xf27   : > { %4474 = vmatpush1.bf16.msra.mxu1 %v5831_v20 }
 0xfa9   : > { %v4323_v33 = vpop.xlane.xlu0 %4322 }
 0xfaa   : > { %v4324_v35 = vmul.f32 0.0078125, %v4323_v33 }
 0xfab   : > { %v4327_v37 = vpop.xlane.xlu1 %4326 }
 0xfac   : > { %v4329_v38 = vmul.f32 %v4324_v35, %v4324_v35  ;;  %v4328_v39 = vmul.f32 0.0078125, %v4327_v37  ;;  %v4332_v14 = vsub.f32 %v7796_v2, %v4324_v35 }
 0xfae   : > { %v4330_v40 = vsub.f32 %v4328_v39, %v4329_v38 }
 0xfb0   : > { %v4331_v41 = vmax.f32 %v4330_v40, 0.0 }
 0xfb2   : > { %v4333_v42 = vadd.f32 1e-05, %v4331_v41 }
 0xfb4   : > { %5884 = vrsqrt.f32 %v4333_v42 }
 0xfbe   : > { %v5885_v52 = vpop.eup %5884 }
 0xfbf   : > { %v4335_v43 = vmul.f32 %v5885_v52, %v4332_v14 }
 0xfc1   : > { %v4342_v44 = vmul.f32 %v5177_v55, %v4335_v43 }
 0xfc3   : > { %v4349_v45 = vadd.f32 %v5178_v0, %v4342_v44 }
 0xfc5   : > { %v4350_v47 = vpack.c.bf16 %v4349_v45, %v4349_v45 }
 0xfc7   : > { %4492 = vmatmul.mubr.bf16.vlgmr.msra.gmra.mrb[56].mxu1 %v4350_v47 }
0x109a   : > { %v4493_v51 = vpop.f32.mrb[56].mxu1 }
0x109b   : > { %v4494_v54 = vadd.f32 %v4493_v51, %v4372_v1  ;;  %v4495_v60 = vpop.f32.mrb[57].mxu1 }
0x109c   : > { %v4496_v56 = vadd.f32 %v4495_v60, %v4376_v4  ;;  %v4497_v57 = vpop.f32.mrb[58].mxu1 }
0x109d   : > { %v4500_v29 = vmax.f32 %v4494_v54, 0.0  ;;  %v4498_v58 = vpop.f32.mrb[59].mxu1 }
0x109e   : > { %v4501_v59 = vmax.f32 %v4496_v56, 0.0 }
0x109f   : > { %v4502_v62 = vpack.c.bf16 %v4500_v29, %v4500_v29 }
0x10a0   : > { %v4503_v61 = vpack.c.bf16 %v4501_v59, %v4501_v59 }
0x10a2   : > { %4671 = vmatprep.mubr.bf16.mxu0 %v4503_v61 }
0x10a3   : > { %4672 = vmatmul.mubr.bf16.vlgmr.msra.gmra.mrb[32].mxu0 %v4502_v62 }
0x1176   : > { %v5313_v2 = vpop.f32.mrb[32].mxu0 }
0x1177   : > { %v5314_v30 = vpop.f32.mrb[33].mxu0 }
0x1178   : > { %v5315_v6 = vadd.f32 %v5314_v30, %v5313_v2  ;;  %v5316_v46 = vpop.f32.mrb[34].mxu0 }
0x1179   : > { %v5317_v7 = vpop.f32.mrb[35].mxu0 }
0x117a   : > { %v4674_v3 = vadd.f32 %v5315_v6, %v5195_v5 }
0x117c   : > { %v4679_v8 = vadd.f32 %v4674_v3, %v4349_v45 }
0x117e   : > { %4682 = vadd.xlane.f32.xlu0 %v4679_v8  ;;  %v4685_v9 = vmul.f32 %v4679_v8, %v4679_v8 }
0x1182   : > { %4686 = vadd.xlane.f32.xlu0 %v4685_v9 }
0x120b   : > { %v4683_v11 = vpop.xlane.xlu0 %4682 }
0x120c   : > { %v4684_v31 = vmul.f32 0.0078125, %v4683_v11 }
0x120e   : > { %v4689_v34 = vmul.f32 %v4684_v31, %v4684_v31  ;;  %v4692_v19 = vsub.f32 %v4679_v8, %v4684_v31 }
0x120f   : > { %v4687_v36 = vpop.xlane.xlu0 %4686 }
0x1210   : > { %v4688_v13 = vmul.f32 0.0078125, %v4687_v36 }
0x1212   : > { %v4690_v15 = vsub.f32 %v4688_v13, %v4689_v34 }
0x1214   : > { %v4691_v16 = vmax.f32 %v4690_v15, 0.0 }
0x1216   : > { %v4693_v17 = vadd.f32 1e-05, %v4691_v16 }
0x1218   : > { %5886 = vrsqrt.f32 %v4693_v17 }
0x1222   : > { %v5887_v20 = vpop.eup %5886 }
0x1223   : > { %v4695_v22 = vmul.f32 %v5887_v20, %v4692_v19 }
0x1225   : > { %v4702_v23 = vmul.f32 %v5212_v21, %v4695_v22 }
0x1227   : > { %v4709_v18 = vadd.f32 %v5213_v10, %v4702_v23 }
0x1229   : > { %4710 = vst [vmem:[%s1181_s2] sm:$0xff] %v4709_v18 }
0x122a   : > { %6444 = shalt.err (!%p6441_p4)
}
0x122b   : > { %s6445_s8 = scalar_lea.hbm %s7828_s19, 128  ;;  %s6449_s21 = scalar_lea.hbm %s8077_s11, 256 }
0x122c   : > { %p6446_p1 = scmp.ne.s32.totalorder %s7828_s19, %s6445_s8  ;;  %p6450_p8 = scmp.lt.u32.totalorder %s7828_s19, %s8077_s11 }
0x122d   : > { %p6451_p12 = scmp.lt.u32.totalorder %s6449_s21, %s6445_s8  ;;  %p6453_p13 = scmp.lt.u32.totalorder %s6445_s8, %s7828_s19 }
0x122e   : > { %p6447_p7 = pnand %p6446_p1, %p8078_p5 }
0x122f   : > { %p6452_p6 = por %p6451_p12, %p6450_p8 }
0x1230   : > { %p6448_p10 = pneg %p6447_p7 }
0x1231   : > { %p6454_p2 = por %p6453_p13, %p6452_p6 }
0x1233   : > { %p6455_p0 = pnand %p6454_p2, %p6448_p10 }
0x1235   : > { %6458 = shalt.err (!%p6455_p0)
}
0x1236   : > { %5561 = dma.vmem_to_hbm [thread:$0]  (%p8078_p5), %s7830_s18, 128, %s7828_s19, %s4712_s1  }
0x1237 PF: > { %s8079_s29 = sld [smem:[#allocation44_spill]]  ;;  %s8080_s10 = sld [smem:[#allocation55_spill]] }
0x1238   : > { %s8081_s2 = sld [smem:[#allocation48_spill]] }
0x123d   : > { %s4738_s15 = sand.u32 1, %s8079_s29   ;;  %p8082_p3 = scmp.ne.s32.totalorder %s8080_s10, 0 }
0x123e   : > { %p8083_p9 = scmp.ge.s32.totalorder %s8081_s2, 2  ;;  %s4739_s22 = scalar_lea.sflag [#allocation4], %s4738_s15 }
0x1240   : > { %p5623_p11 = pnand %p8083_p9, %p8082_p3 }
0x1242   : > { %6524 = dma.done.wait (!%p5623_p11), %s4739_s22, 128  }
0x1243   : > { %6526 = vsyncadd (!%p5623_p11), %s4739_s22, 4294967168  ;;  %s56_s5 = sadd.s32 1, %s8081_s2   ;;  %s8084_s7 = sld [smem:[#allocation45_spill]] }
0x1244   : > { %p53_p4 = scmp.ge.s32.totalorder %s56_s5, 4   ;;  %s8085_s4 = sld [smem:[#allocation46_spill]] }
0x1245   : > { %s8086_s8 = sld [smem:[#allocation54_spill]]  ;;  %s8087_s26 = sld [smem:[#allocation51_spill]] }
0x1246   : > { %s8088_s30 = smov %s6545_s9  ;;  %55 = sbr.rel (!%p53_p4) target bundleno = 42 (0x2a), region = 278 }
0x124b   : > { %s8089_s9 = smov %s8087_s26 }
0x124d   :  { %4744 = vsyncpa [#allocation3], 1 }
0x124e   :  { %4746 = vsyncpa [#allocation3 + $0x1], 1 }
0x124f   :  { %4747 = vsyncpa [#allocation6], 1 }
0x1250   :  { %4749 = vsyncpa [#allocation6 + $0x1], 1 }
0x1251   :  { %4750 = vsyncpa [#allocation9], 1 }
0x1252   :  { %4752 = vsyncpa [#allocation9 + $0x1], 1 }
0x1253   :  { %4753 = vsyncpa [#allocation12], 1 }
0x1254   :  { %4754 = vsyncpa [#allocation15], 1 }
0x1255   :  { %4755 = vsyncpa [#allocation18], 1 }
0x1256   :  { %4756 = vsyncpa [#allocation21], 1 }
0x1257   :  { %4757 = vsyncpa [#allocation24], 1 }
0x1258   :  { %4758 = vsyncpa [#allocation27], 1 }
0x1259   :  { %4759 = vsyncpa [#allocation30], 1 }
0x125a   :  { %4760 = vsyncpa [#allocation4], 1 }
0x125b   :  { %4762 = vsyncpa [#allocation4 + $0x1], 1 }

</bundles_post_ra>
